<compile_context>
chip_gen: v7x
topology: tpu7x:2x2x1
jax: 0.10.0
libtpu: 0.0.40
codegen_flags: <defaults>
</compile_context>

<pallas_src>
import functools

import jax
import jax.numpy as jnp
from jax import lax
from jax.experimental import pallas as pl
from jax.experimental.pallas import tpu as pltpu


SB = 8            # samples per inner sub-tile (fixed; selectors are built for it)
BATCH_BLOCK = 128  # samples per grid step (batch is zero-padded up to a multiple)


# ----------------------------- fused Pallas kernel -----------------------------

def _cnn_fashion_kernel(x_ref, t1_ref, b1_ref, cc1_ref, sh1_ref, t2_ref, b2_ref,
                        cc2_ref, sel2_ref, w1_ref, fb1_ref, w2_ref, fb2_ref,
                        w3_ref, fb3_ref, out_ref, feats_ref):
    # x_ref   : (nb, cin, 28, 28) f32 image block
    # t1_ref  : (cin, 5, 28, 144) bf16 Toeplitz conv1 weights, out lane = ow*6+oc
    # b1_ref  : (1, 144) f32 conv1 bias tiled over ow
    # cc1_ref : (2, 144, 72) bf16 conv1 width-pool even/odd selectors
    # sh1_ref : (5, 2, SB*8, SB*24) bf16 fused conv1 height-pool + conv2 row-shift selectors
    # t2_ref  : (5, 72, 128) bf16 per-kh Toeplitz conv2 weights, out lane = ow*16+oc
    # b2_ref  : (1, 128) f32 conv2 bias tiled over ow
    # cc2_ref : (2, 128, 64) bf16 conv2 width-pool selectors
    # sel2_ref: (4, 2, SB, SB*8) bf16 conv2 height-pool + flatten row selectors
    # w*/fb*  : fc weights (bf16) / biases (f32); fc3 padded to 128 output lanes
    # out_ref : (nb, 128) f32 padded log-probs
    # feats_ref: (nb, 256) f32 VMEM scratch, column = h*64 + w*16 + c
    nb, cin = x_ref.shape[0], x_ref.shape[1]
    nsub = nb // SB
    f32, bf16 = jnp.float32, jnp.bfloat16

    def sub_tile(s, carry):
        i0 = pl.multiple_of(s * SB, SB)
        xs = x_ref[pl.ds(i0, SB)]                               # (SB, cin, 28, 28)

        # ---- conv1 (Toeplitz over kw) + bias + ReLU ----------------------
        acc1 = jnp.zeros((SB * 24, 144), f32)
        for kh in range(5):
            xkh = xs[:, :, kh:kh + 24, :]                       # slice once per kh
            for c in range(cin):
                lhs = xkh[:, c].reshape(SB * 24, 28).astype(bf16)
                acc1 = acc1 + jnp.dot(lhs, t1_ref[c, kh],
                                      preferred_element_type=f32)
        a1 = jnp.maximum(acc1 + b1_ref[...], 0.0).astype(bf16)  # (SB*24, 144)

        # ---- conv1 2x2 max-pool (width) via 0/1 selector dots ------------
        wp1 = jnp.maximum(
            jnp.dot(a1, cc1_ref[0], preferred_element_type=f32),
            jnp.dot(a1, cc1_ref[1], preferred_element_type=f32),
        ).astype(bf16)                                          # (SB*24, 72)

        # ---- conv2: height-pool fused into per-kh row selection ----------
        acc2 = jnp.zeros((SB * 8, 128), f32)
        for kh in range(5):
            rows = jnp.maximum(
                jnp.dot(sh1_ref[kh, 0], wp1, preferred_element_type=f32),
                jnp.dot(sh1_ref[kh, 1], wp1, preferred_element_type=f32),
            ).astype(bf16)                                      # (SB*8, 72)
            acc2 = acc2 + jnp.dot(rows, t2_ref[kh], preferred_element_type=f32)
        a2 = jnp.maximum(acc2 + b2_ref[...], 0.0).astype(bf16)  # (SB*8, 128)

        # ---- conv2 2x2 max-pool: width via selectors ----------------------
        wp2 = jnp.maximum(
            jnp.dot(a2, cc2_ref[0], preferred_element_type=f32),
            jnp.dot(a2, cc2_ref[1], preferred_element_type=f32),
        ).astype(bf16)                                          # (SB*8, 64)

        # ---- height pool + flatten to lane-dense (SB, 256) features ------
        for h in range(4):
            piece = jnp.maximum(
                jnp.dot(sel2_ref[h, 0], wp2, preferred_element_type=f32),
                jnp.dot(sel2_ref[h, 1], wp2, preferred_element_type=f32),
            )                                                   # (SB, 64)
            feats_ref[pl.ds(i0, SB), pl.ds(h * 64, 64)] = piece
        return carry

    lax.fori_loop(0, nsub, sub_tile, 0)

    # ---- fused fc1 -> ReLU -> fc2 -> ReLU -> fc3 -> log_softmax ----------
    feats = feats_ref[...].astype(bf16)                         # (nb, 256)
    hid = jnp.dot(feats, w1_ref[...], preferred_element_type=f32) + fb1_ref[...]
    hid = jnp.maximum(hid, 0.0).astype(bf16)
    hid = jnp.dot(hid, w2_ref[...], preferred_element_type=f32) + fb2_ref[...]
    hid = jnp.maximum(hid, 0.0).astype(bf16)
    z = jnp.dot(hid, w3_ref[...], preferred_element_type=f32) + fb3_ref[...]
    m = jnp.max(z, axis=-1, keepdims=True)
    e = jnp.exp(z - m)
    out_ref[...] = z - (jnp.log(jnp.sum(e, axis=-1, keepdims=True)) + m)


# ------------------------ weight / selector preparation ------------------------

def _col_pool_selectors(w, c):
    # (2, w*c, (w//2)*c): exact 0/1 matrices selecting even/odd width positions
    # while keeping the per-position channel block intact.
    ow = jnp.arange(w)
    j = jnp.arange(w // 2)
    even = (ow[:, None] == 2 * j[None, :]).astype(jnp.float32)
    odd = (ow[:, None] == 2 * j[None, :] + 1).astype(jnp.float32)
    eye_c = jnp.eye(c, dtype=jnp.float32)
    ce = (even[:, None, :, None] * eye_c[None, :, None, :]).reshape(w * c, (w // 2) * c)
    co = (odd[:, None, :, None] * eye_c[None, :, None, :]).reshape(w * c, (w // 2) * c)
    return jnp.stack([ce, co])


def _shift_pool_selectors(sb):
    # sh[kh, e][n*8+oh, m*24+q] = (n==m) & (q == 2*(oh+kh)+e)
    # -> selecting these rows of the pre-height-pool conv1 activations and taking
    #    the elementwise max performs height pooling AND the conv2 kh row shift.
    rows = jnp.arange(sb * 8)
    cols = jnp.arange(sb * 24)
    rn, roh = rows // 8, rows % 8
    cm, cq = cols // 24, cols % 24
    per_kh = []
    for kh in range(5):
        per_e = []
        for e in range(2):
            m = (rn[:, None] == cm[None, :]) & (cq[None, :] == 2 * (roh[:, None] + kh) + e)
            per_e.append(m.astype(jnp.float32))
        per_kh.append(jnp.stack(per_e))
    return jnp.stack(per_kh)                                    # (5, 2, sb*8, sb*24)


def _feat_row_selectors(sb):
    # sel[h, e][n, m*8+r] = (n==m) & (r == 2h+e)  -> conv2 height pool + flatten
    rows = jnp.arange(sb)
    cols = jnp.arange(sb * 8)
    cm, cr = cols // 8, cols % 8
    per_h = []
    for h in range(4):
        per_e = []
        for e in range(2):
            m = (rows[:, None] == cm[None, :]) & (cr[None, :] == 2 * h + e)
            per_e.append(m.astype(jnp.float32))
        per_h.append(jnp.stack(per_e))
    return jnp.stack(per_h)                                     # (4, 2, sb, sb*8)


def _prep_conv1(w, b):
    # w: (6, cin, 5, 5) -> Toeplitz T[c, kh, win, ow*6+oc] = w[oc, c, kh, win-ow]
    cin = w.shape[1]
    wt = jnp.transpose(w, (1, 2, 3, 0)).astype(jnp.float32)     # (cin, 5, 5, 6)
    win = jnp.arange(28)
    ow = jnp.arange(24)
    t = jnp.zeros((cin, 5, 28, 24, 6), jnp.float32)
    for kw in range(5):
        mask = (win[:, None] - ow[None, :] == kw).astype(jnp.float32)
        t = t + mask[None, None, :, :, None] * wt[:, :, kw][:, :, None, None, :]
    return t.reshape(cin, 5, 28, 144), jnp.tile(b.astype(jnp.float32), 24).reshape(1, 144)


def _prep_conv2(w, b):
    # w: (16, 6, 5, 5) -> per-kh Toeplitz T[kh][iw*6+c, ow*16+oc] = w[oc, c, kh, iw-ow]
    w2t = jnp.transpose(w, (2, 3, 1, 0)).astype(jnp.float32)    # (5, 5, 6, 16)
    iw = jnp.arange(12)
    ow = jnp.arange(8)
    t = jnp.zeros((5, 12, 6, 8, 16), jnp.float32)
    for kw in range(5):
        mask = (iw[:, None] - ow[None, :] == kw).astype(jnp.float32)
        t = t + mask[None, :, None, :, None] * w2t[:, kw][:, None, :, None, :]
    return t.reshape(5, 72, 128), jnp.tile(b.astype(jnp.float32), 8).reshape(1, 128)


def _prep_fc(params, num_classes):
    # Kernel feature order is (h, w, c); PyTorch flattens (c, h, w) -> permute fc1 rows.
    w1 = params["fc1_w"].astype(jnp.float32).reshape(-1, 16, 4, 4)   # (120, c, h, w)
    w1 = jnp.transpose(w1, (2, 3, 1, 0)).reshape(256, -1)            # row = h*64+w*16+c
    b1 = params["fc1_b"].astype(jnp.float32).reshape(1, -1)
    w2 = params["fc2_w"].T.astype(jnp.float32)
    b2 = params["fc2_b"].astype(jnp.float32).reshape(1, -1)
    w3 = jnp.zeros((84, 128), jnp.float32).at[:, :num_classes].set(
        params["fc3_w"].T.astype(jnp.float32))
    b3 = jnp.full((128,), -1e9, jnp.float32).at[:num_classes].set(
        params["fc3_b"].astype(jnp.float32)).reshape(1, 128)
    return w1, b1, w2, b2, w3, b3


def prepare_params(params):
    """Expand PyTorch-layout params into kernel operands.  Call ONCE per model."""
    nc = int(params["fc3_b"].shape[0])
    assert nc <= 128, "fc3 output padded to 128 lanes"
    t1, b1t = _prep_conv1(params["conv1_w"], params["conv1_b"])
    t2, b2t = _prep_conv2(params["conv2_w"], params["conv2_b"])
    cc1 = _col_pool_selectors(24, 6)
    cc2 = _col_pool_selectors(8, 16)
    sh1 = _shift_pool_selectors(SB)
    sel2 = _feat_row_selectors(SB)
    fw1, fb1, fw2, fb2, fw3, fb3 = _prep_fc(params, nc)

    bf = lambda a: a.astype(jnp.bfloat16)   # matmul operands in bf16 (selectors exact)
    ops = (bf(t1), b1t, bf(cc1), bf(sh1), bf(t2), b2t, bf(cc2), bf(sel2),
           bf(fw1), fb1, bf(fw2), fb2, bf(fw3), fb3)
    return {"ops": ops, "num_classes": nc}


# ------------------------------ forward pass -------------------------------

def _round_up(a, b):
    return ((a + b - 1) // b) * b


def _const_spec(arr):
    nd = arr.ndim
    return pl.BlockSpec(arr.shape, lambda i, _nd=nd: (0,) * _nd)


@functools.partial(jax.jit, static_argnames=("num_classes",))
def _forward_padded(x, ops, *, num_classes):
    (t1, b1t, cc1, sh1, t2, b2t, cc2, sel2,
     fw1, fb1, fw2, fb2, fw3, fb3) = ops
    n, cin, hh, ww = x.shape
    assert (hh, ww) == (28, 28), "CNNFashion expects 28x28 inputs"
    x = x.astype(jnp.float32)

    nb = min(BATCH_BLOCK, _round_up(n, SB))
    npad = _round_up(n, nb)
    if npad != n:
        x = jnp.pad(x, ((0, npad - n), (0, 0), (0, 0), (0, 0)))
    grid = (npad // nb,)

    consts = (t1, b1t, cc1, sh1, t2, b2t, cc2, sel2,
              fw1, fb1, fw2, fb2, fw3, fb3)

    logp = pl.pallas_call(
        _cnn_fashion_kernel,
        out_shape=jax.ShapeDtypeStruct((npad, 128), jnp.float32),
        grid=grid,
        in_specs=[pl.BlockSpec((nb, cin, 28, 28), lambda i: (i, 0, 0, 0))]
                 + [_const_spec(a) for a in consts],
        out_specs=pl.BlockSpec((nb, 128), lambda i: (i, 0)),
        scratch_shapes=[pltpu.VMEM((nb, 256), jnp.float32)],
        compiler_params=pltpu.CompilerParams(
            dimension_semantics=("parallel",),
            vmem_limit_bytes=32 * 1024 * 1024),
    )(x, *consts)
    return logp[:n, :num_classes]


def cnn_fashion_forward(x, prepared):
    return _forward_padded(x, prepared["ops"], num_classes=prepared["num_classes"])


# ------------------------------ params & reference -------------------------------

def init_params(key, num_classes=10, in_channels=1):
    ks = jax.random.split(key, 10)

    def rnd(k, shape, scale=0.05):
        return scale * jax.random.normal(k, shape, jnp.float32)

    return {
        "conv1_w": rnd(ks[0], (6, in_channels, 5, 5)),
        "conv1_b": rnd(ks[1], (6,)),
        "conv2_w": rnd(ks[2], (16, 6, 5, 5)),
        "conv2_b": rnd(ks[3], (16,)),
        "fc1_w": rnd(ks[4], (120, 16 * 4 * 4)),
        "fc1_b": rnd(ks[5], (120,)),
        "fc2_w": rnd(ks[6], (84, 120)),
        "fc2_b": rnd(ks[7], (84,)),
        "fc3_w": rnd(ks[8], (num_classes, 84)),
        "fc3_b": rnd(ks[9], (num_classes,)),
    }


def _reference_forward(x, params):
    # Pure-JAX/XLA replica of the PyTorch forward (for a correctness check).
    dn = ("NCHW", "OIHW", "NCHW")
    y = lax.conv_general_dilated(x, params["conv1_w"], (1, 1), "VALID",
                                 dimension_numbers=dn)
    y = jnp.maximum(y + params["conv1_b"][None, :, None, None], 0.0)
    y = lax.reduce_window(y, -jnp.inf, lax.max, (1, 1, 2, 2), (1, 1, 2, 2), "VALID")
    y = lax.conv_general_dilated(y, params["conv2_w"], (1, 1), "VALID",
                                 dimension_numbers=dn)
    y = jnp.maximum(y + params["conv2_b"][None, :, None, None], 0.0)
    y = lax.reduce_window(y, -jnp.inf, lax.max, (1, 1, 2, 2), (1, 1, 2, 2), "VALID")
    y = y.reshape(y.shape[0], -1)
    y = jnp.maximum(y @ params["fc1_w"].T + params["fc1_b"], 0.0)
    y = jnp.maximum(y @ params["fc2_w"].T + params["fc2_b"], 0.0)
    z = y @ params["fc3_w"].T + params["fc3_b"]
    return jax.nn.log_softmax(z, axis=-1)


if __name__ == "__main__":
    key = jax.random.PRNGKey(0)
    k_x, k_p = jax.random.split(key)
    # 28x28 with 1 input channel is implied by fc1's 16*4*4 input features.
    x = jax.random.normal(k_x, (2, 1, 28, 28), jnp.float32)
    params = init_params(k_p)

    prepared = prepare_params(params)          # one-time weight expansion
    out = jax.block_until_ready(cnn_fashion_forward(x, prepared))

    assert out.shape == (2, 10)
    assert bool(jnp.all(jnp.isfinite(out)))
    # log_softmax rows must exponentiate-and-sum to ~1
    assert bool(jnp.all(jnp.abs(jnp.sum(jnp.exp(out), axis=-1) - 1.0) < 1e-4))
    # match the PyTorch-equivalent reference (bf16 matmul operands -> loose tol)
    ref = _reference_forward(x, params)
    err = float(jnp.max(jnp.abs(out - ref)))
    assert err < 3e-2, f"mismatch vs reference: {err}"
    print("KERNEL_OK")
</pallas_src>

<mosaic_0001>
module attributes {stable_mosaic.version = 11 : i64} {
  func.func @_cnn_fashion_kernel(%arg0: i32, %arg1: memref<8x1x28x28xf32, #tpu.memory_space<vmem>>, %arg2: memref<1x5x28x144xbf16, #tpu.memory_space<vmem>>, %arg3: memref<1x144xf32, #tpu.memory_space<vmem>>, %arg4: memref<2x144x72xbf16, #tpu.memory_space<vmem>>, %arg5: memref<5x2x64x192xbf16, #tpu.memory_space<vmem>>, %arg6: memref<5x72x128xbf16, #tpu.memory_space<vmem>>, %arg7: memref<1x128xf32, #tpu.memory_space<vmem>>, %arg8: memref<2x128x64xbf16, #tpu.memory_space<vmem>>, %arg9: memref<4x2x8x64xbf16, #tpu.memory_space<vmem>>, %arg10: memref<256x120xbf16, #tpu.memory_space<vmem>>, %arg11: memref<1x120xf32, #tpu.memory_space<vmem>>, %arg12: memref<120x84xbf16, #tpu.memory_space<vmem>>, %arg13: memref<1x84xf32, #tpu.memory_space<vmem>>, %arg14: memref<84x128xbf16, #tpu.memory_space<vmem>>, %arg15: memref<1x128xf32, #tpu.memory_space<vmem>>, %arg16: memref<8x128xf32, #tpu.memory_space<vmem>>, %arg17: memref<8x256xf32, #tpu.memory_space<vmem>>) attributes {dimension_semantics = [#tpu.dimension_semantics<parallel>], iteration_bounds = array<i64: 1>, scalar_prefetch = 0 : i64, scratch_operands = 1 : i64, tpu.core_type = #tpu.core_type<tc>, window_params = [{transform_indices = @transform_0, window_bounds = array<i64: 8, 1, 28, 28>}, {pipeline_mode = #tpu.pipeline_mode<synchronous>, transform_indices = @transform_1, window_bounds = array<i64: 1, 5, 28, 144>}, {pipeline_mode = #tpu.pipeline_mode<synchronous>, transform_indices = @transform_2, window_bounds = array<i64: 1, 144>}, {pipeline_mode = #tpu.pipeline_mode<synchronous>, transform_indices = @transform_3, window_bounds = array<i64: 2, 144, 72>}, {pipeline_mode = #tpu.pipeline_mode<synchronous>, transform_indices = @transform_4, window_bounds = array<i64: 5, 2, 64, 192>}, {pipeline_mode = #tpu.pipeline_mode<synchronous>, transform_indices = @transform_5, window_bounds = array<i64: 5, 72, 128>}, {pipeline_mode = #tpu.pipeline_mode<synchronous>, transform_indices = @transform_6, window_bounds = array<i64: 1, 128>}, {pipeline_mode = #tpu.pipeline_mode<synchronous>, transform_indices = @transform_7, window_bounds = array<i64: 2, 128, 64>}, {pipeline_mode = #tpu.pipeline_mode<synchronous>, transform_indices = @transform_8, window_bounds = array<i64: 4, 2, 8, 64>}, {pipeline_mode = #tpu.pipeline_mode<synchronous>, transform_indices = @transform_9, window_bounds = array<i64: 256, 120>}, {pipeline_mode = #tpu.pipeline_mode<synchronous>, transform_indices = @transform_10, window_bounds = array<i64: 1, 120>}, {pipeline_mode = #tpu.pipeline_mode<synchronous>, transform_indices = @transform_11, window_bounds = array<i64: 120, 84>}, {pipeline_mode = #tpu.pipeline_mode<synchronous>, transform_indices = @transform_12, window_bounds = array<i64: 1, 84>}, {pipeline_mode = #tpu.pipeline_mode<synchronous>, transform_indices = @transform_13, window_bounds = array<i64: 84, 128>}, {pipeline_mode = #tpu.pipeline_mode<synchronous>, transform_indices = @transform_14, window_bounds = array<i64: 1, 128>}, {transform_indices = @transform_15, window_bounds = array<i64: 8, 128>}]} {
    %c0_i32 = arith.constant 0 : i32
    %c8_i32 = arith.constant 8 : i32
    %0 = arith.muli %c0_i32, %c8_i32 : i32
    %1 = tpu.assume_multiple %0, 8 : i32
    %2 = arith.index_cast %1 : i32 to index
    %c0 = arith.constant 0 : index
    %c0_0 = arith.constant 0 : index
    %c0_1 = arith.constant 0 : index
    %3 = vector.load %arg1[%2, %c0, %c0_0, %c0_1] : memref<8x1x28x28xf32, #tpu.memory_space<vmem>>, vector<8x1x28x28xf32>
    %cst = arith.constant 0.000000e+00 : f32
    %4 = vector.broadcast %cst : f32 to vector<192x144xf32>
    %5 = vector.extract_strided_slice %3 {offsets = [0, 0, 0, 0], sizes = [8, 1, 24, 28], strides = [1, 1, 1, 1]} : vector<8x1x28x28xf32> to vector<8x1x24x28xf32>
    %6 = vector.shape_cast %5 : vector<8x1x24x28xf32> to vector<8x24x28xf32>
    %7 = vector.shape_cast %6 : vector<8x24x28xf32> to vector<192x28xf32>
    %8 = arith.truncf %7 : vector<192x28xf32> to vector<192x28xbf16>
    %c0_2 = arith.constant 0 : index
    %c0_3 = arith.constant 0 : index
    %c0_4 = arith.constant 0 : index
    %c0_5 = arith.constant 0 : index
    %9 = vector.load %arg2[%c0_2, %c0_3, %c0_4, %c0_5] : memref<1x5x28x144xbf16, #tpu.memory_space<vmem>>, vector<1x1x28x144xbf16>
    %10 = vector.shape_cast %9 : vector<1x1x28x144xbf16> to vector<28x144xbf16>
    %cst_6 = arith.constant dense<0.000000e+00> : vector<192x144xf32>
    %11 = tpu.matmul %8, %10, %cst_6 {dimension_numbers = #tpu.dot_dimension_numbers<[1], [0], [0], [1], [0, 0, 1, 1], [], []>} : vector<192x28xbf16>, vector<28x144xbf16>, vector<192x144xf32> -> vector<192x144xf32>
    %12 = arith.addf %4, %11 : vector<192x144xf32>
    %13 = vector.extract_strided_slice %3 {offsets = [0, 0, 1, 0], sizes = [8, 1, 24, 28], strides = [1, 1, 1, 1]} : vector<8x1x28x28xf32> to vector<8x1x24x28xf32>
    %14 = vector.shape_cast %13 : vector<8x1x24x28xf32> to vector<8x24x28xf32>
    %15 = vector.shape_cast %14 : vector<8x24x28xf32> to vector<192x28xf32>
    %16 = arith.truncf %15 : vector<192x28xf32> to vector<192x28xbf16>
    %c0_7 = arith.constant 0 : index
    %c1 = arith.constant 1 : index
    %c0_8 = arith.constant 0 : index
    %c0_9 = arith.constant 0 : index
    %17 = vector.load %arg2[%c0_7, %c1, %c0_8, %c0_9] : memref<1x5x28x144xbf16, #tpu.memory_space<vmem>>, vector<1x1x28x144xbf16>
    %18 = vector.shape_cast %17 : vector<1x1x28x144xbf16> to vector<28x144xbf16>
    %cst_10 = arith.constant dense<0.000000e+00> : vector<192x144xf32>
    %19 = tpu.matmul %16, %18, %cst_10 {dimension_numbers = #tpu.dot_dimension_numbers<[1], [0], [0], [1], [0, 0, 1, 1], [], []>} : vector<192x28xbf16>, vector<28x144xbf16>, vector<192x144xf32> -> vector<192x144xf32>
    %20 = arith.addf %12, %19 : vector<192x144xf32>
    %21 = vector.extract_strided_slice %3 {offsets = [0, 0, 2, 0], sizes = [8, 1, 24, 28], strides = [1, 1, 1, 1]} : vector<8x1x28x28xf32> to vector<8x1x24x28xf32>
    %22 = vector.shape_cast %21 : vector<8x1x24x28xf32> to vector<8x24x28xf32>
    %23 = vector.shape_cast %22 : vector<8x24x28xf32> to vector<192x28xf32>
    %24 = arith.truncf %23 : vector<192x28xf32> to vector<192x28xbf16>
    %c0_11 = arith.constant 0 : index
    %c2 = arith.constant 2 : index
    %c0_12 = arith.constant 0 : index
    %c0_13 = arith.constant 0 : index
    %25 = vector.load %arg2[%c0_11, %c2, %c0_12, %c0_13] : memref<1x5x28x144xbf16, #tpu.memory_space<vmem>>, vector<1x1x28x144xbf16>
    %26 = vector.shape_cast %25 : vector<1x1x28x144xbf16> to vector<28x144xbf16>
    %cst_14 = arith.constant dense<0.000000e+00> : vector<192x144xf32>
    %27 = tpu.matmul %24, %26, %cst_14 {dimension_numbers = #tpu.dot_dimension_numbers<[1], [0], [0], [1], [0, 0, 1, 1], [], []>} : vector<192x28xbf16>, vector<28x144xbf16>, vector<192x144xf32> -> vector<192x144xf32>
    %28 = arith.addf %20, %27 : vector<192x144xf32>
    %29 = vector.extract_strided_slice %3 {offsets = [0, 0, 3, 0], sizes = [8, 1, 24, 28], strides = [1, 1, 1, 1]} : vector<8x1x28x28xf32> to vector<8x1x24x28xf32>
    %30 = vector.shape_cast %29 : vector<8x1x24x28xf32> to vector<8x24x28xf32>
    %31 = vector.shape_cast %30 : vector<8x24x28xf32> to vector<192x28xf32>
    %32 = arith.truncf %31 : vector<192x28xf32> to vector<192x28xbf16>
    %c0_15 = arith.constant 0 : index
    %c3 = arith.constant 3 : index
    %c0_16 = arith.constant 0 : index
    %c0_17 = arith.constant 0 : index
    %33 = vector.load %arg2[%c0_15, %c3, %c0_16, %c0_17] : memref<1x5x28x144xbf16, #tpu.memory_space<vmem>>, vector<1x1x28x144xbf16>
    %34 = vector.shape_cast %33 : vector<1x1x28x144xbf16> to vector<28x144xbf16>
    %cst_18 = arith.constant dense<0.000000e+00> : vector<192x144xf32>
    %35 = tpu.matmul %32, %34, %cst_18 {dimension_numbers = #tpu.dot_dimension_numbers<[1], [0], [0], [1], [0, 0, 1, 1], [], []>} : vector<192x28xbf16>, vector<28x144xbf16>, vector<192x144xf32> -> vector<192x144xf32>
    %36 = arith.addf %28, %35 : vector<192x144xf32>
    %37 = vector.extract_strided_slice %3 {offsets = [0, 0, 4, 0], sizes = [8, 1, 24, 28], strides = [1, 1, 1, 1]} : vector<8x1x28x28xf32> to vector<8x1x24x28xf32>
    %38 = vector.shape_cast %37 : vector<8x1x24x28xf32> to vector<8x24x28xf32>
    %39 = vector.shape_cast %38 : vector<8x24x28xf32> to vector<192x28xf32>
    %40 = arith.truncf %39 : vector<192x28xf32> to vector<192x28xbf16>
    %c0_19 = arith.constant 0 : index
    %c4 = arith.constant 4 : index
    %c0_20 = arith.constant 0 : index
    %c0_21 = arith.constant 0 : index
    %41 = vector.load %arg2[%c0_19, %c4, %c0_20, %c0_21] : memref<1x5x28x144xbf16, #tpu.memory_space<vmem>>, vector<1x1x28x144xbf16>
    %42 = vector.shape_cast %41 : vector<1x1x28x144xbf16> to vector<28x144xbf16>
    %cst_22 = arith.constant dense<0.000000e+00> : vector<192x144xf32>
    %43 = tpu.matmul %40, %42, %cst_22 {dimension_numbers = #tpu.dot_dimension_numbers<[1], [0], [0], [1], [0, 0, 1, 1], [], []>} : vector<192x28xbf16>, vector<28x144xbf16>, vector<192x144xf32> -> vector<192x144xf32>
    %44 = arith.addf %36, %43 : vector<192x144xf32>
    %c0_23 = arith.constant 0 : index
    %c0_24 = arith.constant 0 : index
    %45 = vector.load %arg3[%c0_23, %c0_24] : memref<1x144xf32, #tpu.memory_space<vmem>>, vector<1x144xf32>
    %46 = vector.broadcast %45 : vector<1x144xf32> to vector<192x144xf32>
    %47 = arith.addf %44, %46 : vector<192x144xf32>
    %cst_25 = arith.constant 0.000000e+00 : f32
    %48 = vector.broadcast %cst_25 : f32 to vector<192x144xf32>
    %49 = arith.maximumf %47, %48 : vector<192x144xf32>
    %50 = arith.truncf %49 : vector<192x144xf32> to vector<192x144xbf16>
    %c0_26 = arith.constant 0 : index
    %c0_27 = arith.constant 0 : index
    %c0_28 = arith.constant 0 : index
    %51 = vector.load %arg4[%c0_26, %c0_27, %c0_28] : memref<2x144x72xbf16, #tpu.memory_space<vmem>>, vector<1x144x72xbf16>
    %52 = vector.shape_cast %51 : vector<1x144x72xbf16> to vector<144x72xbf16>
    %cst_29 = arith.constant dense<0.000000e+00> : vector<192x72xf32>
    %53 = tpu.matmul %50, %52, %cst_29 {dimension_numbers = #tpu.dot_dimension_numbers<[1], [0], [0], [1], [0, 0, 1, 1], [], []>} : vector<192x144xbf16>, vector<144x72xbf16>, vector<192x72xf32> -> vector<192x72xf32>
    %c1_30 = arith.constant 1 : index
    %c0_31 = arith.constant 0 : index
    %c0_32 = arith.constant 0 : index
    %54 = vector.load %arg4[%c1_30, %c0_31, %c0_32] : memref<2x144x72xbf16, #tpu.memory_space<vmem>>, vector<1x144x72xbf16>
    %55 = vector.shape_cast %54 : vector<1x144x72xbf16> to vector<144x72xbf16>
    %cst_33 = arith.constant dense<0.000000e+00> : vector<192x72xf32>
    %56 = tpu.matmul %50, %55, %cst_33 {dimension_numbers = #tpu.dot_dimension_numbers<[1], [0], [0], [1], [0, 0, 1, 1], [], []>} : vector<192x144xbf16>, vector<144x72xbf16>, vector<192x72xf32> -> vector<192x72xf32>
    %57 = arith.maximumf %53, %56 : vector<192x72xf32>
    %58 = arith.truncf %57 : vector<192x72xf32> to vector<192x72xbf16>
    %cst_34 = arith.constant 0.000000e+00 : f32
    %59 = vector.broadcast %cst_34 : f32 to vector<64x128xf32>
    %c0_35 = arith.constant 0 : index
    %c0_36 = arith.constant 0 : index
    %c0_37 = arith.constant 0 : index
    %c0_38 = arith.constant 0 : index
    %60 = vector.load %arg5[%c0_35, %c0_36, %c0_37, %c0_38] : memref<5x2x64x192xbf16, #tpu.memory_space<vmem>>, vector<1x1x64x192xbf16>
    %61 = vector.shape_cast %60 : vector<1x1x64x192xbf16> to vector<64x192xbf16>
    %cst_39 = arith.constant dense<0.000000e+00> : vector<64x72xf32>
    %62 = tpu.matmul %61, %58, %cst_39 {dimension_numbers = #tpu.dot_dimension_numbers<[1], [0], [0], [1], [0, 0, 1, 1], [], []>} : vector<64x192xbf16>, vector<192x72xbf16>, vector<64x72xf32> -> vector<64x72xf32>
    %c0_40 = arith.constant 0 : index
    %c1_41 = arith.constant 1 : index
    %c0_42 = arith.constant 0 : index
    %c0_43 = arith.constant 0 : index
    %63 = vector.load %arg5[%c0_40, %c1_41, %c0_42, %c0_43] : memref<5x2x64x192xbf16, #tpu.memory_space<vmem>>, vector<1x1x64x192xbf16>
    %64 = vector.shape_cast %63 : vector<1x1x64x192xbf16> to vector<64x192xbf16>
    %cst_44 = arith.constant dense<0.000000e+00> : vector<64x72xf32>
    %65 = tpu.matmul %64, %58, %cst_44 {dimension_numbers = #tpu.dot_dimension_numbers<[1], [0], [0], [1], [0, 0, 1, 1], [], []>} : vector<64x192xbf16>, vector<192x72xbf16>, vector<64x72xf32> -> vector<64x72xf32>
    %66 = arith.maximumf %62, %65 : vector<64x72xf32>
    %67 = arith.truncf %66 : vector<64x72xf32> to vector<64x72xbf16>
    %c0_45 = arith.constant 0 : index
    %c0_46 = arith.constant 0 : index
    %c0_47 = arith.constant 0 : index
    %68 = vector.load %arg6[%c0_45, %c0_46, %c0_47] : memref<5x72x128xbf16, #tpu.memory_space<vmem>>, vector<1x72x128xbf16>
    %69 = vector.shape_cast %68 : vector<1x72x128xbf16> to vector<72x128xbf16>
    %cst_48 = arith.constant dense<0.000000e+00> : vector<64x128xf32>
    %70 = tpu.matmul %67, %69, %cst_48 {dimension_numbers = #tpu.dot_dimension_numbers<[1], [0], [0], [1], [0, 0, 1, 1], [], []>} : vector<64x72xbf16>, vector<72x128xbf16>, vector<64x128xf32> -> vector<64x128xf32>
    %71 = arith.addf %59, %70 : vector<64x128xf32>
    %c1_49 = arith.constant 1 : index
    %c0_50 = arith.constant 0 : index
    %c0_51 = arith.constant 0 : index
    %c0_52 = arith.constant 0 : index
    %72 = vector.load %arg5[%c1_49, %c0_50, %c0_51, %c0_52] : memref<5x2x64x192xbf16, #tpu.memory_space<vmem>>, vector<1x1x64x192xbf16>
    %73 = vector.shape_cast %72 : vector<1x1x64x192xbf16> to vector<64x192xbf16>
    %cst_53 = arith.constant dense<0.000000e+00> : vector<64x72xf32>
    %74 = tpu.matmul %73, %58, %cst_53 {dimension_numbers = #tpu.dot_dimension_numbers<[1], [0], [0], [1], [0, 0, 1, 1], [], []>} : vector<64x192xbf16>, vector<192x72xbf16>, vector<64x72xf32> -> vector<64x72xf32>
    %c1_54 = arith.constant 1 : index
    %c1_55 = arith.constant 1 : index
    %c0_56 = arith.constant 0 : index
    %c0_57 = arith.constant 0 : index
    %75 = vector.load %arg5[%c1_54, %c1_55, %c0_56, %c0_57] : memref<5x2x64x192xbf16, #tpu.memory_space<vmem>>, vector<1x1x64x192xbf16>
    %76 = vector.shape_cast %75 : vector<1x1x64x192xbf16> to vector<64x192xbf16>
    %cst_58 = arith.constant dense<0.000000e+00> : vector<64x72xf32>
    %77 = tpu.matmul %76, %58, %cst_58 {dimension_numbers = #tpu.dot_dimension_numbers<[1], [0], [0], [1], [0, 0, 1, 1], [], []>} : vector<64x192xbf16>, vector<192x72xbf16>, vector<64x72xf32> -> vector<64x72xf32>
    %78 = arith.maximumf %74, %77 : vector<64x72xf32>
    %79 = arith.truncf %78 : vector<64x72xf32> to vector<64x72xbf16>
    %c1_59 = arith.constant 1 : index
    %c0_60 = arith.constant 0 : index
    %c0_61 = arith.constant 0 : index
    %80 = vector.load %arg6[%c1_59, %c0_60, %c0_61] : memref<5x72x128xbf16, #tpu.memory_space<vmem>>, vector<1x72x128xbf16>
    %81 = vector.shape_cast %80 : vector<1x72x128xbf16> to vector<72x128xbf16>
    %cst_62 = arith.constant dense<0.000000e+00> : vector<64x128xf32>
    %82 = tpu.matmul %79, %81, %cst_62 {dimension_numbers = #tpu.dot_dimension_numbers<[1], [0], [0], [1], [0, 0, 1, 1], [], []>} : vector<64x72xbf16>, vector<72x128xbf16>, vector<64x128xf32> -> vector<64x128xf32>
    %83 = arith.addf %71, %82 : vector<64x128xf32>
    %c2_63 = arith.constant 2 : index
    %c0_64 = arith.constant 0 : index
    %c0_65 = arith.constant 0 : index
    %c0_66 = arith.constant 0 : index
    %84 = vector.load %arg5[%c2_63, %c0_64, %c0_65, %c0_66] : memref<5x2x64x192xbf16, #tpu.memory_space<vmem>>, vector<1x1x64x192xbf16>
    %85 = vector.shape_cast %84 : vector<1x1x64x192xbf16> to vector<64x192xbf16>
    %cst_67 = arith.constant dense<0.000000e+00> : vector<64x72xf32>
    %86 = tpu.matmul %85, %58, %cst_67 {dimension_numbers = #tpu.dot_dimension_numbers<[1], [0], [0], [1], [0, 0, 1, 1], [], []>} : vector<64x192xbf16>, vector<192x72xbf16>, vector<64x72xf32> -> vector<64x72xf32>
    %c2_68 = arith.constant 2 : index
    %c1_69 = arith.constant 1 : index
    %c0_70 = arith.constant 0 : index
    %c0_71 = arith.constant 0 : index
    %87 = vector.load %arg5[%c2_68, %c1_69, %c0_70, %c0_71] : memref<5x2x64x192xbf16, #tpu.memory_space<vmem>>, vector<1x1x64x192xbf16>
    %88 = vector.shape_cast %87 : vector<1x1x64x192xbf16> to vector<64x192xbf16>
    %cst_72 = arith.constant dense<0.000000e+00> : vector<64x72xf32>
    %89 = tpu.matmul %88, %58, %cst_72 {dimension_numbers = #tpu.dot_dimension_numbers<[1], [0], [0], [1], [0, 0, 1, 1], [], []>} : vector<64x192xbf16>, vector<192x72xbf16>, vector<64x72xf32> -> vector<64x72xf32>
    %90 = arith.maximumf %86, %89 : vector<64x72xf32>
    %91 = arith.truncf %90 : vector<64x72xf32> to vector<64x72xbf16>
    %c2_73 = arith.constant 2 : index
    %c0_74 = arith.constant 0 : index
    %c0_75 = arith.constant 0 : index
    %92 = vector.load %arg6[%c2_73, %c0_74, %c0_75] : memref<5x72x128xbf16, #tpu.memory_space<vmem>>, vector<1x72x128xbf16>
    %93 = vector.shape_cast %92 : vector<1x72x128xbf16> to vector<72x128xbf16>
    %cst_76 = arith.constant dense<0.000000e+00> : vector<64x128xf32>
    %94 = tpu.matmul %91, %93, %cst_76 {dimension_numbers = #tpu.dot_dimension_numbers<[1], [0], [0], [1], [0, 0, 1, 1], [], []>} : vector<64x72xbf16>, vector<72x128xbf16>, vector<64x128xf32> -> vector<64x128xf32>
    %95 = arith.addf %83, %94 : vector<64x128xf32>
    %c3_77 = arith.constant 3 : index
    %c0_78 = arith.constant 0 : index
    %c0_79 = arith.constant 0 : index
    %c0_80 = arith.constant 0 : index
    %96 = vector.load %arg5[%c3_77, %c0_78, %c0_79, %c0_80] : memref<5x2x64x192xbf16, #tpu.memory_space<vmem>>, vector<1x1x64x192xbf16>
    %97 = vector.shape_cast %96 : vector<1x1x64x192xbf16> to vector<64x192xbf16>
    %cst_81 = arith.constant dense<0.000000e+00> : vector<64x72xf32>
    %98 = tpu.matmul %97, %58, %cst_81 {dimension_numbers = #tpu.dot_dimension_numbers<[1], [0], [0], [1], [0, 0, 1, 1], [], []>} : vector<64x192xbf16>, vector<192x72xbf16>, vector<64x72xf32> -> vector<64x72xf32>
    %c3_82 = arith.constant 3 : index
    %c1_83 = arith.constant 1 : index
    %c0_84 = arith.constant 0 : index
    %c0_85 = arith.constant 0 : index
    %99 = vector.load %arg5[%c3_82, %c1_83, %c0_84, %c0_85] : memref<5x2x64x192xbf16, #tpu.memory_space<vmem>>, vector<1x1x64x192xbf16>
    %100 = vector.shape_cast %99 : vector<1x1x64x192xbf16> to vector<64x192xbf16>
    %cst_86 = arith.constant dense<0.000000e+00> : vector<64x72xf32>
    %101 = tpu.matmul %100, %58, %cst_86 {dimension_numbers = #tpu.dot_dimension_numbers<[1], [0], [0], [1], [0, 0, 1, 1], [], []>} : vector<64x192xbf16>, vector<192x72xbf16>, vector<64x72xf32> -> vector<64x72xf32>
    %102 = arith.maximumf %98, %101 : vector<64x72xf32>
    %103 = arith.truncf %102 : vector<64x72xf32> to vector<64x72xbf16>
    %c3_87 = arith.constant 3 : index
    %c0_88 = arith.constant 0 : index
    %c0_89 = arith.constant 0 : index
    %104 = vector.load %arg6[%c3_87, %c0_88, %c0_89] : memref<5x72x128xbf16, #tpu.memory_space<vmem>>, vector<1x72x128xbf16>
    %105 = vector.shape_cast %104 : vector<1x72x128xbf16> to vector<72x128xbf16>
    %cst_90 = arith.constant dense<0.000000e+00> : vector<64x128xf32>
    %106 = tpu.matmul %103, %105, %cst_90 {dimension_numbers = #tpu.dot_dimension_numbers<[1], [0], [0], [1], [0, 0, 1, 1], [], []>} : vector<64x72xbf16>, vector<72x128xbf16>, vector<64x128xf32> -> vector<64x128xf32>
    %107 = arith.addf %95, %106 : vector<64x128xf32>
    %c4_91 = arith.constant 4 : index
    %c0_92 = arith.constant 0 : index
    %c0_93 = arith.constant 0 : index
    %c0_94 = arith.constant 0 : index
    %108 = vector.load %arg5[%c4_91, %c0_92, %c0_93, %c0_94] : memref<5x2x64x192xbf16, #tpu.memory_space<vmem>>, vector<1x1x64x192xbf16>
    %109 = vector.shape_cast %108 : vector<1x1x64x192xbf16> to vector<64x192xbf16>
    %cst_95 = arith.constant dense<0.000000e+00> : vector<64x72xf32>
    %110 = tpu.matmul %109, %58, %cst_95 {dimension_numbers = #tpu.dot_dimension_numbers<[1], [0], [0], [1], [0, 0, 1, 1], [], []>} : vector<64x192xbf16>, vector<192x72xbf16>, vector<64x72xf32> -> vector<64x72xf32>
    %c4_96 = arith.constant 4 : index
    %c1_97 = arith.constant 1 : index
    %c0_98 = arith.constant 0 : index
    %c0_99 = arith.constant 0 : index
    %111 = vector.load %arg5[%c4_96, %c1_97, %c0_98, %c0_99] : memref<5x2x64x192xbf16, #tpu.memory_space<vmem>>, vector<1x1x64x192xbf16>
    %112 = vector.shape_cast %111 : vector<1x1x64x192xbf16> to vector<64x192xbf16>
    %cst_100 = arith.constant dense<0.000000e+00> : vector<64x72xf32>
    %113 = tpu.matmul %112, %58, %cst_100 {dimension_numbers = #tpu.dot_dimension_numbers<[1], [0], [0], [1], [0, 0, 1, 1], [], []>} : vector<64x192xbf16>, vector<192x72xbf16>, vector<64x72xf32> -> vector<64x72xf32>
    %114 = arith.maximumf %110, %113 : vector<64x72xf32>
    %115 = arith.truncf %114 : vector<64x72xf32> to vector<64x72xbf16>
    %c4_101 = arith.constant 4 : index
    %c0_102 = arith.constant 0 : index
    %c0_103 = arith.constant 0 : index
    %116 = vector.load %arg6[%c4_101, %c0_102, %c0_103] : memref<5x72x128xbf16, #tpu.memory_space<vmem>>, vector<1x72x128xbf16>
    %117 = vector.shape_cast %116 : vector<1x72x128xbf16> to vector<72x128xbf16>
    %cst_104 = arith.constant dense<0.000000e+00> : vector<64x128xf32>
    %118 = tpu.matmul %115, %117, %cst_104 {dimension_numbers = #tpu.dot_dimension_numbers<[1], [0], [0], [1], [0, 0, 1, 1], [], []>} : vector<64x72xbf16>, vector<72x128xbf16>, vector<64x128xf32> -> vector<64x128xf32>
    %119 = arith.addf %107, %118 : vector<64x128xf32>
    %c0_105 = arith.constant 0 : index
    %c0_106 = arith.constant 0 : index
    %120 = vector.load %arg7[%c0_105, %c0_106] : memref<1x128xf32, #tpu.memory_space<vmem>>, vector<1x128xf32>
    %121 = vector.broadcast %120 : vector<1x128xf32> to vector<64x128xf32>
    %122 = arith.addf %119, %121 : vector<64x128xf32>
    %cst_107 = arith.constant 0.000000e+00 : f32
    %123 = vector.broadcast %cst_107 : f32 to vector<64x128xf32>
    %124 = arith.maximumf %122, %123 : vector<64x128xf32>
    %125 = arith.truncf %124 : vector<64x128xf32> to vector<64x128xbf16>
    %c0_108 = arith.constant 0 : index
    %c0_109 = arith.constant 0 : index
    %c0_110 = arith.constant 0 : index
    %126 = vector.load %arg8[%c0_108, %c0_109, %c0_110] : memref<2x128x64xbf16, #tpu.memory_space<vmem>>, vector<1x128x64xbf16>
    %127 = vector.shape_cast %126 : vector<1x128x64xbf16> to vector<128x64xbf16>
    %cst_111 = arith.constant dense<0.000000e+00> : vector<64x64xf32>
    %128 = tpu.matmul %125, %127, %cst_111 {dimension_numbers = #tpu.dot_dimension_numbers<[1], [0], [0], [1], [0, 0, 1, 1], [], []>} : vector<64x128xbf16>, vector<128x64xbf16>, vector<64x64xf32> -> vector<64x64xf32>
    %c1_112 = arith.constant 1 : index
    %c0_113 = arith.constant 0 : index
    %c0_114 = arith.constant 0 : index
    %129 = vector.load %arg8[%c1_112, %c0_113, %c0_114] : memref<2x128x64xbf16, #tpu.memory_space<vmem>>, vector<1x128x64xbf16>
    %130 = vector.shape_cast %129 : vector<1x128x64xbf16> to vector<128x64xbf16>
    %cst_115 = arith.constant dense<0.000000e+00> : vector<64x64xf32>
    %131 = tpu.matmul %125, %130, %cst_115 {dimension_numbers = #tpu.dot_dimension_numbers<[1], [0], [0], [1], [0, 0, 1, 1], [], []>} : vector<64x128xbf16>, vector<128x64xbf16>, vector<64x64xf32> -> vector<64x64xf32>
    %132 = arith.maximumf %128, %131 : vector<64x64xf32>
    %133 = arith.truncf %132 : vector<64x64xf32> to vector<64x64xbf16>
    %c0_116 = arith.constant 0 : index
    %c0_117 = arith.constant 0 : index
    %c0_118 = arith.constant 0 : index
    %c0_119 = arith.constant 0 : index
    %134 = vector.load %arg9[%c0_116, %c0_117, %c0_118, %c0_119] : memref<4x2x8x64xbf16, #tpu.memory_space<vmem>>, vector<1x1x8x64xbf16>
    %135 = vector.shape_cast %134 : vector<1x1x8x64xbf16> to vector<8x64xbf16>
    %cst_120 = arith.constant dense<0.000000e+00> : vector<8x64xf32>
    %136 = tpu.matmul %135, %133, %cst_120 {dimension_numbers = #tpu.dot_dimension_numbers<[1], [0], [0], [1], [0, 0, 1, 1], [], []>} : vector<8x64xbf16>, vector<64x64xbf16>, vector<8x64xf32> -> vector<8x64xf32>
    %c0_121 = arith.constant 0 : index
    %c1_122 = arith.constant 1 : index
    %c0_123 = arith.constant 0 : index
    %c0_124 = arith.constant 0 : index
    %137 = vector.load %arg9[%c0_121, %c1_122, %c0_123, %c0_124] : memref<4x2x8x64xbf16, #tpu.memory_space<vmem>>, vector<1x1x8x64xbf16>
    %138 = vector.shape_cast %137 : vector<1x1x8x64xbf16> to vector<8x64xbf16>
    %cst_125 = arith.constant dense<0.000000e+00> : vector<8x64xf32>
    %139 = tpu.matmul %138, %133, %cst_125 {dimension_numbers = #tpu.dot_dimension_numbers<[1], [0], [0], [1], [0, 0, 1, 1], [], []>} : vector<8x64xbf16>, vector<64x64xbf16>, vector<8x64xf32> -> vector<8x64xf32>
    %140 = arith.maximumf %136, %139 : vector<8x64xf32>
    %141 = arith.index_cast %1 : i32 to index
    %c0_126 = arith.constant 0 : index
    %142 = vector.load %arg17[%141, %c0_126] : memref<8x256xf32, #tpu.memory_space<vmem>>, vector<8x64xf32>
    tpu.vector_store %arg17[%141, %c0_126], %140 {strides = array<i32>} : memref<8x256xf32, #tpu.memory_space<vmem>>, vector<8x64xf32>,
    %c1_127 = arith.constant 1 : index
    %c0_128 = arith.constant 0 : index
    %c0_129 = arith.constant 0 : index
    %c0_130 = arith.constant 0 : index
    %143 = vector.load %arg9[%c1_127, %c0_128, %c0_129, %c0_130] : memref<4x2x8x64xbf16, #tpu.memory_space<vmem>>, vector<1x1x8x64xbf16>
    %144 = vector.shape_cast %143 : vector<1x1x8x64xbf16> to vector<8x64xbf16>
    %cst_131 = arith.constant dense<0.000000e+00> : vector<8x64xf32>
    %145 = tpu.matmul %144, %133, %cst_131 {dimension_numbers = #tpu.dot_dimension_numbers<[1], [0], [0], [1], [0, 0, 1, 1], [], []>} : vector<8x64xbf16>, vector<64x64xbf16>, vector<8x64xf32> -> vector<8x64xf32>
    %c1_132 = arith.constant 1 : index
    %c1_133 = arith.constant 1 : index
    %c0_134 = arith.constant 0 : index
    %c0_135 = arith.constant 0 : index
    %146 = vector.load %arg9[%c1_132, %c1_133, %c0_134, %c0_135] : memref<4x2x8x64xbf16, #tpu.memory_space<vmem>>, vector<1x1x8x64xbf16>
    %147 = vector.shape_cast %146 : vector<1x1x8x64xbf16> to vector<8x64xbf16>
    %cst_136 = arith.constant dense<0.000000e+00> : vector<8x64xf32>
    %148 = tpu.matmul %147, %133, %cst_136 {dimension_numbers = #tpu.dot_dimension_numbers<[1], [0], [0], [1], [0, 0, 1, 1], [], []>} : vector<8x64xbf16>, vector<64x64xbf16>, vector<8x64xf32> -> vector<8x64xf32>
    %149 = arith.maximumf %145, %148 : vector<8x64xf32>
    %150 = arith.index_cast %1 : i32 to index
    %c64 = arith.constant 64 : index
    %151 = vector.load %arg17[%150, %c64] : memref<8x256xf32, #tpu.memory_space<vmem>>, vector<8x64xf32>
    tpu.vector_store %arg17[%150, %c64], %149 {strides = array<i32>} : memref<8x256xf32, #tpu.memory_space<vmem>>, vector<8x64xf32>,
    %c2_137 = arith.constant 2 : index
    %c0_138 = arith.constant 0 : index
    %c0_139 = arith.constant 0 : index
    %c0_140 = arith.constant 0 : index
    %152 = vector.load %arg9[%c2_137, %c0_138, %c0_139, %c0_140] : memref<4x2x8x64xbf16, #tpu.memory_space<vmem>>, vector<1x1x8x64xbf16>
    %153 = vector.shape_cast %152 : vector<1x1x8x64xbf16> to vector<8x64xbf16>
    %cst_141 = arith.constant dense<0.000000e+00> : vector<8x64xf32>
    %154 = tpu.matmul %153, %133, %cst_141 {dimension_numbers = #tpu.dot_dimension_numbers<[1], [0], [0], [1], [0, 0, 1, 1], [], []>} : vector<8x64xbf16>, vector<64x64xbf16>, vector<8x64xf32> -> vector<8x64xf32>
    %c2_142 = arith.constant 2 : index
    %c1_143 = arith.constant 1 : index
    %c0_144 = arith.constant 0 : index
    %c0_145 = arith.constant 0 : index
    %155 = vector.load %arg9[%c2_142, %c1_143, %c0_144, %c0_145] : memref<4x2x8x64xbf16, #tpu.memory_space<vmem>>, vector<1x1x8x64xbf16>
    %156 = vector.shape_cast %155 : vector<1x1x8x64xbf16> to vector<8x64xbf16>
    %cst_146 = arith.constant dense<0.000000e+00> : vector<8x64xf32>
    %157 = tpu.matmul %156, %133, %cst_146 {dimension_numbers = #tpu.dot_dimension_numbers<[1], [0], [0], [1], [0, 0, 1, 1], [], []>} : vector<8x64xbf16>, vector<64x64xbf16>, vector<8x64xf32> -> vector<8x64xf32>
    %158 = arith.maximumf %154, %157 : vector<8x64xf32>
    %159 = arith.index_cast %1 : i32 to index
    %c128 = arith.constant 128 : index
    %160 = vector.load %arg17[%159, %c128] : memref<8x256xf32, #tpu.memory_space<vmem>>, vector<8x64xf32>
    tpu.vector_store %arg17[%159, %c128], %158 {strides = array<i32>} : memref<8x256xf32, #tpu.memory_space<vmem>>, vector<8x64xf32>,
    %c3_147 = arith.constant 3 : index
    %c0_148 = arith.constant 0 : index
    %c0_149 = arith.constant 0 : index
    %c0_150 = arith.constant 0 : index
    %161 = vector.load %arg9[%c3_147, %c0_148, %c0_149, %c0_150] : memref<4x2x8x64xbf16, #tpu.memory_space<vmem>>, vector<1x1x8x64xbf16>
    %162 = vector.shape_cast %161 : vector<1x1x8x64xbf16> to vector<8x64xbf16>
    %cst_151 = arith.constant dense<0.000000e+00> : vector<8x64xf32>
    %163 = tpu.matmul %162, %133, %cst_151 {dimension_numbers = #tpu.dot_dimension_numbers<[1], [0], [0], [1], [0, 0, 1, 1], [], []>} : vector<8x64xbf16>, vector<64x64xbf16>, vector<8x64xf32> -> vector<8x64xf32>
    %c3_152 = arith.constant 3 : index
    %c1_153 = arith.constant 1 : index
    %c0_154 = arith.constant 0 : index
    %c0_155 = arith.constant 0 : index
    %164 = vector.load %arg9[%c3_152, %c1_153, %c0_154, %c0_155] : memref<4x2x8x64xbf16, #tpu.memory_space<vmem>>, vector<1x1x8x64xbf16>
    %165 = vector.shape_cast %164 : vector<1x1x8x64xbf16> to vector<8x64xbf16>
    %cst_156 = arith.constant dense<0.000000e+00> : vector<8x64xf32>
    %166 = tpu.matmul %165, %133, %cst_156 {dimension_numbers = #tpu.dot_dimension_numbers<[1], [0], [0], [1], [0, 0, 1, 1], [], []>} : vector<8x64xbf16>, vector<64x64xbf16>, vector<8x64xf32> -> vector<8x64xf32>
    %167 = arith.maximumf %163, %166 : vector<8x64xf32>
    %168 = arith.index_cast %1 : i32 to index
    %c192 = arith.constant 192 : index
    %169 = vector.load %arg17[%168, %c192] : memref<8x256xf32, #tpu.memory_space<vmem>>, vector<8x64xf32>
    tpu.vector_store %arg17[%168, %c192], %167 {strides = array<i32>} : memref<8x256xf32, #tpu.memory_space<vmem>>, vector<8x64xf32>,
    %c1_i32 = arith.constant 1 : i32
    %c0_157 = arith.constant 0 : index
    %c0_158 = arith.constant 0 : index
    %170 = vector.load %arg17[%c0_157, %c0_158] : memref<8x256xf32, #tpu.memory_space<vmem>>, vector<8x256xf32>
    %171 = arith.truncf %170 : vector<8x256xf32> to vector<8x256xbf16>
    %c0_159 = arith.constant 0 : index
    %c0_160 = arith.constant 0 : index
    %172 = vector.load %arg10[%c0_159, %c0_160] : memref<256x120xbf16, #tpu.memory_space<vmem>>, vector<256x120xbf16>
    %cst_161 = arith.constant dense<0.000000e+00> : vector<8x120xf32>
    %173 = tpu.matmul %171, %172, %cst_161 {dimension_numbers = #tpu.dot_dimension_numbers<[1], [0], [0], [1], [0, 0, 1, 1], [], []>} : vector<8x256xbf16>, vector<256x120xbf16>, vector<8x120xf32> -> vector<8x120xf32>
    %c0_162 = arith.constant 0 : index
    %c0_163 = arith.constant 0 : index
    %174 = vector.load %arg11[%c0_162, %c0_163] : memref<1x120xf32, #tpu.memory_space<vmem>>, vector<1x120xf32>
    %175 = vector.broadcast %174 : vector<1x120xf32> to vector<8x120xf32>
    %176 = arith.addf %173, %175 : vector<8x120xf32>
    %cst_164 = arith.constant 0.000000e+00 : f32
    %177 = vector.broadcast %cst_164 : f32 to vector<8x120xf32>
    %178 = arith.maximumf %176, %177 : vector<8x120xf32>
    %179 = arith.truncf %178 : vector<8x120xf32> to vector<8x120xbf16>
    %c0_165 = arith.constant 0 : index
    %c0_166 = arith.constant 0 : index
    %180 = vector.load %arg12[%c0_165, %c0_166] : memref<120x84xbf16, #tpu.memory_space<vmem>>, vector<120x84xbf16>
    %cst_167 = arith.constant dense<0.000000e+00> : vector<8x84xf32>
    %181 = tpu.matmul %179, %180, %cst_167 {dimension_numbers = #tpu.dot_dimension_numbers<[1], [0], [0], [1], [0, 0, 1, 1], [], []>} : vector<8x120xbf16>, vector<120x84xbf16>, vector<8x84xf32> -> vector<8x84xf32>
    %c0_168 = arith.constant 0 : index
    %c0_169 = arith.constant 0 : index
    %182 = vector.load %arg13[%c0_168, %c0_169] : memref<1x84xf32, #tpu.memory_space<vmem>>, vector<1x84xf32>
    %183 = vector.broadcast %182 : vector<1x84xf32> to vector<8x84xf32>
    %184 = arith.addf %181, %183 : vector<8x84xf32>
    %cst_170 = arith.constant 0.000000e+00 : f32
    %185 = vector.broadcast %cst_170 : f32 to vector<8x84xf32>
    %186 = arith.maximumf %184, %185 : vector<8x84xf32>
    %187 = arith.truncf %186 : vector<8x84xf32> to vector<8x84xbf16>
    %c0_171 = arith.constant 0 : index
    %c0_172 = arith.constant 0 : index
    %188 = vector.load %arg14[%c0_171, %c0_172] : memref<84x128xbf16, #tpu.memory_space<vmem>>, vector<84x128xbf16>
    %cst_173 = arith.constant dense<0.000000e+00> : vector<8x128xf32>
    %189 = tpu.matmul %187, %188, %cst_173 {dimension_numbers = #tpu.dot_dimension_numbers<[1], [0], [0], [1], [0, 0, 1, 1], [], []>} : vector<8x84xbf16>, vector<84x128xbf16>, vector<8x128xf32> -> vector<8x128xf32>
    %c0_174 = arith.constant 0 : index
    %c0_175 = arith.constant 0 : index
    %190 = vector.load %arg15[%c0_174, %c0_175] : memref<1x128xf32, #tpu.memory_space<vmem>>, vector<1x128xf32>
    %191 = vector.broadcast %190 : vector<1x128xf32> to vector<8x128xf32>
    %192 = arith.addf %189, %191 : vector<8x128xf32>
    %cst_176 = arith.constant dense<0xFF800000> : vector<8xf32>
    %193 = vector.multi_reduction <maximumf>, %192, %cst_176 [1] : vector<8x128xf32> to vector<8xf32>
    %194 = vector.shape_cast %193 : vector<8xf32> to vector<8x1xf32>
    %195 = vector.broadcast %194 : vector<8x1xf32> to vector<8x128xf32>
    %196 = arith.subf %192, %195 : vector<8x128xf32>
    %197 = math.exp %196 : vector<8x128xf32>
    %cst_177 = arith.constant dense<0.000000e+00> : vector<8xf32>
    %198 = vector.multi_reduction <add>, %197, %cst_177 [1] : vector<8x128xf32> to vector<8xf32>
    %199 = vector.shape_cast %198 : vector<8xf32> to vector<8x1xf32>
    %200 = math.log %199 : vector<8x1xf32>
    %201 = arith.addf %200, %194 : vector<8x1xf32>
    %202 = vector.broadcast %201 : vector<8x1xf32> to vector<8x128xf32>
    %203 = arith.subf %192, %202 : vector<8x128xf32>
    %c0_178 = arith.constant 0 : index
    %c0_179 = arith.constant 0 : index
    %204 = vector.load %arg16[%c0_178, %c0_179] : memref<8x128xf32, #tpu.memory_space<vmem>>, vector<8x128xf32>
    tpu.vector_store %arg16[%c0_178, %c0_179], %203 {strides = array<i32>} : memref<8x128xf32, #tpu.memory_space<vmem>>, vector<8x128xf32>,
    return
  }
  func.func @transform_0(%arg0: i32) -> (i32, i32, i32, i32) {
    %c0_i32 = arith.constant 0 : i32
    %c0_i32_0 = arith.constant 0 : i32
    %c0_i32_1 = arith.constant 0 : i32
    %c0_i32_2 = arith.constant 0 : i32
    return %arg0, %c0_i32, %c0_i32_0, %c0_i32_1 : i32, i32, i32, i32
  }
  func.func @transform_1(%arg0: i32) -> (i32, i32, i32, i32) {
    %c0_i32 = arith.constant 0 : i32
    %c0_i32_0 = arith.constant 0 : i32
    %c0_i32_1 = arith.constant 0 : i32
    %c0_i32_2 = arith.constant 0 : i32
    %c0_i32_3 = arith.constant 0 : i32
    return %c0_i32, %c0_i32_0, %c0_i32_1, %c0_i32_2 : i32, i32, i32, i32
  }
  func.func @transform_2(%arg0: i32) -> (i32, i32) {
    %c0_i32 = arith.constant 0 : i32
    %c0_i32_0 = arith.constant 0 : i32
    %c0_i32_1 = arith.constant 0 : i32
    return %c0_i32, %c0_i32_0 : i32, i32
  }
  func.func @transform_3(%arg0: i32) -> (i32, i32, i32) {
    %c0_i32 = arith.constant 0 : i32
    %c0_i32_0 = arith.constant 0 : i32
    %c0_i32_1 = arith.constant 0 : i32
    %c0_i32_2 = arith.constant 0 : i32
    return %c0_i32, %c0_i32_0, %c0_i32_1 : i32, i32, i32
  }
  func.func @transform_4(%arg0: i32) -> (i32, i32, i32, i32) {
    %c0_i32 = arith.constant 0 : i32
    %c0_i32_0 = arith.constant 0 : i32
    %c0_i32_1 = arith.constant 0 : i32
    %c0_i32_2 = arith.constant 0 : i32
    %c0_i32_3 = arith.constant 0 : i32
    return %c0_i32, %c0_i32_0, %c0_i32_1, %c0_i32_2 : i32, i32, i32, i32
  }
  func.func @transform_5(%arg0: i32) -> (i32, i32, i32) {
    %c0_i32 = arith.constant 0 : i32
    %c0_i32_0 = arith.constant 0 : i32
    %c0_i32_1 = arith.constant 0 : i32
    %c0_i32_2 = arith.constant 0 : i32
    return %c0_i32, %c0_i32_0, %c0_i32_1 : i32, i32, i32
  }
  func.func @transform_6(%arg0: i32) -> (i32, i32) {
    %c0_i32 = arith.constant 0 : i32
    %c0_i32_0 = arith.constant 0 : i32
    %c0_i32_1 = arith.constant 0 : i32
    return %c0_i32, %c0_i32_0 : i32, i32
  }
  func.func @transform_7(%arg0: i32) -> (i32, i32, i32) {
    %c0_i32 = arith.constant 0 : i32
    %c0_i32_0 = arith.constant 0 : i32
    %c0_i32_1 = arith.constant 0 : i32
    %c0_i32_2 = arith.constant 0 : i32
    return %c0_i32, %c0_i32_0, %c0_i32_1 : i32, i32, i32
  }
  func.func @transform_8(%arg0: i32) -> (i32, i32, i32, i32) {
    %c0_i32 = arith.constant 0 : i32
    %c0_i32_0 = arith.constant 0 : i32
    %c0_i32_1 = arith.constant 0 : i32
    %c0_i32_2 = arith.constant 0 : i32
    %c0_i32_3 = arith.constant 0 : i32
    return %c0_i32, %c0_i32_0, %c0_i32_1, %c0_i32_2 : i32, i32, i32, i32
  }
  func.func @transform_9(%arg0: i32) -> (i32, i32) {
    %c0_i32 = arith.constant 0 : i32
    %c0_i32_0 = arith.constant 0 : i32
    %c0_i32_1 = arith.constant 0 : i32
    return %c0_i32, %c0_i32_0 : i32, i32
  }
  func.func @transform_10(%arg0: i32) -> (i32, i32) {
    %c0_i32 = arith.constant 0 : i32
    %c0_i32_0 = arith.constant 0 : i32
    %c0_i32_1 = arith.constant 0 : i32
    return %c0_i32, %c0_i32_0 : i32, i32
  }
  func.func @transform_11(%arg0: i32) -> (i32, i32) {
    %c0_i32 = arith.constant 0 : i32
    %c0_i32_0 = arith.constant 0 : i32
    %c0_i32_1 = arith.constant 0 : i32
    return %c0_i32, %c0_i32_0 : i32, i32
  }
  func.func @transform_12(%arg0: i32) -> (i32, i32) {
    %c0_i32 = arith.constant 0 : i32
    %c0_i32_0 = arith.constant 0 : i32
    %c0_i32_1 = arith.constant 0 : i32
    return %c0_i32, %c0_i32_0 : i32, i32
  }
  func.func @transform_13(%arg0: i32) -> (i32, i32) {
    %c0_i32 = arith.constant 0 : i32
    %c0_i32_0 = arith.constant 0 : i32
    %c0_i32_1 = arith.constant 0 : i32
    return %c0_i32, %c0_i32_0 : i32, i32
  }
  func.func @transform_14(%arg0: i32) -> (i32, i32) {
    %c0_i32 = arith.constant 0 : i32
    %c0_i32_0 = arith.constant 0 : i32
    %c0_i32_1 = arith.constant 0 : i32
    return %c0_i32, %c0_i32_0 : i32, i32
  }
  func.func @transform_15(%arg0: i32) -> (i32, i32) {
    %c0_i32 = arith.constant 0 : i32
    %c0_i32_0 = arith.constant 0 : i32
    return %arg0, %c0_i32 : i32, i32
  }
}

</mosaic_0001>

<bundles_post_ra>
// kernel: _forward_padded.1
= control target key start
LH: loop header
LB: loop body
LE: loop exit
PB: predicated region body
PF: predicated region fallthrough
CT: control target
= control target key end

     0   :  { %20 = vsyncpa [#allocation4], 0  ;;  %s8895_s0 = inlined_call_operand.vmem [shape: f32[8,1,28,28], index: 0, kind: input, shape index: {}]   ;;  %s8896_s1 = inlined_call_operand.vmem [shape: bf16[1,5,28,144], index: 1, kind: input, shape index: {}]   ;;  %s8897_s2 = inlined_call_operand.vmem [shape: f32[1,144], index: 2, kind: input, shape index: {}]   ;;  %s8898_s3 = inlined_call_operand.hbm [shape: bf16[2,144,72], index: 3, kind: input, shape index: {}]   ;;  %s8899_s4 = inlined_call_operand.vmem [shape: bf16[5,2,64,192], index: 4, kind: input, shape index: {}]   ;;  %s8900_s5 = inlined_call_operand.vmem [shape: bf16[5,72,128], index: 5, kind: input, shape index: {}]   ;;  %s8901_s6 = inlined_call_operand.vmem [shape: f32[1,128], index: 6, kind: input, shape index: {}]   ;;  %s8902_s7 = inlined_call_operand.vmem [shape: bf16[2,128,64], index: 7, kind: input, shape index: {}]   ;;  %s8903_s8 = inlined_call_operand.hbm [shape: bf16[4,2,8,64], index: 8, kind: input, shape index: {}]   ;;  %s8904_s9 = inlined_call_operand.vmem [shape: bf16[256,120], index: 9, kind: input, shape index: {}]   ;;  %s8905_s10 = inlined_call_operand.vmem [shape: f32[1,120], index: 10, kind: input, shape index: {}]   ;;  %s8906_s11 = inlined_call_operand.vmem [shape: bf16[120,84], index: 11, kind: input, shape index: {}]   ;;  %s8907_s12 = inlined_call_operand.vmem [shape: f32[1,84], index: 12, kind: input, shape index: {}]   ;;  %s8908_s13 = inlined_call_operand.hbm [shape: bf16[84,128], index: 13, kind: input, shape index: {}]   ;;  %s8909_s14 = inlined_call_operand.vmem [shape: f32[1,128], index: 14, kind: input, shape index: {}]   ;;  %s8910_s15 = inlined_call_operand.vmem [shape: f32[8,128], index: 15, kind: output, shape index: {}]  }
   0x1   :  { %21 = vsyncpa [#allocation6], 0  ;;  %s6847_s18 = smov [#allocation5]   ;;  %s6848_s20 = smov [#allocation3]  }
   0x2   :  { %s53_s19 = sshll.u32 %s6847_s18, 4  ;;  %s33_s21 = sshll.u32 %s6848_s20, 4  ;;  %s54_s19 = int_to_ptr.vmem [resolvable:$true] %s53_s19  ;;  %s6935_s21 = int_to_ptr.vmem [resolvable:$true] %s33_s21 }
   0x3   :  { %s6777_s24 = scalar_lea.hbm %s8903_s8, 512 }
   0x4   :  { %p6778_p0 = scmp.ne.s32.totalorder %s8903_s8, %s6777_s24  ;;  %p6781_p1 = scmp.lt.u32.totalorder %s6777_s24, %s8903_s8 }
   0x6   :  { %p6783_p2 = pnand %p6781_p1, %p6778_p0 }
   0x8   :  { %6786 = shalt.err (!%p6783_p2)
}
   0x9   :  { %s6787_s29 = scalar_lea.vmem %s54_s19, 512  ;;  %p6792_p4 = scmp.lt.s32.totalorder %s54_s19, %s54_s19 }
   0xa   :  { %p6788_p3 = scmp.ne.s32.totalorder %s54_s19, %s6787_s29  ;;  %p6793_p5 = scmp.lt.s32.totalorder %s6787_s29, %s6787_s29 }
   0xc   :  { %p6794_p6 = por %p6793_p5, %p6792_p4 }
   0xe   :  { %p6795_p7 = pnand %p6794_p6, %p6788_p3 }
  0x10   :  { %6798 = shalt.err (!%p6795_p7)
}
  0x11   :  { %s6849_s30 = smov 64   ;;  %s6850_s16 = smov 4  }
  0x12   :  { %59 = dma.hbm_to_vmem [thread:$0]  %s8903_s8, 512, %s54_s19, [#allocation6], %s6849_s30, %s6849_s30, %s6850_s16  }
  0x13   :  { %s6799_s23 = scalar_lea.hbm %s8898_s3, 2304 }
  0x14   :  { %p6800_p8 = scmp.ne.s32.totalorder %s8898_s3, %s6799_s23  ;;  %p6803_p9 = scmp.lt.u32.totalorder %s6799_s23, %s8898_s3 }
  0x16   :  { %p6805_p10 = pnand %p6803_p9, %p6800_p8 }
  0x18   :  { %6808 = shalt.err (!%p6805_p10)
}
  0x19   :  { %s6809_s28 = scalar_lea.vmem %s6935_s21, 2304  ;;  %p6814_p12 = scmp.lt.s32.totalorder %s6935_s21, %s6935_s21 }
  0x1a   :  { %p6810_p11 = scmp.ne.s32.totalorder %s6935_s21, %s6809_s28  ;;  %p6815_p13 = scmp.lt.s32.totalorder %s6809_s28, %s6809_s28 }
  0x1c   :  { %p6816_p0 = por %p6815_p13, %p6814_p12 }
  0x1e   :  { %p6817_p1 = pnand %p6816_p0, %p6810_p11 }
  0x20   :  { %6820 = shalt.err (!%p6817_p1)
}
  0x21   :  { %39 = dma.hbm_to_vmem [thread:$0]  %s8898_s3, 2304, %s6935_s21, [#allocation4], %s6849_s30, %s6849_s30, %s6850_s16  }
  0x22   :  { %s6851_s29 = smov [#allocation7]   ;;  %s6821_s22 = scalar_lea.hbm %s8908_s13, 704 }
  0x23   :  { %s73_s17 = sshll.u32 %s6851_s29, 4  ;;  %p6822_p2 = scmp.ne.s32.totalorder %s8908_s13, %s6821_s22  ;;  %s74_s17 = int_to_ptr.vmem [resolvable:$true] %s73_s17 }
  0x24   :  { %p6825_p3 = scmp.lt.u32.totalorder %s6821_s22, %s8908_s13 }
  0x26   :  { %p6827_p4 = pnand %p6825_p3, %p6822_p2 }
  0x28   :  { %6830 = shalt.err (!%p6827_p4)
}
  0x29   :  { %s6831_s27 = scalar_lea.vmem %s74_s17, 704  ;;  %p6836_p6 = scmp.lt.s32.totalorder %s74_s17, %s74_s17 }
  0x2a   :  { %p6832_p5 = scmp.ne.s32.totalorder %s74_s17, %s6831_s27  ;;  %p6837_p7 = scmp.lt.s32.totalorder %s6831_s27, %s6831_s27 }
  0x2c   :  { %p6838_p8 = por %p6837_p7, %p6836_p6 }
  0x2e   :  { %p6839_p9 = pnand %p6838_p8, %p6832_p5 }
  0x30   :  { %6842 = shalt.err (!%p6839_p9)
}
  0x31   :  { %79 = dma.hbm_to_vmem [thread:$0]  %s8908_s13, 704, %s74_s17, [#allocation6], %s6849_s30, %s6849_s30, %s6850_s16  }
  0x32   :  { %6843 = dma.done.wait [#allocation4], 2304  }
  0x33   :  { %6844 = vsyncadd [#allocation4], 4294964992 }
  0x34   :  { %6845 = dma.done.wait [#allocation6], 1216  }
  0x35   :  { %6846 = vsyncadd [#allocation6], 4294966080  ;;  %v6852_v0 = vmov 0   ;;  %v6510_v1 = vld [vmem:[%s8896_s1 + $0x24] ss:$8 sps:$4 sm:$0xff]   ;;  %vm327_vm0 = vcmask 1045504  }
  0x36   :  { %366 = vmatprep.mubr.bf16.mxu0 %v6852_v0  ;;  %2017 = vmatprep.subr.bf16.mxu1 %v6852_v0  ;;  %v6512_v2 = vld [vmem:[%s8896_s1 + $0x20] ss:$8 sps:$4 sm:$0xff]   ;;  %v6513_v3 = vld [vmem:[%s8896_s1 + $0x34] ss:$8 sps:$4 sm:$0x3f]   ;;  %vm174_vm1 = vcmask 1046528  }
  0x37   :  { %334 = vmatprep.subr.bf16.mxu0 %v6510_v1  ;;  %v6515_v4 = vld [vmem:[%s8896_s1 + $0x30] ss:$8 sps:$4 sm:$0x3f]   ;;  %v7004_v5 = vld [vmem:[%s8895_s0] sm:$0xff]  ;;  %v7009_v6 = vld [vmem:[%s8895_s0 + $0x8] sm:$0xff]  ;;  %vm290_vm2 = vcmask 228352  }
  0x38   :  { %335 = vmatpush1.bf16.msra.mxu0 %v6512_v2  ;;  %v7014_v7 = vld [vmem:[%s8895_s0 + $0x10] sm:$0xff]  ;;  %v329_v8 = vsel %vm327_vm0, %v6515_v4, 0  ;;  %v175_v9 = vrot.slane %v7004_v5, 1  ;;  %v176_v10 = vrot.slane %v7009_v6, 1  ;;  %v6518_v12 = vld [vmem:[%s8896_s1 + $0x4] ss:$8 sps:$4 sm:$0xff]  }
  0x39   :  { %5372 = vmatprep.subr.msk.bf16.mxu0 %vm327_vm0, %v6513_v3  ;;  %v178_v11 = vrot.slane %v7014_v7, 1  ;;  %v7027_v13 = vld [vmem:[%s8895_s0 + $0x18] sm:$0xf]  ;;  %v7034_v16 = vld [vmem:[%s8895_s0 + $0x20] sm:$0xff]  ;;  %v7039_v17 = vld [vmem:[%s8895_s0 + $0x28] sm:$0xff]  ;;  %vm1058_vm3 = vcmask 1044480  }
  0x3a   :  { %v177_v14 = vsel %vm174_vm1, %v175_v9, %v176_v10  ;;  %v6516_v19 = vld [vmem:[%s8896_s1] ss:$8 sps:$4 sm:$0xff]   ;;  %v180_v20 = vrot.slane %v7027_v13, 1  ;;  %v182_v21 = vrot.slane %v7034_v16, 1  ;;  %v183_v22 = vrot.slane %v7039_v17, 1  ;;  %v7054_v25 = vld [vmem:[%s8895_s0 + $0x30] sm:$0xff] }
  0x3b   :  { %v179_v15 = vsel %vm174_vm1, %v176_v10, %v178_v11  ;;  %v7059_v26 = vld [vmem:[%s8895_s0 + $0x38] sm:$0xf]  ;;  %v6519_v27 = vld [vmem:[%s8896_s1 + $0x14] ss:$8 sps:$4 sm:$0x3f]   ;;  %v185_v30 = vrot.slane %v7054_v25, 1 }
  0x3c   :  { %337 = vmatpush1.bf16.msra.mxu0 %v329_v8  ;;  %v255_v18 = vpack.c.bf16 %v179_v15, %v177_v14  ;;  %v181_v23 = vsel %vm174_vm1, %v178_v11, %v180_v20  ;;  %v184_v24 = vsel %vm174_vm1, %v182_v21, %v183_v22  ;;  %v6521_v28 = vld [vmem:[%s8896_s1 + $0x10] ss:$8 sps:$4 sm:$0x3f]   ;;  %v187_v31 = vrot.slane %v7059_v26, 1  ;;  %v7075_v33 = vld [vmem:[%s8895_s0 + $0x40] sm:$0xff]  ;;  %v7080_v34 = vld [vmem:[%s8895_s0 + $0x48] sm:$0xff] }
  0x3d   :  { %547 = vmatprep.subr.bf16.mxu0 %v6518_v12  ;;  %v256_v29 = vpack.c.bf16 %v184_v24, %v181_v23  ;;  %v542_v32 = vsel %vm327_vm0, %v6521_v28, 0  ;;  %v186_v35 = vsel %vm174_vm1, %v183_v22, %v185_v30  ;;  %v7088_v37 = vld [vmem:[%s8895_s0 + $0x50] sm:$0xff]  ;;  %v6524_v38 = vld [vmem:[%s8896_s1 + $0x44] ss:$8 sps:$4 sm:$0xff]   ;;  %v189_v39 = vrot.slane %v7075_v33, 1 }
  0x3e   :  { %v188_v36 = vsel %vm174_vm1, %v185_v30, %v187_v31  ;;  %v7097_v40 = vld [vmem:[%s8895_s0 + $0x58] sm:$0xf]  ;;  %v7102_v41 = vld [vmem:[%s8895_s0 + $0x60] sm:$0xff]  ;;  %v190_v43 = vrot.slane %v7080_v34, 1  ;;  %v192_v44 = vrot.slane %v7088_v37, 1  ;;  %v7109_v45 = vld [vmem:[%s8895_s0 + $0x68] sm:$0xff] }
  0x3f   :  { %5373 = vmatmul.mubr.msk.bf16.vlgmr.msra.gmra.mrb[0].mxu0 %vm290_vm2, %v255_v18  ;;  %v257_v42 = vpack.c.bf16 %v188_v36, %v186_v35  ;;  %v194_v46 = vrot.slane %v7097_v40, 1  ;;  %v196_v47 = vrot.slane %v7102_v41, 1  ;;  %v197_v50 = vrot.slane %v7109_v45, 1  ;;  %v7122_v52 = vld [vmem:[%s8895_s0 + $0x70] sm:$0xff]  ;;  %v7127_v53 = vld [vmem:[%s8895_s0 + $0x78] sm:$0xf] }
  0x40   :  { %548 = vmatpush1.bf16.msra.mxu0 %v6516_v19  ;;  %376 = vmatprep.mubr.bf16.mxu0 %v6852_v0  ;;  %v191_v48 = vsel %vm174_vm1, %v189_v39, %v190_v43  ;;  %v193_v49 = vsel %vm174_vm1, %v190_v43, %v192_v44  ;;  %v199_v57 = vrot.slane %v7122_v52, 1  ;;  %v201_v58 = vrot.slane %v7127_v53, 1  ;;  %v7138_v59 = vld [vmem:[%s8895_s0 + $0x80] sm:$0xff]  ;;  %v7143_v60 = vld [vmem:[%s8895_s0 + $0x88] sm:$0xff]  ;;  %v7148_v61 = vld [vmem:[%s8895_s0 + $0x90] sm:$0xff] }
  0x41   :  { %5389 = vmatprep.subr.msk.bf16.mxu0 %vm327_vm0, %v6519_v27  ;;  %v258_v51 = vpack.c.bf16 %v193_v49, %v191_v48  ;;  %v195_v54 = vsel %vm174_vm1, %v192_v44, %v194_v46  ;;  %v198_v55 = vsel %vm174_vm1, %v196_v47, %v197_v50  ;;  %v203_v2 = vrot.slane %v7138_v59, 1  ;;  %v7159_v8 = vld [vmem:[%s8895_s0 + $0x98] sm:$0xf]  ;;  %v7164_v9 = vld [vmem:[%s8895_s0 + $0xa0] sm:$0xff]  ;;  %v7169_v10 = vld [vmem:[%s8895_s0 + $0xa8] sm:$0xff] }
  0x42   :  { %v259_v56 = vpack.c.bf16 %v198_v55, %v195_v54  ;;  %v200_v62 = vsel %vm174_vm1, %v197_v50, %v199_v57  ;;  %v202_v63 = vsel %vm174_vm1, %v199_v57, %v201_v58  ;;  %v204_v3 = vrot.slane %v7143_v60, 1  ;;  %v7181_v20 = vld [vmem:[%s8895_s0 + $0xb0] sm:$0xff]  ;;  %v7186_v21 = vld [vmem:[%s8895_s0 + $0xb8] sm:$0xf]  ;;  %v7203_v30 = vld [vmem:[%s8895_s0 + $0xc8] sm:$0xff] }
  0x43   :  { %v260_v1 = vpack.c.bf16 %v202_v63, %v200_v62  ;;  %v206_v4 = vrot.slane %v7148_v61, 1  ;;  %v208_v14 = vrot.slane %v7159_v8, 1  ;;  %v210_v15 = vrot.slane %v7164_v9, 1  ;;  %v7208_v31 = vld [vmem:[%s8895_s0 + $0xd0] sm:$0xff]  ;;  %v7216_v36 = vld [vmem:[%s8895_s0 + $0xd8] sm:$0xf] }
  0x44   :  { %550 = vmatpush1.bf16.msra.mxu0 %v542_v32  ;;  %v205_v11 = vsel %vm174_vm1, %v203_v2, %v204_v3  ;;  %v211_v18 = vrot.slane %v7169_v10, 1  ;;  %v213_v24 = vrot.slane %v7181_v20, 1  ;;  %v215_v27 = vrot.slane %v7186_v21, 1  ;;  %v7221_v39 = vld [vmem:[%s8895_s0 + $0xe0] sm:$0xff]  ;;  %v7241_v55 = vld [vmem:[%s8895_s0 + $0xf0] sm:$0xff] }
  0x45   :  { %857 = vmatprep.subr.bf16.mxu0 %v6524_v38  ;;  %v207_v12 = vsel %vm174_vm1, %v204_v3, %v206_v4  ;;  %v209_v22 = vsel %vm174_vm1, %v206_v4, %v208_v14  ;;  %v218_v44 = vrot.slane %v7203_v30, 1  ;;  %v220_v46 = vrot.slane %v7208_v31, 1  ;;  %v6527_v4 = vld [vmem:[%s8896_s1 + $0x50] ss:$8 sps:$4 sm:$0x3f]  }
  0x46   :  { %v261_v19 = vpack.c.bf16 %v207_v12, %v205_v11  ;;  %v212_v23 = vsel %vm174_vm1, %v210_v15, %v211_v18  ;;  %v214_v32 = vsel %vm174_vm1, %v211_v18, %v213_v24  ;;  %v216_v35 = vsel %vm174_vm1, %v213_v24, %v215_v27  ;;  %v6522_v14 = vld [vmem:[%s8896_s1 + $0x40] ss:$8 sps:$4 sm:$0xff]   ;;  %v6525_v18 = vld [vmem:[%s8896_s1 + $0x54] ss:$8 sps:$4 sm:$0x3f]  }
  0x47   :  { %5374 = vmatmul.mubr.msk.bf16.gmra.mrb[4].mxu0 %vm290_vm2, %v256_v29  ;;  %v262_v28 = vpack.c.bf16 %v212_v23, %v209_v22  ;;  %v7198_v29 = vld [vmem:[%s8895_s0 + $0xc0] sm:$0xff]  ;;  %v263_v38 = vpack.c.bf16 %v216_v35, %v214_v32  ;;  %v222_v47 = vrot.slane %v7216_v36, 1  ;;  %v221_v49 = vsel %vm174_vm1, %v218_v44, %v220_v46 }
  0x48   :  { %386 = vmatprep.mubr.bf16.mxu0 %v6852_v0  ;;  %v217_v43 = vrot.slane %v7198_v29, 1  ;;  %v224_v50 = vrot.slane %v7221_v39, 1  ;;  %v227_v62 = vrot.slane %v7241_v55, 1  ;;  %v852_v12 = vsel %vm327_vm0, %v6527_v4, 0 }
  0x49   :  { %v223_v57 = vsel %vm174_vm1, %v220_v46, %v222_v47  ;;  %v126_v15 = vpack.c.bf16 %v7009_v6, %v7004_v5  ;;  %v127_v22 = vpack.c.bf16 %v7034_v16, %v7014_v7  ;;  %v128_v23 = vpack.c.bf16 %v7054_v25, %v7039_v17 }
  0x4a   :  { %v219_v48 = vsel %vm174_vm1, %v217_v43, %v218_v44  ;;  %v129_v24 = vpack.c.bf16 %v7080_v34, %v7075_v33  ;;  %v130_v27 = vpack.c.bf16 %v7102_v41, %v7088_v37  ;;  %v132_v32 = vpack.c.bf16 %v7143_v60, %v7138_v59 }
  0x4b   :  { %v264_v54 = vpack.c.bf16 %v221_v49, %v219_v48  ;;  %v133_v35 = vpack.c.bf16 %v7164_v9, %v7148_v61  ;;  %v135_v43 = vpack.c.bf16 %v7203_v30, %v7198_v29  ;;  %v136_v44 = vpack.c.bf16 %v7221_v39, %v7208_v31 }
  0x4c   :  { %v700_v47 = vrot.slane %v7004_v5, 2  ;;  %v701_v48 = vrot.slane %v7009_v6, 2  ;;  %v703_v49 = vrot.slane %v7014_v7, 2  ;;  %v707_v5 = vrot.slane %v7034_v16, 2 }
  0x4d   :  { %v708_v6 = vrot.slane %v7039_v17, 2  ;;  %v6531_v7 = vld [vmem:[%s8896_s1 + $0x74] ss:$8 sps:$4 sm:$0x3f]   ;;  %v6536_v17 = vld [vmem:[%s8896_s1 + $0x84] ss:$8 sps:$4 sm:$0xff]  }
  0x4e   :  { %vm1417_vm4 = vcmask 1043456   ;;  %vm1980_vm5 = vcmask 130048   ;;  %vm2428_vm6 = vcmask 523264   ;;  %vm2942_vm7 = vcmask 588800  }
  0x4f   :  { %5375 = vmatmul.mubr.msk.bf16.gmra.mrb[8].mxu0 %vm290_vm2, %v257_v42  ;;  %v7226_v42 = vld [vmem:[%s8895_s0 + $0xe8] sm:$0xff]  ;;  %vm6854_vm8 = vmmov 0   ;;  %vm4760_vm9 = vcmask 1048064   ;;  %vm5198_vm10 = vcmask 982016   ;;  %vm5302_vm11 = vcmask 1041408  }
  0x50   :  { %396 = vmatprep.mubr.bf16.mxu0 %v6852_v0  ;;  %v137_v46 = vpack.c.bf16 %v7241_v55, %v7226_v42  ;;  %vm5298_vm12 = vcmask 687104  }
  0x57   :  { %5376 = vmatmul.mubr.msk.bf16.gmra.mrb[12].mxu0 %vm290_vm2, %v258_v51  ;;  %v225_v51 = vrot.slane %v7226_v42, 1 }
  0x58   :  { %406 = vmatprep.mubr.bf16.mxu0 %v6852_v0 }
  0x59   :  { %v226_v58 = vsel %vm174_vm1, %v224_v50, %v225_v51  ;;  %v228_v2 = vsel %vm174_vm1, %v225_v51, %v227_v62  ;;  %v702_v50 = vsel %vm327_vm0, %v700_v47, %v701_v48  ;;  %v704_v51 = vsel %vm327_vm0, %v701_v48, %v703_v49 }
  0x5a   :  { %v733_v47 = vrot.slane %v7159_v8, 2  ;;  %v735_v48 = vrot.slane %v7164_v9, 2 }
  0x5f   :  { %5377 = vmatmul.mubr.msk.bf16.gmra.mrb[16].mxu0 %vm290_vm2, %v259_v56  ;;  %v7246_v56 = vld [vmem:[%s8895_s0 + $0xf8] sm:$0xf] }
  0x60   :  { %416 = vmatprep.mubr.bf16.mxu0 %v6852_v0  ;;  %v229_v63 = vrot.slane %v7246_v56, 1 }
  0x62   :  { %v230_v3 = vsel %vm174_vm1, %v227_v62, %v229_v63  ;;  %v6533_v62 = vld [vmem:[%s8896_s1 + $0x70] ss:$8 sps:$4 sm:$0x3f]  }
  0x63   :  { %v266_v11 = vpack.c.bf16 %v230_v3, %v228_v2  ;;  %v1211_v16 = vsel %vm327_vm0, %v6533_v62, 0  ;;  %v710_v2 = vrot.slane %v7054_v25, 2  ;;  %v712_v3 = vrot.slane %v7059_v26, 2 }
  0x64   :  { %v742_v62 = vrot.slane %v7198_v29, 2 }
  0x65   :  { %v711_v4 = vsel %vm327_vm0, %v708_v6, %v710_v2 }
  0x67   :  { %5378 = vmatmul.mubr.msk.bf16.gmra.mrb[20].mxu0 %vm290_vm2, %v260_v1  ;;  %v265_v1 = vpack.c.bf16 %v226_v58, %v223_v57  ;;  %v6528_v57 = vld [vmem:[%s8896_s1 + $0x60] ss:$8 sps:$4 sm:$0xff]   ;;  %v705_v58 = vrot.slane %v7027_v13, 2  ;;  %v709_v13 = vsel %vm327_vm0, %v707_v5, %v708_v6 }
  0x68   :  { %426 = vmatprep.mubr.bf16.mxu0 %v6852_v0 }
  0x69   :  { %v706_v63 = vsel %vm327_vm0, %v703_v49, %v705_v58  ;;  %v736_v49 = vrot.slane %v7169_v10, 2  ;;  %v740_v58 = vrot.slane %v7186_v21, 2 }
  0x6f   :  { %5379 = vmatmul.mubr.msk.bf16.gmra.mrb[24].mxu0 %vm290_vm2, %v261_v19  ;;  %v6530_v19 = vld [vmem:[%s8896_s1 + $0x64] ss:$8 sps:$4 sm:$0xff]  }
  0x70   :  { %436 = vmatprep.mubr.bf16.mxu0 %v6852_v0 }
  0x77   :  { %5380 = vmatmul.mubr.msk.bf16.gmra.mrb[28].mxu0 %vm290_vm2, %v262_v28  ;;  %v131_v28 = vpack.c.bf16 %v7122_v52, %v7109_v45 }
  0x78   :  { %446 = vmatprep.mubr.bf16.mxu0 %v6852_v0 }
  0x7f   :  { %5381 = vmatmul.mubr.msk.bf16.gmra.mrb[32].mxu0 %vm290_vm2, %v263_v38  ;;  %v134_v38 = vpack.c.bf16 %v7181_v20, %v7169_v10 }
  0x80   :  { %456 = vmatprep.mubr.bf16.mxu0 %v6852_v0 }
  0x87   :  { %5382 = vmatmul.mubr.msk.bf16.gmra.mrb[36].mxu0 %vm290_vm2, %v264_v54  ;;  %v780_v54 = vpack.c.bf16 %v704_v51, %v702_v50  ;;  %v737_v51 = vsel %vm327_vm0, %v735_v48, %v736_v49 }
  0x88   :  { %466 = vmatprep.mubr.bf16.mxu0 %v6852_v0 }
  0x8f   :  { %5383 = vmatmul.mubr.msk.bf16.gmra.mrb[40].mxu0 %vm290_vm2, %v265_v1  ;;  %v781_v1 = vpack.c.bf16 %v709_v13, %v706_v63  ;;  %v743_v63 = vrot.slane %v7203_v30, 2  ;;  %v745_v13 = vrot.slane %v7208_v31, 2 }
  0x90   :  { %476 = vmatprep.mubr.bf16.mxu0 %v6852_v0 }
  0x97   :  { %5384 = vmatmul.mubr.msk.bf16.gmra.mrb[44].mxu0 %vm290_vm2, %v266_v11  ;;  %v713_v11 = vsel %vm327_vm0, %v710_v2, %v712_v3  ;;  %v747_v2 = vrot.slane %v7216_v36, 2  ;;  %v749_v3 = vrot.slane %v7221_v39, 2 }
  0x98   :  { %579 = vmatprep.mubr.bf16.mxu0 %v6852_v0 }
  0x9f   :  { %5390 = vmatmul.mubr.msk.bf16.vlgmr.msra.gmra.mrb[0].mxu0 %vm290_vm2, %v126_v15  ;;  %v715_v15 = vrot.slane %v7080_v34, 2 }
  0xa0   :  { %858 = vmatpush1.bf16.msra.mxu0 %v6522_v14  ;;  %589 = vmatprep.mubr.bf16.mxu0 %v6852_v0  ;;  %v714_v14 = vrot.slane %v7075_v33, 2 }
  0xa1   :  { %5410 = vmatprep.subr.msk.bf16.mxu0 %vm327_vm0, %v6525_v18  ;;  %v717_v18 = vrot.slane %v7088_v37, 2 }
  0xa2   :  { %v716_v25 = vsel %vm327_vm0, %v714_v14, %v715_v15 }
  0xa3   :  { %v718_v26 = vsel %vm327_vm0, %v715_v15, %v717_v18  ;;  %v752_v15 = vrot.slane %v7241_v55, 2 }
  0xa4   :  { %860 = vmatpush1.bf16.msra.mxu0 %v852_v12  ;;  %v782_v12 = vpack.c.bf16 %v713_v11, %v711_v4  ;;  %v750_v4 = vrot.slane %v7226_v42, 2  ;;  %v748_v11 = vsel %vm327_vm0, %v745_v13, %v747_v2 }
  0xa5   :  { %1216 = vmatprep.subr.bf16.mxu0 %v6530_v19  ;;  %v783_v19 = vpack.c.bf16 %v718_v26, %v716_v25 }
  0xa6   :  { %v753_v25 = vsel %vm327_vm0, %v750_v4, %v752_v15 }
  0xa7   :  { %5391 = vmatmul.mubr.msk.bf16.gmra.mrb[4].mxu0 %vm290_vm2, %v127_v22  ;;  %v719_v22 = vrot.slane %v7097_v40, 2 }
  0xa8   :  { %599 = vmatprep.mubr.bf16.mxu0 %v6852_v0 }
  0xa9   :  { %v720_v33 = vsel %vm327_vm0, %v717_v18, %v719_v22  ;;  %v754_v18 = vrot.slane %v7246_v56, 2  ;;  %v7417_v22 = vld [vmem:[%s8895_s0] sm:$0xff] }
  0xab   :  { %v755_v26 = vsel %vm327_vm0, %v752_v15, %v754_v18  ;;  %v7517_v15 = vld [vmem:[%s8895_s0 + $0x60] sm:$0xff] }
  0xac   :  { %v1080_v18 = vrot.slane %v7517_v15, 3 }
  0xaf   :  { %5392 = vmatmul.mubr.msk.bf16.gmra.mrb[8].mxu0 %vm290_vm2, %v128_v23  ;;  %v721_v23 = vrot.slane %v7102_v41, 2 }
  0xb0   :  { %609 = vmatprep.mubr.bf16.mxu0 %v6852_v0 }
  0xb7   :  { %5393 = vmatmul.mubr.msk.bf16.gmra.mrb[12].mxu0 %vm290_vm2, %v129_v24  ;;  %v722_v24 = vrot.slane %v7109_v45, 2 }
  0xb8   :  { %619 = vmatprep.mubr.bf16.mxu0 %v6852_v0 }
  0xb9   :  { %v723_v34 = vsel %vm327_vm0, %v721_v23, %v722_v24  ;;  %v1059_v23 = vrot.slane %v7417_v22, 3 }
  0xba   :  { %v784_v37 = vpack.c.bf16 %v723_v34, %v720_v33  ;;  %v7429_v34 = vld [vmem:[%s8895_s0 + $0x10] sm:$0xff] }
  0xbf   :  { %5394 = vmatmul.mubr.msk.bf16.gmra.mrb[16].mxu0 %vm290_vm2, %v130_v27  ;;  %v724_v27 = vrot.slane %v7122_v52, 2 }
  0xc0   :  { %629 = vmatprep.mubr.bf16.mxu0 %v6852_v0 }
  0xc1   :  { %v725_v40 = vsel %vm327_vm0, %v722_v24, %v724_v27  ;;  %v7423_v24 = vld [vmem:[%s8895_s0 + $0x8] sm:$0xff] }
  0xc2   :  { %v1060_v33 = vrot.slane %v7423_v24, 3 }
  0xc7   :  { %5395 = vmatmul.mubr.msk.bf16.gmra.mrb[20].mxu0 %vm290_vm2, %v131_v28  ;;  %v726_v28 = vrot.slane %v7127_v53, 2 }
  0xc8   :  { %639 = vmatprep.mubr.bf16.mxu0 %v6852_v0 }
  0xc9   :  { %v727_v41 = vsel %vm327_vm0, %v724_v27, %v726_v28  ;;  %v1061_v27 = vsel %vm1058_vm3, %v1059_v23, %v1060_v33 }
  0xca   :  { %v785_v45 = vpack.c.bf16 %v727_v41, %v725_v40  ;;  %v6534_v41 = vld [vmem:[%s8896_s1 + $0x80] ss:$8 sps:$4 sm:$0xff]  }
  0xcf   :  { %5396 = vmatmul.mubr.msk.bf16.gmra.mrb[24].mxu0 %vm290_vm2, %v132_v32  ;;  %v728_v32 = vrot.slane %v7138_v59, 2 }
  0xd0   :  { %649 = vmatprep.mubr.bf16.mxu0 %v6852_v0 }
  0xd7   :  { %5397 = vmatmul.mubr.msk.bf16.gmra.mrb[28].mxu0 %vm290_vm2, %v133_v35  ;;  %v729_v35 = vrot.slane %v7143_v60, 2 }
  0xd8   :  { %659 = vmatprep.mubr.bf16.mxu0 %v6852_v0 }
  0xdf   :  { %5398 = vmatmul.mubr.msk.bf16.gmra.mrb[32].mxu0 %vm290_vm2, %v134_v38  ;;  %v731_v38 = vrot.slane %v7148_v61, 2 }
  0xe0   :  { %669 = vmatprep.mubr.bf16.mxu0 %v6852_v0 }
  0xe1   :  { %v734_v50 = vsel %vm327_vm0, %v731_v38, %v733_v47  ;;  %v6539_v47 = vld [vmem:[%s8896_s1 + $0x90] ss:$8 sps:$4 sm:$0x3f]  }
  0xe7   :  { %5399 = vmatmul.mubr.msk.bf16.gmra.mrb[36].mxu0 %vm290_vm2, %v135_v43  ;;  %v730_v43 = vsel %vm327_vm0, %v728_v32, %v729_v35 }
  0xe8   :  { %679 = vmatprep.mubr.bf16.mxu0 %v6852_v0 }
  0xef   :  { %5400 = vmatmul.mubr.msk.bf16.gmra.mrb[40].mxu0 %vm290_vm2, %v136_v44  ;;  %v732_v44 = vsel %vm327_vm0, %v729_v35, %v731_v38  ;;  %v7448_v35 = vld [vmem:[%s8895_s0 + $0x20] sm:$0xff] }
  0xf0   :  { %689 = vmatprep.mubr.bf16.mxu0 %v6852_v0  ;;  %v1066_v38 = vrot.slane %v7448_v35, 3 }
  0xf7   :  { %5401 = vmatmul.mubr.msk.bf16.gmra.mrb[44].mxu0 %vm290_vm2, %v137_v46  ;;  %v786_v46 = vpack.c.bf16 %v732_v44, %v730_v43  ;;  %v7454_v43 = vld [vmem:[%s8895_s0 + $0x28] sm:$0xff] }
  0xf8   :  { %889 = vmatprep.mubr.bf16.mxu0 %v6852_v0  ;;  %v1067_v44 = vrot.slane %v7454_v43, 3 }
  0xff   :  { %5411 = vmatmul.mubr.msk.bf16.vlgmr.msra.gmra.mrb[0].mxu0 %vm290_vm2, %v780_v54  ;;  %v787_v54 = vpack.c.bf16 %v737_v51, %v734_v50  ;;  %v1570_v50 = vsel %vm327_vm0, %v6539_v47, 0  ;;  %v1092_v47 = vrot.slane %v7159_v8, 3  ;;  %v6540_v8 = vld [vmem:[#allocation3] sm:$0xff]  }
 0x100   :  { %1217 = vmatpush1.bf16.msra.mxu0 %v6528_v57  ;;  %899 = vmatprep.mubr.bf16.mxu0 %v6852_v0  ;;  %v738_v57 = vrot.slane %v7181_v20, 2 }
 0x101   :  { %5431 = vmatprep.subr.msk.bf16.mxu0 %vm327_vm0, %v6531_v7  ;;  %2018 = vmatpush1.bf16.msra.mxu1 %v6540_v8 }
 0x102   :  { %v739_v5 = vsel %vm327_vm0, %v736_v49, %v738_v57  ;;  %v741_v6 = vsel %vm327_vm0, %v738_v57, %v740_v58  ;;  %v1068_v49 = vsel %vm1058_vm3, %v1066_v38, %v1067_v44  ;;  %v7478_v58 = vld [vmem:[%s8895_s0 + $0x38] sm:$0xf]  ;;  %v1088_v38 = vrot.slane %v7143_v60, 3  ;;  %2019 = vmatprep.subr.bf16.mxu1 %v6852_v0 }
 0x103   :  { %v788_v7 = vpack.c.bf16 %v741_v6, %v739_v5  ;;  %v1071_v5 = vrot.slane %v7478_v58, 3 }
 0x104   :  { %1219 = vmatpush1.bf16.msra.mxu0 %v1211_v16  ;;  %v744_v16 = vsel %vm327_vm0, %v742_v62, %v743_v63 }
 0x105   :  { %1575 = vmatprep.subr.bf16.mxu0 %v6536_v17  ;;  %v746_v17 = vsel %vm327_vm0, %v743_v63, %v745_v13  ;;  %v7489_v63 = vld [vmem:[%s8895_s0 + $0x40] sm:$0xff] }
 0x106   :  { %v1073_v13 = vrot.slane %v7489_v63, 3 }
 0x107   :  { %5412 = vmatmul.mubr.msk.bf16.gmra.mrb[4].mxu0 %vm290_vm2, %v781_v1  ;;  %v789_v1 = vpack.c.bf16 %v746_v17, %v744_v16  ;;  %v7495_v16 = vld [vmem:[%s8895_s0 + $0x48] sm:$0xff] }
 0x108   :  { %909 = vmatprep.mubr.bf16.mxu0 %v6852_v0  ;;  %v1074_v17 = vrot.slane %v7495_v16, 3 }
 0x10f   :  { %5413 = vmatmul.mubr.msk.bf16.gmra.mrb[8].mxu0 %vm290_vm2, %v782_v12  ;;  %v751_v12 = vsel %vm327_vm0, %v749_v3, %v750_v4  ;;  %v1075_v3 = vsel %vm1058_vm3, %v1073_v13, %v1074_v17 }
 0x110   :  { %919 = vmatprep.mubr.bf16.mxu0 %v6852_v0  ;;  %v790_v14 = vpack.c.bf16 %v751_v12, %v748_v11  ;;  %v7511_v12 = vld [vmem:[%s8895_s0 + $0x58] sm:$0xf] }
 0x111   :  { %v1437_v8 = vrot.slane %v7511_v12, 4 }
 0x117   :  { %5414 = vmatmul.mubr.msk.bf16.gmra.mrb[12].mxu0 %vm290_vm2, %v783_v19  ;;  %v791_v19 = vpack.c.bf16 %v755_v26, %v753_v25  ;;  %v7523_v25 = vld [vmem:[%s8895_s0 + $0x68] sm:$0xff] }
 0x118   :  { %929 = vmatprep.mubr.bf16.mxu0 %v6852_v0  ;;  %v1081_v26 = vrot.slane %v7523_v25, 3 }
 0x11a   :  { %v1082_v23 = vsel %vm1058_vm3, %v1080_v18, %v1081_v26 }
 0x11f   :  { %5415 = vmatmul.mubr.msk.bf16.gmra.mrb[16].mxu0 %vm290_vm2, %v784_v37  ;;  %v1062_v37 = vrot.slane %v7429_v34, 3 }
 0x120   :  { %939 = vmatprep.mubr.bf16.mxu0 %v6852_v0 }
 0x121   :  { %v1063_v28 = vsel %vm1058_vm3, %v1060_v33, %v1062_v37 }
 0x122   :  { %v1139_v40 = vpack.c.bf16 %v1063_v28, %v1061_v27  ;;  %v1085_v27 = vrot.slane %v7127_v53, 3 }
 0x127   :  { %5416 = vmatmul.mubr.msk.bf16.gmra.mrb[20].mxu0 %vm290_vm2, %v785_v45  ;;  %v7442_v45 = vld [vmem:[%s8895_s0 + $0x18] sm:$0xf] }
 0x128   :  { %949 = vmatprep.mubr.bf16.mxu0 %v6852_v0  ;;  %v1064_v32 = vrot.slane %v7442_v45, 3 }
 0x12a   :  { %v1065_v48 = vsel %vm1058_vm3, %v1062_v37, %v1064_v32  ;;  %v1083_v37 = vrot.slane %v7122_v52, 3  ;;  %v1087_v32 = vrot.slane %v7138_v59, 3 }
 0x12b   :  { %v1140_v51 = vpack.c.bf16 %v1068_v49, %v1065_v48  ;;  %v1094_v48 = vrot.slane %v7164_v9, 3  ;;  %v1095_v49 = vrot.slane %v7169_v10, 3 }
 0x12c   :  { %v1084_v28 = vsel %vm1058_vm3, %v1081_v26, %v1083_v37  ;;  %v1089_v52 = vsel %vm1058_vm3, %v1087_v32, %v1088_v38  ;;  %v1419_v32 = vrot.slane %v7423_v24, 4 }
 0x12d   :  { %v1096_v60 = vsel %vm1058_vm3, %v1094_v48, %v1095_v49 }
 0x12f   :  { %5417 = vmatmul.mubr.msk.bf16.gmra.mrb[24].mxu0 %vm290_vm2, %v786_v46  ;;  %v6537_v46 = vld [vmem:[%s8896_s1 + $0x94] ss:$8 sps:$4 sm:$0x3f]  }
 0x130   :  { %959 = vmatprep.mubr.bf16.mxu0 %v6852_v0 }
 0x137   :  { %5418 = vmatmul.mubr.msk.bf16.gmra.mrb[28].mxu0 %vm290_vm2, %v787_v54  ;;  %v7472_v54 = vld [vmem:[%s8895_s0 + $0x30] sm:$0xff] }
 0x138   :  { %969 = vmatprep.mubr.bf16.mxu0 %v6852_v0  ;;  %v1069_v57 = vrot.slane %v7472_v54, 3 }
 0x13a   :  { %v1070_v6 = vsel %vm1058_vm3, %v1067_v44, %v1069_v57  ;;  %v1090_v44 = vrot.slane %v7148_v61, 3 }
 0x13c   :  { %v1091_v53 = vsel %vm1058_vm3, %v1088_v38, %v1090_v44  ;;  %v1093_v59 = vsel %vm1058_vm3, %v1090_v44, %v1092_v47  ;;  %v1421_v38 = vrot.slane %v7429_v34, 4  ;;  %v1425_v47 = vrot.slane %v7448_v35, 4 }
 0x13d   :  { %v1146_v61 = vpack.c.bf16 %v1096_v60, %v1093_v59  ;;  %v1430_v59 = vrot.slane %v7478_v58, 4  ;;  %v1432_v60 = vrot.slane %v7489_v63, 4 }
 0x13f   :  { %5419 = vmatmul.mubr.msk.bf16.gmra.mrb[32].mxu0 %vm290_vm2, %v788_v7  ;;  %v1072_v7 = vsel %vm1058_vm3, %v1069_v57, %v1071_v5  ;;  %v6541_v57 = vld [vmem:[#allocation3 + $0x8] sm:$0xff]  }
 0x140   :  { %979 = vmatprep.mubr.bf16.mxu0 %v6852_v0  ;;  %v1141_v62 = vpack.c.bf16 %v1072_v7, %v1070_v6  ;;  %v1101_v6 = vrot.slane %v7198_v29, 3  ;;  %2020 = vmatpush1.bf16.msra.mxu1 %v6541_v57  ;;  %v6542_v7 = vld [vmem:[#allocation3 + $0x10] sm:$0xff]   ;;  %v6767_v57 = vld [vmem:[%s8895_s0 + $0x70] sm:$0xff] }
 0x141   :  { %2021 = vmatprep.subr.bf16.mxu1 %v6852_v0 }
 0x144   :  { %2022 = vmatpush1.bf16.msra.mxu1 %v6542_v7 }
 0x145   :  { %2023 = vmatprep.subr.bf16.mxu1 %v6852_v0 }
 0x147   :  { %5420 = vmatmul.mubr.msk.bf16.gmra.mrb[36].mxu0 %vm290_vm2, %v789_v1  ;;  %v7501_v1 = vld [vmem:[%s8895_s0 + $0x50] sm:$0xff] }
 0x148   :  { %989 = vmatprep.mubr.bf16.mxu0 %v6852_v0  ;;  %v1076_v2 = vrot.slane %v7501_v1, 3 }
 0x14a   :  { %v1077_v4 = vsel %vm1058_vm3, %v1074_v17, %v1076_v2  ;;  %v6543_v17 = vld [vmem:[#allocation3 + $0x18] sm:$0xff]  }
 0x14b   :  { %v1142_v11 = vpack.c.bf16 %v1077_v4, %v1075_v3  ;;  %v1106_v3 = vrot.slane %v7216_v36, 3  ;;  %v1108_v4 = vrot.slane %v7221_v39, 3  ;;  %2024 = vmatpush1.bf16.msra.mxu1 %v6543_v17  ;;  %v6771_v17 = vld [vmem:[%s8895_s0 + $0x90] sm:$0xff] }
 0x14c   :  { %2025 = vmatprep.subr.bf16.mxu1 %v6852_v0 }
 0x14f   :  { %5421 = vmatmul.mubr.msk.bf16.gmra.mrb[40].mxu0 %vm290_vm2, %v790_v14  ;;  %v1078_v14 = vrot.slane %v7511_v12, 3  ;;  %v6768_v12 = vld [vmem:[%s8895_s0 + $0x78] sm:$0xf] }
 0x150   :  { %999 = vmatprep.mubr.bf16.mxu0 %v6852_v0 }
 0x157   :  { %5422 = vmatmul.mubr.msk.bf16.gmra.mrb[44].mxu0 %vm290_vm2, %v791_v19  ;;  %v1079_v19 = vsel %vm1058_vm3, %v1076_v2, %v1078_v14  ;;  %v6544_v14 = vld [vmem:[#allocation3 + $0x20] sm:$0xff]  }
 0x158   :  { %1248 = vmatprep.mubr.bf16.mxu0 %v6852_v0  ;;  %v1143_v33 = vpack.c.bf16 %v1082_v23, %v1079_v19  ;;  %2026 = vmatpush1.bf16.msra.mxu1 %v6544_v14  ;;  %v6545_v19 = vld [vmem:[#allocation3 + $0x28] sm:$0xff]  }
 0x159   :  { %2027 = vmatprep.subr.bf16.mxu1 %v6852_v0  ;;  %v6772_v14 = vld [vmem:[%s8895_s0 + $0x98] sm:$0xf] }
 0x15c   :  { %2028 = vmatpush1.bf16.msra.mxu1 %v6545_v19 }
 0x15d   :  { %2029 = vmatprep.subr.bf16.mxu1 %v6852_v0 }
 0x15f   :  { %5432 = vmatmul.mubr.msk.bf16.vlgmr.msra.gmra.mrb[0].mxu0 %vm290_vm2, %v1139_v40  ;;  %v1086_v40 = vsel %vm1058_vm3, %v1083_v37, %v1085_v27  ;;  %v1113_v37 = vrot.slane %v7246_v56, 3 }
 0x160   :  { %1576 = vmatpush1.bf16.msra.mxu0 %v6534_v41  ;;  %1258 = vmatprep.mubr.bf16.mxu0 %v6852_v0  ;;  %v1144_v41 = vpack.c.bf16 %v1086_v40, %v1084_v28 }
 0x161   :  { %5452 = vmatprep.subr.msk.bf16.mxu0 %vm327_vm0, %v6537_v46  ;;  %v1145_v46 = vpack.c.bf16 %v1091_v53, %v1089_v52  ;;  %v1422_v52 = vsel %vm1417_vm4, %v1419_v32, %v1421_v38 }
 0x164   :  { %1578 = vmatpush1.bf16.msra.mxu0 %v1570_v50  ;;  %v1097_v50 = vrot.slane %v7181_v20, 3  ;;  %v1102_v20 = vrot.slane %v7203_v30, 3 }
 0x165   :  { %3309 = vmatprep.subr.bf16.mxu0 %v6852_v0 }
 0x166   :  { %v1098_v9 = vsel %vm1058_vm3, %v1095_v49, %v1097_v50  ;;  %v1428_v49 = vrot.slane %v7472_v54, 4 }
 0x167   :  { %5433 = vmatmul.mubr.msk.bf16.gmra.mrb[4].mxu0 %vm290_vm2, %v1140_v51  ;;  %v1099_v51 = vrot.slane %v7186_v21, 3  ;;  %v1104_v21 = vrot.slane %v7208_v31, 3 }
 0x168   :  { %1268 = vmatprep.mubr.bf16.mxu0 %v6852_v0  ;;  %v1431_v35 = vsel %vm1417_vm4, %v1428_v49, %v1430_v59  ;;  %v1467_v59 = vrot.slane %v7221_v39, 4 }
 0x169   :  { %v1100_v10 = vsel %vm1058_vm3, %v1097_v50, %v1099_v51  ;;  %v1105_v13 = vsel %vm1058_vm3, %v1102_v20, %v1104_v21  ;;  %v1107_v18 = vsel %vm1058_vm3, %v1104_v21, %v1106_v3  ;;  %v1435_v50 = vrot.slane %v7501_v1, 4  ;;  %v6769_v21 = vld [vmem:[%s8895_s0 + $0x80] sm:$0xff] }
 0x16a   :  { %v1147_v5 = vpack.c.bf16 %v1100_v10, %v1098_v9  ;;  %v1439_v9 = vrot.slane %v7517_v15, 4  ;;  %v1440_v10 = vrot.slane %v7523_v25, 4  ;;  %v1444_v15 = vrot.slane %v6768_v12, 4 }
 0x16b   :  { %v1438_v63 = vsel %vm1417_vm4, %v1435_v50, %v1437_v8  ;;  %v1446_v7 = vrot.slane %v6769_v21, 4 }
 0x16f   :  { %5434 = vmatmul.mubr.msk.bf16.gmra.mrb[8].mxu0 %vm290_vm2, %v1141_v62  ;;  %v1103_v62 = vsel %vm1058_vm3, %v1101_v6, %v1102_v20 }
 0x170   :  { %1278 = vmatprep.mubr.bf16.mxu0 %v6852_v0  ;;  %v1148_v2 = vpack.c.bf16 %v1105_v13, %v1103_v62  ;;  %v6770_v62 = vld [vmem:[%s8895_s0 + $0x88] sm:$0xff] }
 0x171   :  { %v1447_v13 = vrot.slane %v6770_v62, 4 }
 0x173   :  { %v1448_v3 = vsel %vm1417_vm4, %v1446_v7, %v1447_v13 }
 0x177   :  { %5435 = vmatmul.mubr.msk.bf16.gmra.mrb[12].mxu0 %vm290_vm2, %v1142_v11  ;;  %v1109_v11 = vrot.slane %v7226_v42, 3 }
 0x178   :  { %1288 = vmatprep.mubr.bf16.mxu0 %v6852_v0 }
 0x179   :  { %v1110_v26 = vsel %vm1058_vm3, %v1108_v4, %v1109_v11 }
 0x17a   :  { %v1149_v23 = vpack.c.bf16 %v1110_v26, %v1107_v18  ;;  %v1451_v18 = vrot.slane %v6772_v14, 4  ;;  %v6773_v26 = vld [vmem:[%s8895_s0 + $0xa0] sm:$0xff] }
 0x17b   :  { %v1453_v19 = vrot.slane %v6773_v26, 4 }
 0x17f   :  { %5436 = vmatmul.mubr.msk.bf16.gmra.mrb[16].mxu0 %vm290_vm2, %v1143_v33  ;;  %v1111_v33 = vrot.slane %v7241_v55, 3 }
 0x180   :  { %1298 = vmatprep.mubr.bf16.mxu0 %v6852_v0 }
 0x181   :  { %v1112_v27 = vsel %vm1058_vm3, %v1109_v11, %v1111_v33  ;;  %v1114_v28 = vsel %vm1058_vm3, %v1111_v33, %v1113_v37 }
 0x182   :  { %v1150_v40 = vpack.c.bf16 %v1114_v28, %v1112_v27 }
 0x187   :  { %5437 = vmatmul.mubr.msk.bf16.gmra.mrb[20].mxu0 %vm290_vm2, %v1144_v41  ;;  %v1418_v41 = vrot.slane %v7417_v22, 4  ;;  %v1426_v22 = vrot.slane %v7454_v43, 4 }
 0x188   :  { %1308 = vmatprep.mubr.bf16.mxu0 %v6852_v0 }
 0x189   :  { %v1420_v44 = vsel %vm1417_vm4, %v1418_v41, %v1419_v32  ;;  %v1427_v34 = vsel %vm1417_vm4, %v1425_v47, %v1426_v22  ;;  %v6776_v32 = vld [vmem:[%s8895_s0 + $0xb8] sm:$0xf]  ;;  %v1461_v47 = vrot.slane %v7203_v30, 4 }
 0x18a   :  { %v1498_v53 = vpack.c.bf16 %v1422_v52, %v1420_v44 }
 0x18f   :  { %5438 = vmatmul.mubr.msk.bf16.gmra.mrb[24].mxu0 %vm290_vm2, %v1145_v46  ;;  %v1423_v46 = vrot.slane %v7442_v45, 4  ;;  %v1429_v45 = vsel %vm1417_vm4, %v1426_v22, %v1428_v49  ;;  %v1463_v22 = vrot.slane %v7208_v31, 4  ;;  %v1465_v49 = vrot.slane %v7216_v36, 4 }
 0x190   :  { %1318 = vmatprep.mubr.bf16.mxu0 %v6852_v0  ;;  %v1500_v43 = vpack.c.bf16 %v1431_v35, %v1429_v45  ;;  %v1468_v45 = vrot.slane %v7226_v42, 4  ;;  %v1470_v35 = vrot.slane %v7241_v55, 4  ;;  %v6546_v42 = vld [vmem:[#allocation3 + $0x30] sm:$0xff]   ;;  %v6548_v55 = vld [vmem:[#allocation3 + $0x40] sm:$0xff]  }
 0x191   :  { %v1424_v24 = vsel %vm1417_vm4, %v1421_v38, %v1423_v46  ;;  %v1458_v38 = vrot.slane %v6776_v32, 4  ;;  %v1460_v46 = vrot.slane %v7198_v29, 4  ;;  %v1466_v29 = vsel %vm1417_vm4, %v1463_v22, %v1465_v49  ;;  %2030 = vmatpush1.bf16.msra.mxu1 %v6546_v42  ;;  %v6551_v32 = vld [vmem:[#allocation3 + $0x58] sm:$0xff]  }
 0x192   :  { %v1499_v48 = vpack.c.bf16 %v1427_v34, %v1424_v24  ;;  %v1464_v34 = vsel %vm1417_vm4, %v1461_v47, %v1463_v22  ;;  %v1469_v30 = vsel %vm1417_vm4, %v1467_v59, %v1468_v45  ;;  %v1471_v36 = vsel %vm1417_vm4, %v1468_v45, %v1470_v35  ;;  %2031 = vmatprep.subr.bf16.mxu1 %v6852_v0 }
 0x193   :  { %v1462_v24 = vsel %vm1417_vm4, %v1460_v46, %v1461_v47  ;;  %v1508_v31 = vpack.c.bf16 %v1469_v30, %v1466_v29 }
 0x197   :  { %5439 = vmatmul.mubr.msk.bf16.gmra.mrb[28].mxu0 %vm290_vm2, %v1146_v61  ;;  %v1433_v61 = vrot.slane %v7495_v16, 4  ;;  %v1441_v16 = vsel %vm1417_vm4, %v1439_v9, %v1440_v10 }
 0x198   :  { %1328 = vmatprep.mubr.bf16.mxu0 %v6852_v0  ;;  %v1502_v1 = vpack.c.bf16 %v1441_v16, %v1438_v63 }
 0x199   :  { %v1434_v54 = vsel %vm1417_vm4, %v1432_v60, %v1433_v61  ;;  %v1436_v58 = vsel %vm1417_vm4, %v1433_v61, %v1435_v50  ;;  %v6547_v61 = vld [vmem:[#allocation3 + $0x38] sm:$0xff]  }
 0x19a   :  { %v1501_v51 = vpack.c.bf16 %v1436_v58, %v1434_v54  ;;  %2032 = vmatpush1.bf16.msra.mxu1 %v6547_v61  ;;  %v1776_v58 = vld [vmem:[%s8897_s2] sm:$0x3] }
 0x19b   :  { %2033 = vmatprep.subr.bf16.mxu1 %v6852_v0 }
 0x19e   :  { %2034 = vmatpush1.bf16.msra.mxu1 %v6548_v55  ;;  %v6554_v55 = vld [vmem:[#allocation3 + $0x70] sm:$0xff]  }
 0x19f   :  { %5440 = vmatmul.mubr.msk.bf16.gmra.mrb[32].mxu0 %vm290_vm2, %v1147_v5  ;;  %v1442_v5 = vrot.slane %v6767_v57, 4  ;;  %2219 = vmatprep.subr.bf16.mxu1 %v6852_v0 }
 0x1a0   :  { %1338 = vmatprep.mubr.bf16.mxu0 %v6852_v0 }
 0x1a1   :  { %v1443_v25 = vsel %vm1417_vm4, %v1440_v10, %v1442_v5  ;;  %v1445_v6 = vsel %vm1417_vm4, %v1442_v5, %v1444_v15 }
 0x1a2   :  { %v1503_v20 = vpack.c.bf16 %v1445_v6, %v1443_v25 }
 0x1a7   :  { %5441 = vmatmul.mubr.msk.bf16.gmra.mrb[36].mxu0 %vm290_vm2, %v1148_v2  ;;  %v1449_v2 = vrot.slane %v6771_v17, 4  ;;  %v6549_v17 = vld [vmem:[#allocation3 + $0x48] sm:$0xff]  }
 0x1a8   :  { %1348 = vmatprep.mubr.bf16.mxu0 %v6852_v0 }
 0x1a9   :  { %v1450_v4 = vsel %vm1417_vm4, %v1447_v13, %v1449_v2  ;;  %v1452_v37 = vsel %vm1417_vm4, %v1449_v2, %v1451_v18 }
 0x1aa   :  { %v1504_v11 = vpack.c.bf16 %v1450_v4, %v1448_v3 }
 0x1af   :  { %5442 = vmatmul.mubr.msk.bf16.gmra.mrb[40].mxu0 %vm290_vm2, %v1149_v23  ;;  %v6774_v23 = vld [vmem:[%s8895_s0 + $0xa8] sm:$0xff] }
 0x1b0   :  { %1358 = vmatprep.mubr.bf16.mxu0 %v6852_v0  ;;  %v1454_v33 = vrot.slane %v6774_v23, 4 }
 0x1b2   :  { %v1455_v27 = vsel %vm1417_vm4, %v1453_v19, %v1454_v33  ;;  %v6550_v19 = vld [vmem:[#allocation3 + $0x50] sm:$0xff]  }
 0x1b3   :  { %v1505_v28 = vpack.c.bf16 %v1455_v27, %v1452_v37 }
 0x1b7   :  { %5443 = vmatmul.mubr.msk.bf16.gmra.mrb[44].mxu0 %vm290_vm2, %v1150_v40  ;;  %v6775_v40 = vld [vmem:[%s8895_s0 + $0xb0] sm:$0xff] }
 0x1b8   :  { %1607 = vmatprep.mubr.bf16.mxu0 %v6852_v0  ;;  %v1456_v41 = vrot.slane %v6775_v40, 4 }
 0x1ba   :  { %v1457_v44 = vsel %vm1417_vm4, %v1454_v33, %v1456_v41  ;;  %v1459_v52 = vsel %vm1417_vm4, %v1456_v41, %v1458_v38 }
 0x1bf   :  { %5453 = vmatmul.mubr.msk.bf16.vlgmr.msra.gmra.mrb[0].mxu0 %vm290_vm2, %v1498_v53  ;;  %v1506_v53 = vpack.c.bf16 %v1459_v52, %v1457_v44 }
 0x1c0   :  { %1617 = vmatprep.mubr.bf16.mxu0 %v6852_v0 }
 0x1c7   :  { %5454 = vmatmul.mubr.msk.bf16.gmra.mrb[4].mxu0 %vm290_vm2, %v1499_v48  ;;  %v1507_v48 = vpack.c.bf16 %v1464_v34, %v1462_v24  ;;  %v6552_v24 = vld [vmem:[#allocation3 + $0x60] sm:$0xff]  }
 0x1c8   :  { %1627 = vmatprep.mubr.bf16.mxu0 %v6852_v0 }
 0x1cf   :  { %5455 = vmatmul.mubr.msk.bf16.gmra.mrb[8].mxu0 %vm290_vm2, %v1500_v43  ;;  %v1472_v43 = vrot.slane %v7246_v56, 4  ;;  %v1778_v56 = vlaneseq }
 0x1d0   :  { %1637 = vmatprep.mubr.bf16.mxu0 %v6852_v0 }
 0x1d1   :  { %v1473_v39 = vsel %vm1417_vm4, %v1470_v35, %v1472_v43  ;;  %v1779_v50 = vshrl.u32 %v1778_v56, 7 }
 0x1d2   :  { %v1509_v60 = vpack.c.bf16 %v1473_v39, %v1471_v36 }
 0x1d3   :  { %v1780_v54 = vsub.s32 0, %v1779_v50 }
 0x1d5   :  { %v7689_v8 = vrot.slane %v1776_v58, %v1780_v54 }
 0x1d7   :  { %5456 = vmatmul.mubr.msk.bf16.gmra.mrb[12].mxu0 %vm290_vm2, %v1501_v51  ;;  %v1784_v51 = vsub.s32 1, %v1779_v50 }
 0x1d8   :  { %1647 = vmatprep.mubr.bf16.mxu0 %v6852_v0 }
 0x1d9   :  { %v7691_v9 = vrot.slane %v1776_v58, %v1784_v51 }
 0x1df   :  { %5457 = vmatmul.mubr.msk.bf16.gmra.mrb[16].mxu0 %vm290_vm2, %v1502_v1 }
 0x1e0   :  { %1657 = vmatprep.mubr.bf16.mxu0 %v6852_v0 }
 0x1e7   :  { %5458 = vmatmul.mubr.msk.bf16.gmra.mrb[20].mxu0 %vm290_vm2, %v1503_v20 }
 0x1e8   :  { %1667 = vmatprep.mubr.bf16.mxu0 %v6852_v0 }
 0x1ef   :  { %5459 = vmatmul.mubr.msk.bf16.gmra.mrb[24].mxu0 %vm290_vm2, %v1504_v11 }
 0x1f0   :  { %1677 = vmatprep.mubr.bf16.mxu0 %v6852_v0 }
 0x1f7   :  { %5460 = vmatmul.mubr.msk.bf16.gmra.mrb[28].mxu0 %vm290_vm2, %v1505_v28 }
 0x1f8   :  { %1687 = vmatprep.mubr.bf16.mxu0 %v6852_v0 }
 0x1ff   :  { %5461 = vmatmul.mubr.msk.bf16.gmra.mrb[32].mxu0 %vm290_vm2, %v1506_v53 }
 0x200   :  { %1697 = vmatprep.mubr.bf16.mxu0 %v6852_v0 }
 0x207   :  { %5462 = vmatmul.mubr.msk.bf16.gmra.mrb[36].mxu0 %vm290_vm2, %v1507_v48 }
 0x208   :  { %1707 = vmatprep.mubr.bf16.mxu0 %v6852_v0 }
 0x20f   :  { %5463 = vmatmul.mubr.msk.bf16.gmra.mrb[40].mxu0 %vm290_vm2, %v1508_v31  ;;  %v6553_v31 = vld [vmem:[#allocation3 + $0x68] sm:$0xff]  }
 0x210   :  { %1717 = vmatprep.mubr.bf16.mxu0 %v6852_v0 }
 0x217   :  { %5464 = vmatmul.mubr.msk.bf16.gmra.mrb[44].mxu0 %vm290_vm2, %v1509_v60 }
 0x292   :  { %v1609_v10 = vpop.f32.mrb[0].mxu0 }
 0x293   :  { %v1788_v63 = vadd.f32 %v7689_v8, %v1609_v10  ;;  %v1611_v16 = vpop.f32.mrb[1].mxu0 }
 0x294   :  { %v1789_v1 = vadd.f32 %v7691_v9, %v1611_v16  ;;  %v1613_v57 = vpop.f32.mrb[2].mxu0  ;;  %v6555_v16 = vld [vmem:[#allocation3 + $0x78] sm:$0xff]  }
 0x295   :  { %v1790_v5 = vadd.f32 %v7689_v8, %v1613_v57  ;;  %v1615_v12 = vpop.f32.mrb[3].mxu0  ;;  %v1836_v25 = vmax.f32 %v1788_v63, 0.0 }
 0x296   :  { %v1791_v15 = vadd.f32 %v7691_v9, %v1615_v12  ;;  %v1837_v20 = vmax.f32 %v1789_v1, 0.0 }
 0x297   :  { %v1838_v6 = vmax.f32 %v1790_v5, 0.0 }
 0x298   :  { %v1839_v21 = vmax.f32 %v1791_v15, 0.0 }
 0x299   :  { %v7697_v7 = vpack.c.bf16 %v1838_v6, %v1836_v25 }
 0x29a   :  { %v1619_v62 = vpop.f32.mrb[4].mxu0  ;;  %v7699_v13 = vpack.c.bf16 %v1839_v21, %v1837_v20  ;;  %v6556_v20 = vld [vmem:[#allocation3 + $0x80] sm:$0xff]  }
 0x29b   :  { %v1792_v2 = vadd.f32 %v7689_v8, %v1619_v62  ;;  %v1621_v3 = vpop.f32.mrb[5].mxu0 }
 0x29c   :  { %v1793_v4 = vadd.f32 %v7691_v9, %v1621_v3  ;;  %v1623_v11 = vpop.f32.mrb[6].mxu0  ;;  %5474 = vmatprep.mubr.msk.bf16.mxu1 %vm1980_vm5, %v7699_v13 }
 0x29d   :  { %v1794_v14 = vadd.f32 %v7689_v8, %v1623_v11  ;;  %v1625_v18 = vpop.f32.mrb[7].mxu0  ;;  %2050 = vmatmul.mubr.bf16.vlgmr.msra.gmra.mrb[0].mxu1 %v7697_v7  ;;  %v1840_v23 = vmax.f32 %v1792_v2, 0.0 }
 0x29e   :  { %v1795_v26 = vadd.f32 %v7691_v9, %v1625_v18  ;;  %2220 = vmatpush1.bf16.msra.mxu1 %v6549_v17  ;;  %v1841_v37 = vmax.f32 %v1793_v4, 0.0 }
 0x29f   :  { %v1842_v33 = vmax.f32 %v1794_v14, 0.0  ;;  %2221 = vmatprep.subr.bf16.mxu1 %v6852_v0  ;;  %v6557_v14 = vld [vmem:[#allocation3 + $0x88] sm:$0xff]  }
 0x2a0   :  { %v1843_v27 = vmax.f32 %v1795_v26, 0.0 }
 0x2a1   :  { %v7709_v28 = vpack.c.bf16 %v1842_v33, %v1840_v23 }
 0x2a2   :  { %v7711_v40 = vpack.c.bf16 %v1843_v27, %v1841_v37  ;;  %v1629_v41 = vpop.f32.mrb[8].mxu0  ;;  %2222 = vmatpush1.bf16.msra.mxu1 %v6550_v19 }
 0x2a3   :  { %v1796_v38 = vadd.f32 %v7689_v8, %v1629_v41  ;;  %v1631_v44 = vpop.f32.mrb[9].mxu0  ;;  %2223 = vmatprep.subr.bf16.mxu1 %v6852_v0 }
 0x2a4   :  { %v1797_v52 = vadd.f32 %v7691_v9, %v1631_v44  ;;  %v1633_v53 = vpop.f32.mrb[10].mxu0  ;;  %5475 = vmatprep.mubr.msk.bf16.mxu1 %vm1980_vm5, %v7711_v40 }
 0x2a5   :  { %v1798_v46 = vadd.f32 %v7689_v8, %v1633_v53  ;;  %v1635_v47 = vpop.f32.mrb[11].mxu0  ;;  %2058 = vmatmul.mubr.bf16.gmra.mrb[4].mxu1 %v7709_v28  ;;  %v1844_v34 = vmax.f32 %v1796_v38, 0.0 }
 0x2a6   :  { %v1799_v22 = vadd.f32 %v7691_v9, %v1635_v47  ;;  %2224 = vmatpush1.bf16.msra.mxu1 %v6551_v32  ;;  %v1845_v49 = vmax.f32 %v1797_v52, 0.0 }
 0x2a7   :  { %v1846_v48 = vmax.f32 %v1798_v46, 0.0  ;;  %2225 = vmatprep.subr.bf16.mxu1 %v6852_v0 }
 0x2a8   :  { %v1847_v59 = vmax.f32 %v1799_v22, 0.0 }
 0x2a9   :  { %v7722_v45 = vpack.c.bf16 %v1846_v48, %v1844_v34 }
 0x2aa   :  { %v7724_v29 = vpack.c.bf16 %v1847_v59, %v1845_v49  ;;  %v1639_v30 = vpop.f32.mrb[12].mxu0  ;;  %2226 = vmatpush1.bf16.msra.mxu1 %v6552_v24 }
 0x2ab   :  { %v1800_v35 = vadd.f32 %v7689_v8, %v1639_v30  ;;  %v1641_v43 = vpop.f32.mrb[13].mxu0  ;;  %2227 = vmatprep.subr.bf16.mxu1 %v6852_v0 }
 0x2ac   :  { %v1801_v36 = vadd.f32 %v7691_v9, %v1641_v43  ;;  %v1643_v39 = vpop.f32.mrb[14].mxu0  ;;  %5476 = vmatprep.mubr.msk.bf16.mxu1 %vm1980_vm5, %v7724_v29 }
 0x2ad   :  { %v1802_v42 = vadd.f32 %v7689_v8, %v1643_v39  ;;  %v1645_v60 = vpop.f32.mrb[15].mxu0  ;;  %2066 = vmatmul.mubr.bf16.gmra.mrb[8].mxu1 %v7722_v45  ;;  %v1848_v56 = vmax.f32 %v1800_v35, 0.0 }
 0x2ae   :  { %v1803_v61 = vadd.f32 %v7691_v9, %v1645_v60  ;;  %2228 = vmatpush1.bf16.msra.mxu1 %v6553_v31  ;;  %v1849_v54 = vmax.f32 %v1801_v36, 0.0 }
 0x2af   :  { %v1850_v50 = vmax.f32 %v1802_v42, 0.0  ;;  %2229 = vmatprep.subr.bf16.mxu1 %v6852_v0 }
 0x2b0   :  { %v1851_v58 = vmax.f32 %v1803_v61, 0.0 }
 0x2b1   :  { %v7735_v51 = vpack.c.bf16 %v1850_v50, %v1848_v56 }
 0x2b2   :  { %v7737_v10 = vpack.c.bf16 %v1851_v58, %v1849_v54  ;;  %v1649_v63 = vpop.f32.mrb[16].mxu0  ;;  %2230 = vmatpush1.bf16.msra.mxu1 %v6554_v55 }
 0x2b3   :  { %v1804_v1 = vadd.f32 %v7689_v8, %v1649_v63  ;;  %v1651_v57 = vpop.f32.mrb[17].mxu0  ;;  %2231 = vmatprep.subr.bf16.mxu1 %v6852_v0 }
 0x2b4   :  { %v1805_v5 = vadd.f32 %v7691_v9, %v1651_v57  ;;  %v1653_v12 = vpop.f32.mrb[18].mxu0  ;;  %5477 = vmatprep.mubr.msk.bf16.mxu1 %vm1980_vm5, %v7737_v10 }
 0x2b5   :  { %v1806_v15 = vadd.f32 %v7689_v8, %v1653_v12  ;;  %v1655_v25 = vpop.f32.mrb[19].mxu0  ;;  %2074 = vmatmul.mubr.bf16.gmra.mrb[12].mxu1 %v7735_v51  ;;  %v1852_v21 = vmax.f32 %v1804_v1, 0.0 }
 0x2b6   :  { %v1807_v6 = vadd.f32 %v7691_v9, %v1655_v25  ;;  %2232 = vmatpush1.bf16.msra.mxu1 %v6555_v16  ;;  %v1853_v17 = vmax.f32 %v1805_v5, 0.0 }
 0x2b7   :  { %v1854_v62 = vmax.f32 %v1806_v15, 0.0  ;;  %2233 = vmatprep.subr.bf16.mxu1 %v6852_v0 }
 0x2b8   :  { %v1855_v2 = vmax.f32 %v1807_v6, 0.0 }
 0x2b9   :  { %v7748_v3 = vpack.c.bf16 %v1854_v62, %v1852_v21 }
 0x2ba   :  { %v7750_v4 = vpack.c.bf16 %v1855_v2, %v1853_v17  ;;  %v1659_v11 = vpop.f32.mrb[20].mxu0  ;;  %2234 = vmatpush1.bf16.msra.mxu1 %v6556_v20 }
 0x2bb   :  { %v1808_v18 = vadd.f32 %v7689_v8, %v1659_v11  ;;  %v1661_v26 = vpop.f32.mrb[21].mxu0  ;;  %2235 = vmatprep.subr.bf16.mxu1 %v6852_v0 }
 0x2bc   :  { %v1809_v19 = vadd.f32 %v7691_v9, %v1661_v26  ;;  %v1663_v23 = vpop.f32.mrb[22].mxu0  ;;  %5478 = vmatprep.mubr.msk.bf16.mxu1 %vm1980_vm5, %v7750_v4 }
 0x2bd   :  { %v1810_v33 = vadd.f32 %v7689_v8, %v1663_v23  ;;  %v1665_v37 = vpop.f32.mrb[23].mxu0  ;;  %2082 = vmatmul.mubr.bf16.gmra.mrb[16].mxu1 %v7748_v3  ;;  %v1856_v41 = vmax.f32 %v1808_v18, 0.0 }
 0x2be   :  { %v1811_v27 = vadd.f32 %v7691_v9, %v1665_v37  ;;  %2236 = vmatpush1.bf16.msra.mxu1 %v6557_v14  ;;  %v1857_v38 = vmax.f32 %v1809_v19, 0.0 }
 0x2bf   :  { %v1858_v32 = vmax.f32 %v1810_v33, 0.0  ;;  %2441 = vmatprep.subr.bf16.mxu1 %v6852_v0 }
 0x2c0   :  { %v1859_v44 = vmax.f32 %v1811_v27, 0.0 }
 0x2c1   :  { %v7761_v52 = vpack.c.bf16 %v1858_v32, %v1856_v41 }
 0x2c2   :  { %v7763_v53 = vpack.c.bf16 %v1859_v44, %v1857_v38  ;;  %v1669_v46 = vpop.f32.mrb[24].mxu0 }
 0x2c3   :  { %v1812_v47 = vadd.f32 %v7689_v8, %v1669_v46  ;;  %v1671_v22 = vpop.f32.mrb[25].mxu0 }
 0x2c4   :  { %v1813_v24 = vadd.f32 %v7691_v9, %v1671_v22  ;;  %v1673_v34 = vpop.f32.mrb[26].mxu0  ;;  %5479 = vmatprep.mubr.msk.bf16.mxu1 %vm1980_vm5, %v7763_v53 }
 0x2c5   :  { %v1814_v48 = vadd.f32 %v7689_v8, %v1673_v34  ;;  %v1675_v49 = vpop.f32.mrb[27].mxu0  ;;  %2090 = vmatmul.mubr.bf16.gmra.mrb[20].mxu1 %v7761_v52  ;;  %v1860_v30 = vmax.f32 %v1812_v47, 0.0 }
 0x2c6   :  { %v1815_v59 = vadd.f32 %v7691_v9, %v1675_v49  ;;  %v1861_v35 = vmax.f32 %v1813_v24, 0.0 }
 0x2c7   :  { %v1862_v31 = vmax.f32 %v1814_v48, 0.0 }
 0x2c8   :  { %v1863_v43 = vmax.f32 %v1815_v59, 0.0 }
 0x2c9   :  { %v7772_v36 = vpack.c.bf16 %v1862_v31, %v1860_v30 }
 0x2ca   :  { %v7774_v39 = vpack.c.bf16 %v1863_v43, %v1861_v35  ;;  %v1679_v42 = vpop.f32.mrb[28].mxu0 }
 0x2cb   :  { %v1816_v60 = vadd.f32 %v7689_v8, %v1679_v42  ;;  %v1681_v61 = vpop.f32.mrb[29].mxu0 }
 0x2cc   :  { %v1817_v55 = vadd.f32 %v7691_v9, %v1681_v61  ;;  %v1683_v56 = vpop.f32.mrb[30].mxu0  ;;  %5480 = vmatprep.mubr.msk.bf16.mxu1 %vm1980_vm5, %v7774_v39 }
 0x2cd   :  { %v1818_v50 = vadd.f32 %v7689_v8, %v1683_v56  ;;  %v1685_v54 = vpop.f32.mrb[31].mxu0  ;;  %2098 = vmatmul.mubr.bf16.gmra.mrb[24].mxu1 %v7772_v36  ;;  %v1864_v63 = vmax.f32 %v1816_v60, 0.0 }
 0x2ce   :  { %v1819_v58 = vadd.f32 %v7691_v9, %v1685_v54  ;;  %v1865_v1 = vmax.f32 %v1817_v55, 0.0 }
 0x2cf   :  { %v1866_v16 = vmax.f32 %v1818_v50, 0.0 }
 0x2d0   :  { %v1867_v57 = vmax.f32 %v1819_v58, 0.0 }
 0x2d1   :  { %v7783_v5 = vpack.c.bf16 %v1866_v16, %v1864_v63 }
 0x2d2   :  { %v7785_v12 = vpack.c.bf16 %v1867_v57, %v1865_v1  ;;  %v1689_v15 = vpop.f32.mrb[32].mxu0 }
 0x2d3   :  { %v1820_v25 = vadd.f32 %v7689_v8, %v1689_v15  ;;  %v1691_v6 = vpop.f32.mrb[33].mxu0 }
 0x2d4   :  { %v1821_v20 = vadd.f32 %v7691_v9, %v1691_v6  ;;  %v1693_v21 = vpop.f32.mrb[34].mxu0  ;;  %5481 = vmatprep.mubr.msk.bf16.mxu1 %vm1980_vm5, %v7785_v12 }
 0x2d5   :  { %v1822_v62 = vadd.f32 %v7689_v8, %v1693_v21  ;;  %v1695_v17 = vpop.f32.mrb[35].mxu0  ;;  %2106 = vmatmul.mubr.bf16.gmra.mrb[28].mxu1 %v7783_v5  ;;  %v1868_v11 = vmax.f32 %v1820_v25, 0.0 }
 0x2d6   :  { %v1823_v2 = vadd.f32 %v7691_v9, %v1695_v17  ;;  %v1869_v18 = vmax.f32 %v1821_v20, 0.0 }
 0x2d7   :  { %v1870_v14 = vmax.f32 %v1822_v62, 0.0 }
 0x2d8   :  { %v1871_v26 = vmax.f32 %v1823_v2, 0.0 }
 0x2d9   :  { %v7794_v19 = vpack.c.bf16 %v1870_v14, %v1868_v11 }
 0x2da   :  { %v7796_v23 = vpack.c.bf16 %v1871_v26, %v1869_v18  ;;  %v1699_v33 = vpop.f32.mrb[36].mxu0 }
 0x2db   :  { %v1824_v37 = vadd.f32 %v7689_v8, %v1699_v33  ;;  %v1701_v27 = vpop.f32.mrb[37].mxu0 }
 0x2dc   :  { %v1825_v41 = vadd.f32 %v7691_v9, %v1701_v27  ;;  %v1703_v32 = vpop.f32.mrb[38].mxu0  ;;  %5482 = vmatprep.mubr.msk.bf16.mxu1 %vm1980_vm5, %v7796_v23 }
 0x2dd   :  { %v1826_v38 = vadd.f32 %v7689_v8, %v1703_v32  ;;  %v1705_v44 = vpop.f32.mrb[39].mxu0  ;;  %2114 = vmatmul.mubr.bf16.gmra.mrb[32].mxu1 %v7794_v19  ;;  %v1872_v47 = vmax.f32 %v1824_v37, 0.0 }
 0x2de   :  { %v1827_v46 = vadd.f32 %v7691_v9, %v1705_v44  ;;  %v1873_v24 = vmax.f32 %v1825_v41, 0.0 }
 0x2df   :  { %v1874_v22 = vmax.f32 %v1826_v38, 0.0 }
 0x2e0   :  { %v1875_v34 = vmax.f32 %v1827_v46, 0.0 }
 0x2e1   :  { %v1902_v48 = vpack.c.bf16 %v1874_v22, %v1872_v47 }
 0x2e2   :  { %v1903_v49 = vpack.c.bf16 %v1875_v34, %v1873_v24  ;;  %v1709_v59 = vpop.f32.mrb[40].mxu0  ;;  %v6560_v34 = vld [vmem:[%s8899_s4 + $0x4] ss:$8 sps:$4 sm:$0xff]  }
 0x2e3   :  { %v1828_v30 = vadd.f32 %v7689_v8, %v1709_v59  ;;  %v1711_v31 = vpop.f32.mrb[41].mxu0 }
 0x2e4   :  { %v1829_v35 = vadd.f32 %v7691_v9, %v1711_v31  ;;  %v1713_v43 = vpop.f32.mrb[42].mxu0  ;;  %5483 = vmatprep.mubr.msk.bf16.mxu1 %vm1980_vm5, %v1903_v49 }
 0x2e5   :  { %v1830_v42 = vadd.f32 %v7689_v8, %v1713_v43  ;;  %v1715_v60 = vpop.f32.mrb[43].mxu0  ;;  %2122 = vmatmul.mubr.bf16.gmra.mrb[36].mxu1 %v1902_v48  ;;  %v1876_v55 = vmax.f32 %v1828_v30, 0.0 }
 0x2e6   :  { %v1831_v61 = vadd.f32 %v7691_v9, %v1715_v60  ;;  %v1877_v50 = vmax.f32 %v1829_v35, 0.0 }
 0x2e7   :  { %v1878_v56 = vmax.f32 %v1830_v42, 0.0 }
 0x2e8   :  { %v1879_v54 = vmax.f32 %v1831_v61, 0.0 }
 0x2e9   :  { %v1904_v58 = vpack.c.bf16 %v1878_v56, %v1876_v55 }
 0x2ea   :  { %v1905_v63 = vpack.c.bf16 %v1879_v54, %v1877_v50  ;;  %v1719_v16 = vpop.f32.mrb[44].mxu0 }
 0x2eb   :  { %v1832_v1 = vadd.f32 %v7689_v8, %v1719_v16  ;;  %v1721_v57 = vpop.f32.mrb[45].mxu0 }
 0x2ec   :  { %v1833_v15 = vadd.f32 %v7691_v9, %v1721_v57  ;;  %v1723_v25 = vpop.f32.mrb[46].mxu0  ;;  %5484 = vmatprep.mubr.msk.bf16.mxu1 %vm1980_vm5, %v1905_v63 }
 0x2ed   :  { %v1834_v6 = vadd.f32 %v7689_v8, %v1723_v25  ;;  %v1725_v20 = vpop.f32.mrb[47].mxu0  ;;  %2130 = vmatmul.mubr.bf16.gmra.mrb[40].mxu1 %v1904_v58  ;;  %v1880_v62 = vmax.f32 %v1832_v1, 0.0 }
 0x2ee   :  { %v1835_v21 = vadd.f32 %v7691_v9, %v1725_v20  ;;  %v1881_v2 = vmax.f32 %v1833_v15, 0.0 }
 0x2ef   :  { %v1882_v17 = vmax.f32 %v1834_v6, 0.0 }
 0x2f0   :  { %v1883_v11 = vmax.f32 %v1835_v21, 0.0 }
 0x2f1   :  { %v1906_v14 = vpack.c.bf16 %v1882_v17, %v1880_v62 }
 0x2f2   :  { %v1907_v18 = vpack.c.bf16 %v1883_v11, %v1881_v2 }
 0x2f4   :  { %5485 = vmatprep.mubr.msk.bf16.mxu1 %vm1980_vm5, %v1907_v18 }
 0x2f5   :  { %2138 = vmatmul.mubr.bf16.gmra.mrb[44].mxu1 %v1906_v14 }
 0x2f6   :  { %5495 = vmatprep.mubr.msk.bf16.mxu1 %vm1980_vm5, %v7699_v13 }
 0x2fd   :  { %2252 = vmatmul.mubr.bf16.vlgmr.msra.gmra.mrb[48].mxu1 %v7697_v7 }
 0x2fe   :  { %5496 = vmatprep.mubr.msk.bf16.mxu1 %vm1980_vm5, %v7711_v40 }
 0x305   :  { %2260 = vmatmul.mubr.bf16.gmra.mrb[52].mxu1 %v7709_v28 }
 0x306   :  { %5497 = vmatprep.mubr.msk.bf16.mxu1 %vm1980_vm5, %v7724_v29 }
 0x30d   :  { %2268 = vmatmul.mubr.bf16.gmra.mrb[56].mxu1 %v7722_v45 }
 0x30e   :  { %5498 = vmatprep.mubr.msk.bf16.mxu1 %vm1980_vm5, %v7737_v10 }
 0x315   :  { %2276 = vmatmul.mubr.bf16.gmra.mrb[60].mxu1 %v7735_v51 }
 0x316   :  { %5499 = vmatprep.mubr.msk.bf16.mxu1 %vm1980_vm5, %v7750_v4 }
 0x31d   :  { %2284 = vmatmul.mubr.bf16.gmra.mrb[64].mxu1 %v7748_v3 }
 0x31e   :  { %5500 = vmatprep.mubr.msk.bf16.mxu1 %vm1980_vm5, %v7763_v53 }
 0x325   :  { %2292 = vmatmul.mubr.bf16.gmra.mrb[68].mxu1 %v7761_v52 }
 0x326   :  { %5501 = vmatprep.mubr.msk.bf16.mxu1 %vm1980_vm5, %v7774_v39 }
 0x32d   :  { %2300 = vmatmul.mubr.bf16.gmra.mrb[72].mxu1 %v7772_v36 }
 0x32e   :  { %5502 = vmatprep.mubr.msk.bf16.mxu1 %vm1980_vm5, %v7785_v12 }
 0x335   :  { %2308 = vmatmul.mubr.bf16.gmra.mrb[76].mxu1 %v7783_v5 }
 0x336   :  { %5503 = vmatprep.mubr.msk.bf16.mxu1 %vm1980_vm5, %v7796_v23 }
 0x33d   :  { %2316 = vmatmul.mubr.bf16.gmra.mrb[80].mxu1 %v7794_v19 }
 0x33e   :  { %5504 = vmatprep.mubr.msk.bf16.mxu1 %vm1980_vm5, %v1903_v49  ;;  %v6563_v49 = vld [vmem:[%s8899_s4 + $0x144] ss:$8 sps:$4 sm:$0xff]  }
 0x33f   :  { %5642 = vmatprep.mubr.msk.bf16.mxu0 %vm2428_vm6, %v6563_v49 }
 0x345   :  { %2324 = vmatmul.mubr.bf16.gmra.mrb[84].mxu1 %v1902_v48 }
 0x346   :  { %5505 = vmatprep.mubr.msk.bf16.mxu1 %vm1980_vm5, %v1905_v63 }
 0x34d   :  { %2332 = vmatmul.mubr.bf16.gmra.mrb[88].mxu1 %v1904_v58 }
 0x34e   :  { %5506 = vmatprep.mubr.msk.bf16.mxu1 %vm1980_vm5, %v1907_v18 }
 0x355   :  { %2340 = vmatmul.mubr.bf16.gmra.mrb[92].mxu1 %v1906_v14 }
 0x356   :  { %5515 = vmatprep.mubr.msk.bf16.mxu1 %vm2428_vm6, %v6560_v34 }
 0x370   :  { %v2051_v8 = vpop.f32.mrb[0].mxu1 }
 0x371   :  { %v2053_v9 = vpop.f32.mrb[1].mxu1 }
 0x372   :  { %v2054_v7 = vpop.f32.mrb[2].mxu1 }
 0x373   :  { %v2056_v13 = vpop.f32.mrb[3].mxu1 }
 0x378   :  { %v7846_v28 = vpop.f32.mrb[4].mxu1 }
 0x379   :  { %v2061_v40 = vpop.f32.mrb[5].mxu1 }
 0x37a   :  { %v7848_v45 = vpop.f32.mrb[6].mxu1 }
 0x37b   :  { %v2064_v29 = vpop.f32.mrb[7].mxu1 }
 0x380   :  { %v7850_v51 = vpop.f32.mrb[8].mxu1 }
 0x381   :  { %v2069_v10 = vpop.f32.mrb[9].mxu1 }
 0x382   :  { %v7852_v3 = vpop.f32.mrb[10].mxu1 }
 0x383   :  { %v2072_v4 = vpop.f32.mrb[11].mxu1 }
 0x388   :  { %v7854_v52 = vpop.f32.mrb[12].mxu1 }
 0x389   :  { %v2077_v53 = vpop.f32.mrb[13].mxu1 }
 0x38a   :  { %v7856_v36 = vpop.f32.mrb[14].mxu1 }
 0x38b   :  { %v2080_v39 = vpop.f32.mrb[15].mxu1 }
 0x390   :  { %v7858_v5 = vpop.f32.mrb[16].mxu1 }
 0x391   :  { %v2085_v12 = vpop.f32.mrb[17].mxu1 }
 0x392   :  { %v7860_v26 = vpop.f32.mrb[18].mxu1 }
 0x393   :  { %v2088_v19 = vpop.f32.mrb[19].mxu1 }
 0x398   :  { %v7862_v23 = vpop.f32.mrb[20].mxu1 }
 0x399   :  { %v2093_v33 = vpop.f32.mrb[21].mxu1 }
 0x39a   :  { %v7864_v37 = vpop.f32.mrb[22].mxu1 }
 0x39b   :  { %v2096_v27 = vpop.f32.mrb[23].mxu1 }
 0x3a0   :  { %v7866_v41 = vpop.f32.mrb[24].mxu1 }
 0x3a1   :  { %v2101_v32 = vpop.f32.mrb[25].mxu1 }
 0x3a2   :  { %v7868_v38 = vpop.f32.mrb[26].mxu1 }
 0x3a3   :  { %v2104_v44 = vpop.f32.mrb[27].mxu1 }
 0x3a8   :  { %v7870_v46 = vpop.f32.mrb[28].mxu1 }
 0x3a9   :  { %v2109_v47 = vpop.f32.mrb[29].mxu1 }
 0x3aa   :  { %v7872_v22 = vpop.f32.mrb[30].mxu1 }
 0x3ab   :  { %v2112_v24 = vpop.f32.mrb[31].mxu1 }
 0x3b0   :  { %v7877_v48 = vpop.f32.mrb[32].mxu1 }
 0x3b1   :  { %v2117_v59 = vpop.f32.mrb[33].mxu1 }
 0x3b2   :  { %v7883_v30 = vpop.f32.mrb[34].mxu1 }
 0x3b3   :  { %v2120_v31 = vpop.f32.mrb[35].mxu1 }
 0x3b8   :  { %v7886_v35 = vpop.f32.mrb[36].mxu1 }
 0x3b9   :  { %v2125_v43 = vpop.f32.mrb[37].mxu1 }
 0x3ba   :  { %v7888_v42 = vpop.f32.mrb[38].mxu1 }
 0x3bb   :  { %v2128_v60 = vpop.f32.mrb[39].mxu1 }
 0x3c0   :  { %v7890_v61 = vpop.f32.mrb[40].mxu1 }
 0x3c1   :  { %v2133_v55 = vpop.f32.mrb[41].mxu1 }
 0x3c2   :  { %v7892_v56 = vpop.f32.mrb[42].mxu1 }
 0x3c3   :  { %v2136_v50 = vpop.f32.mrb[43].mxu1 }
 0x3c8   :  { %v7894_v54 = vpop.f32.mrb[44].mxu1 }
 0x3c9   :  { %v2141_v58 = vpop.f32.mrb[45].mxu1 }
 0x3ca   :  { %v7896_v63 = vpop.f32.mrb[46].mxu1 }
 0x3cb   :  { %v2144_v16 = vpop.f32.mrb[47].mxu1 }
 0x3d0   :  { %v2253_v1 = vpop.f32.mrb[48].mxu1 }
 0x3d1   :  { %v2348_v57 = vmax.f32 %v2051_v8, %v2253_v1  ;;  %v2255_v15 = vpop.f32.mrb[49].mxu1 }
 0x3d2   :  { %v2256_v25 = vpop.f32.mrb[50].mxu1 }
 0x3d3   :  { %v2349_v6 = vmax.f32 %v2054_v7, %v2256_v25  ;;  %v2258_v20 = vpop.f32.mrb[51].mxu1 }
 0x3d5   :  { %v7898_v21 = vpack.c.bf16 %v2349_v6, %v2348_v57 }
 0x3d7   :  { %2442 = vmatpush1.bf16.msra.mxu1 %v7898_v21  ;;  %3310 = vmatpush1.bf16.msra.mxu0 %v7898_v21 }
 0x3d8   :  { %v2261_v62 = vpop.f32.mrb[52].mxu1  ;;  %2443 = vmatprep.subr.bf16.mxu1 %v6852_v0  ;;  %3311 = vmatprep.subr.bf16.mxu0 %v6852_v0 }
 0x3d9   :  { %v2350_v17 = vmax.f32 %v7846_v28, %v2261_v62  ;;  %v2263_v2 = vpop.f32.mrb[53].mxu1 }
 0x3da   :  { %v2264_v11 = vpop.f32.mrb[54].mxu1 }
 0x3db   :  { %v2351_v14 = vmax.f32 %v7848_v45, %v2264_v11  ;;  %v2266_v18 = vpop.f32.mrb[55].mxu1 }
 0x3dd   :  { %v7906_v8 = vpack.c.bf16 %v2351_v14, %v2350_v17 }
 0x3df   :  { %2444 = vmatpush1.bf16.msra.mxu1 %v7906_v8  ;;  %3312 = vmatpush1.bf16.msra.mxu0 %v7906_v8 }
 0x3e0   :  { %v2269_v9 = vpop.f32.mrb[56].mxu1  ;;  %2445 = vmatprep.subr.bf16.mxu1 %v6852_v0  ;;  %3313 = vmatprep.subr.bf16.mxu0 %v6852_v0 }
 0x3e1   :  { %v2352_v7 = vmax.f32 %v7850_v51, %v2269_v9  ;;  %v2271_v13 = vpop.f32.mrb[57].mxu1 }
 0x3e2   :  { %v2272_v28 = vpop.f32.mrb[58].mxu1 }
 0x3e3   :  { %v2353_v40 = vmax.f32 %v7852_v3, %v2272_v28  ;;  %v2274_v29 = vpop.f32.mrb[59].mxu1 }
 0x3e5   :  { %v7914_v45 = vpack.c.bf16 %v2353_v40, %v2352_v7 }
 0x3e7   :  { %2446 = vmatpush1.bf16.msra.mxu1 %v7914_v45  ;;  %3314 = vmatpush1.bf16.msra.mxu0 %v7914_v45 }
 0x3e8   :  { %v2277_v10 = vpop.f32.mrb[60].mxu1  ;;  %2447 = vmatprep.subr.bf16.mxu1 %v6852_v0  ;;  %3315 = vmatprep.subr.bf16.mxu0 %v6852_v0 }
 0x3e9   :  { %v2354_v4 = vmax.f32 %v7854_v52, %v2277_v10  ;;  %v2279_v53 = vpop.f32.mrb[61].mxu1 }
 0x3ea   :  { %v2280_v51 = vpop.f32.mrb[62].mxu1 }
 0x3eb   :  { %v2355_v39 = vmax.f32 %v7856_v36, %v2280_v51  ;;  %v2282_v12 = vpop.f32.mrb[63].mxu1 }
 0x3ec   :  { %v6558_v12 = vld [vmem:[%s8899_s4] ss:$8 sps:$4 sm:$0xff]  }
 0x3ed   :  { %v7922_v3 = vpack.c.bf16 %v2355_v39, %v2354_v4 }
 0x3ef   :  { %2448 = vmatpush1.bf16.msra.mxu1 %v7922_v3  ;;  %3316 = vmatpush1.bf16.msra.mxu0 %v7922_v3 }
 0x3f0   :  { %v2285_v19 = vpop.f32.mrb[64].mxu1  ;;  %2449 = vmatprep.subr.bf16.mxu1 %v6852_v0  ;;  %3317 = vmatprep.subr.bf16.mxu0 %v6852_v0 }
 0x3f1   :  { %v2356_v33 = vmax.f32 %v7858_v5, %v2285_v19  ;;  %v2287_v27 = vpop.f32.mrb[65].mxu1  ;;  %v6561_v19 = vld [vmem:[%s8899_s4 + $0x140] ss:$8 sps:$4 sm:$0xff]  }
 0x3f2   :  { %v2288_v52 = vpop.f32.mrb[66].mxu1  ;;  %v6569_v27 = vld [vmem:[%s8899_s4 + $0x150] ss:$8 sps:$4 sm:$0xff]  }
 0x3f3   :  { %v2357_v32 = vmax.f32 %v7860_v26, %v2288_v52  ;;  %v2290_v44 = vpop.f32.mrb[67].mxu1  ;;  %v6570_v52 = vld [vmem:[%s8899_s4 + $0x24] ss:$8 sps:$4 sm:$0xff]  }
 0x3f4   :  { %v6572_v44 = vld [vmem:[%s8899_s4 + $0x20] ss:$8 sps:$4 sm:$0xff]  }
 0x3f5   :  { %v7930_v36 = vpack.c.bf16 %v2357_v32, %v2356_v33  ;;  %v6566_v33 = vld [vmem:[%s8899_s4 + $0x10] ss:$8 sps:$4 sm:$0xff]   ;;  %v6573_v32 = vld [vmem:[%s8899_s4 + $0x164] ss:$8 sps:$4 sm:$0xff]  }
 0x3f7   :  { %2450 = vmatpush1.bf16.msra.mxu1 %v7930_v36  ;;  %3318 = vmatpush1.bf16.msra.mxu0 %v7930_v36 }
 0x3f8   :  { %v2293_v47 = vpop.f32.mrb[68].mxu1  ;;  %2451 = vmatprep.subr.bf16.mxu1 %v6852_v0  ;;  %3319 = vmatprep.subr.bf16.mxu0 %v6852_v0 }
 0x3f9   :  { %v2358_v24 = vmax.f32 %v7862_v23, %v2293_v47  ;;  %v2295_v34 = vpop.f32.mrb[69].mxu1  ;;  %v6575_v47 = vld [vmem:[%s8899_s4 + $0x160] ss:$8 sps:$4 sm:$0xff]  }
 0x3fa   :  { %v2296_v5 = vpop.f32.mrb[70].mxu1  ;;  %v6579_v34 = vld [vmem:[%s8899_s4 + $0x174] ss:$8 sps:$4 sm:$0xff]  }
 0x3fb   :  { %v2359_v49 = vmax.f32 %v7864_v37, %v2296_v5  ;;  %v2298_v59 = vpop.f32.mrb[71].mxu1  ;;  %v6578_v5 = vld [vmem:[%s8899_s4 + $0x30] ss:$8 sps:$4 sm:$0xff]  }
 0x3fc   :  { %v6584_v59 = vld [vmem:[%s8899_s4 + $0x44] ss:$8 sps:$4 sm:$0xff]  }
 0x3fd   :  { %v7938_v26 = vpack.c.bf16 %v2359_v49, %v2358_v24  ;;  %v6576_v24 = vld [vmem:[%s8899_s4 + $0x34] ss:$8 sps:$4 sm:$0xff]   ;;  %v6581_v49 = vld [vmem:[%s8899_s4 + $0x170] ss:$8 sps:$4 sm:$0xff]  }
 0x3ff   :  { %2452 = vmatpush1.bf16.msra.mxu1 %v7938_v26  ;;  %3320 = vmatpush1.bf16.msra.mxu0 %v7938_v26 }
 0x400   :  { %v2301_v31 = vpop.f32.mrb[72].mxu1  ;;  %2453 = vmatprep.subr.bf16.mxu1 %v6852_v0  ;;  %3321 = vmatprep.subr.bf16.mxu0 %v6852_v0 }
 0x401   :  { %v2360_v43 = vmax.f32 %v7866_v41, %v2301_v31  ;;  %v2303_v60 = vpop.f32.mrb[73].mxu1  ;;  %v6587_v31 = vld [vmem:[%s8899_s4 + $0x184] ss:$8 sps:$4 sm:$0xff]  }
 0x402   :  { %v2304_v23 = vpop.f32.mrb[74].mxu1  ;;  %v6585_v60 = vld [vmem:[%s8899_s4 + $0x180] ss:$8 sps:$4 sm:$0xff]  }
 0x403   :  { %v2361_v55 = vmax.f32 %v7868_v38, %v2304_v23  ;;  %v2306_v50 = vpop.f32.mrb[75].mxu1  ;;  %v6588_v23 = vld [vmem:[%s8899_s4 + $0x54] ss:$8 sps:$4 sm:$0xff]  }
 0x404   :  { %v6590_v50 = vld [vmem:[%s8899_s4 + $0x50] ss:$8 sps:$4 sm:$0xff]  }
 0x405   :  { %v7946_v37 = vpack.c.bf16 %v2361_v55, %v2360_v43  ;;  %v6582_v43 = vld [vmem:[%s8899_s4 + $0x40] ss:$8 sps:$4 sm:$0xff]   ;;  %v6597_v55 = vld [vmem:[%s8899_s4 + $0x194] ss:$8 sps:$4 sm:$0xff]  }
 0x407   :  { %2454 = vmatpush1.bf16.msra.mxu1 %v7946_v37  ;;  %3322 = vmatpush1.bf16.msra.mxu0 %v7946_v37 }
 0x408   :  { %v2309_v58 = vpop.f32.mrb[76].mxu1  ;;  %2455 = vmatprep.subr.bf16.mxu1 %v6852_v0  ;;  %3323 = vmatprep.subr.bf16.mxu0 %v6852_v0 }
 0x409   :  { %v2362_v16 = vmax.f32 %v7870_v46, %v2309_v58  ;;  %v2311_v1 = vpop.f32.mrb[77].mxu1  ;;  %v6599_v58 = vld [vmem:[%s8899_s4 + $0x190] ss:$8 sps:$4 sm:$0xff]  }
 0x40a   :  { %v2312_v41 = vpop.f32.mrb[78].mxu1  ;;  %v6600_v1 = vld [vmem:[%s8899_s4 + $0x1a4] ss:$8 sps:$4 sm:$0xff]  }
 0x40b   :  { %v2363_v57 = vmax.f32 %v7872_v22, %v2312_v41  ;;  %v2314_v15 = vpop.f32.mrb[79].mxu1  ;;  %v6593_v41 = vld [vmem:[%s8899_s4 + $0x60] ss:$8 sps:$4 sm:$0xff]  }
 0x40c   :  { %v6594_v15 = vld [vmem:[%s8899_s4 + $0x74] ss:$8 sps:$4 sm:$0xff]  }
 0x40d   :  { %v7954_v38 = vpack.c.bf16 %v2363_v57, %v2362_v16  ;;  %v6591_v16 = vld [vmem:[%s8899_s4 + $0x64] ss:$8 sps:$4 sm:$0xff]   ;;  %v6602_v57 = vld [vmem:[%s8899_s4 + $0x1a0] ss:$8 sps:$4 sm:$0xff]  }
 0x40f   :  { %2456 = vmatpush1.bf16.msra.mxu1 %v7954_v38  ;;  %3324 = vmatpush1.bf16.msra.mxu0 %v7954_v38 }
 0x410   :  { %v2317_v25 = vpop.f32.mrb[80].mxu1  ;;  %2457 = vmatprep.subr.bf16.mxu1 %v6852_v0  ;;  %3325 = vmatprep.subr.bf16.mxu0 %v6852_v0 }
 0x411   :  { %v2364_v6 = vmax.f32 %v7877_v48, %v2317_v25  ;;  %v2319_v20 = vpop.f32.mrb[81].mxu1  ;;  %v6603_v25 = vld [vmem:[%s8899_s4 + $0x1b4] ss:$8 sps:$4 sm:$0xff]  }
 0x412   :  { %v2320_v46 = vpop.f32.mrb[82].mxu1  ;;  %v6605_v20 = vld [vmem:[%s8899_s4 + $0x1b0] ss:$8 sps:$4 sm:$0xff]  }
 0x413   :  { %v2365_v62 = vmax.f32 %v7883_v30, %v2320_v46  ;;  %v2322_v17 = vpop.f32.mrb[83].mxu1  ;;  %v6608_v46 = vld [vmem:[%s8899_s4 + $0x84] ss:$8 sps:$4 sm:$0xff]  }
 0x414   :  { %v6606_v17 = vld [vmem:[%s8899_s4 + $0x80] ss:$8 sps:$4 sm:$0xff]  }
 0x415   :  { %v7962_v22 = vpack.c.bf16 %v2365_v62, %v2364_v6  ;;  %v6596_v6 = vld [vmem:[%s8899_s4 + $0x70] ss:$8 sps:$4 sm:$0xff]   ;;  %v6611_v62 = vld [vmem:[%s8899_s4 + $0x204] ss:$8 sps:$4 sm:$0xff]  }
 0x417   :  { %2458 = vmatpush1.bf16.msra.mxu1 %v7962_v22  ;;  %3326 = vmatpush1.bf16.msra.mxu0 %v7962_v22 }
 0x418   :  { %v2325_v2 = vpop.f32.mrb[84].mxu1  ;;  %2459 = vmatprep.subr.bf16.mxu1 %v6852_v0  ;;  %3327 = vmatprep.subr.bf16.mxu0 %v6852_v0 }
 0x419   :  { %v2366_v11 = vmax.f32 %v7886_v35, %v2325_v2  ;;  %v2327_v14 = vpop.f32.mrb[85].mxu1  ;;  %v6609_v2 = vld [vmem:[%s8899_s4 + $0x200] ss:$8 sps:$4 sm:$0xff]  }
 0x41a   :  { %v2328_v48 = vpop.f32.mrb[86].mxu1  ;;  %v6614_v14 = vld [vmem:[%s8899_s4 + $0x90] ss:$8 sps:$4 sm:$0xff]  }
 0x41b   :  { %v2367_v18 = vmax.f32 %v7888_v42, %v2328_v48  ;;  %v2330_v9 = vpop.f32.mrb[87].mxu1  ;;  %v6615_v48 = vld [vmem:[%s8899_s4 + $0xa4] ss:$8 sps:$4 sm:$0xff]  }
 0x41c   :  { %v6618_v9 = vld [vmem:[%s8899_s4 + $0xb4] ss:$8 sps:$4 sm:$0xff]  }
 0x41d   :  { %v7970_v30 = vpack.c.bf16 %v2367_v18, %v2366_v11  ;;  %v6612_v11 = vld [vmem:[%s8899_s4 + $0x94] ss:$8 sps:$4 sm:$0xff]   ;;  %v6617_v18 = vld [vmem:[%s8899_s4 + $0xa0] ss:$8 sps:$4 sm:$0xff]  }
 0x41f   :  { %2460 = vmatpush1.bf16.msra.mxu1 %v7970_v30  ;;  %3328 = vmatpush1.bf16.msra.mxu0 %v7970_v30 }
 0x420   :  { %v2333_v7 = vpop.f32.mrb[88].mxu1  ;;  %2461 = vmatprep.subr.bf16.mxu1 %v6852_v0  ;;  %3329 = vmatprep.subr.bf16.mxu0 %v6852_v0 }
 0x421   :  { %v2368_v13 = vmax.f32 %v7890_v61, %v2333_v7  ;;  %v2335_v28 = vpop.f32.mrb[89].mxu1  ;;  %v6620_v7 = vld [vmem:[%s8899_s4 + $0xb0] ss:$8 sps:$4 sm:$0xff]  }
 0x422   :  { %v2336_v35 = vpop.f32.mrb[90].mxu1  ;;  %v6621_v28 = vld [vmem:[%s8899_s4 + $0xc0] ss:$8 sps:$4 sm:$0xff]  }
 0x423   :  { %v2369_v40 = vmax.f32 %v7892_v56, %v2336_v35  ;;  %v2338_v29 = vpop.f32.mrb[91].mxu1  ;;  %v6624_v35 = vld [vmem:[%s8899_s4 + $0xd4] ss:$8 sps:$4 sm:$0xff]  }
 0x424   :  { %v6627_v29 = vld [vmem:[%s8899_s4 + $0xe4] ss:$8 sps:$4 sm:$0xff]  }
 0x425   :  { %v7978_v42 = vpack.c.bf16 %v2369_v40, %v2368_v13  ;;  %v6623_v13 = vld [vmem:[%s8899_s4 + $0xc4] ss:$8 sps:$4 sm:$0xff]   ;;  %v6626_v40 = vld [vmem:[%s8899_s4 + $0xd0] ss:$8 sps:$4 sm:$0xff]  }
 0x427   :  { %2462 = vmatpush1.bf16.msra.mxu1 %v7978_v42  ;;  %3330 = vmatpush1.bf16.msra.mxu0 %v7978_v42 }
 0x428   :  { %v2341_v10 = vpop.f32.mrb[92].mxu1  ;;  %2463 = vmatprep.subr.bf16.mxu1 %v6852_v0  ;;  %3331 = vmatprep.subr.bf16.mxu0 %v6852_v0 }
 0x429   :  { %v2370_v4 = vmax.f32 %v7894_v54, %v2341_v10  ;;  %v2343_v53 = vpop.f32.mrb[93].mxu1  ;;  %v6564_v54 = vld [vmem:[%s8899_s4 + $0x14] ss:$8 sps:$4 sm:$0xff]   ;;  %v6629_v10 = vld [vmem:[%s8899_s4 + $0xe0] ss:$8 sps:$4 sm:$0xff]  }
 0x42a   :  { %v2344_v61 = vpop.f32.mrb[94].mxu1  ;;  %v6632_v53 = vld [vmem:[%s8899_s4 + $0xf0] ss:$8 sps:$4 sm:$0xff]  }
 0x42b   :  { %v2371_v51 = vmax.f32 %v7896_v63, %v2344_v61  ;;  %v2346_v39 = vpop.f32.mrb[95].mxu1  ;;  %v6567_v63 = vld [vmem:[%s8899_s4 + $0x154] ss:$8 sps:$4 sm:$0xff]   ;;  %v6633_v61 = vld [vmem:[%s8900_s5 + $0x24] sm:$0xff]  }
 0x42d   :  { %v7986_v56 = vpack.c.bf16 %v2371_v51, %v2370_v4  ;;  %v6630_v4 = vld [vmem:[%s8899_s4 + $0xf4] ss:$8 sps:$4 sm:$0xff]   ;;  %v6634_v51 = vld [vmem:[%s8900_s5 + $0x2c] sm:$0xff]  }
 0x42f   :  { %2464 = vmatpush1.bf16.msra.mxu1 %v7986_v56  ;;  %3332 = vmatpush1.bf16.msra.mxu0 %v7986_v56 }
 0x430   :  { %2563 = vmatprep.subr.bf16.mxu1 %v6852_v0  ;;  %3568 = vmatprep.subr.bf16.mxu0 %v6852_v0 }
 0x432   :  { %2474 = vmatmul.mubr.bf16.vlgmr.msra.gmra.mrb[96].mxu1 %v6558_v12  ;;  %3342 = vmatmul.mubr.bf16.vlgmr.msra.gmra.mrb[48].mxu0 %v6561_v19 }
 0x433   :  { %2564 = vmatpush1.bf16.msra.mxu1 %v7898_v21  ;;  %3569 = vmatpush1.bf16.msra.mxu0 %v7898_v21 }
 0x434   :  { %2565 = vmatprep.subr.bf16.mxu1 %v6852_v0  ;;  %3570 = vmatprep.subr.bf16.mxu0 %v6852_v0 }
 0x435   :  { %5516 = vmatprep.mubr.msk.bf16.mxu1 %vm2428_vm6, %v6564_v54  ;;  %5643 = vmatprep.mubr.msk.bf16.mxu0 %vm2428_vm6, %v6567_v63 }
 0x437   :  { %2566 = vmatpush1.bf16.msra.mxu1 %v7906_v8  ;;  %3571 = vmatpush1.bf16.msra.mxu0 %v7906_v8 }
 0x438   :  { %2567 = vmatprep.subr.bf16.mxu1 %v6852_v0  ;;  %3572 = vmatprep.subr.bf16.mxu0 %v6852_v0 }
 0x43a   :  { %2482 = vmatmul.mubr.bf16.gmra.mrb[100].mxu1 %v6566_v33  ;;  %3350 = vmatmul.mubr.bf16.gmra.mrb[52].mxu0 %v6569_v27 }
 0x43b   :  { %2568 = vmatpush1.bf16.msra.mxu1 %v7914_v45  ;;  %3573 = vmatpush1.bf16.msra.mxu0 %v7914_v45 }
 0x43c   :  { %2569 = vmatprep.subr.bf16.mxu1 %v6852_v0  ;;  %3574 = vmatprep.subr.bf16.mxu0 %v6852_v0 }
 0x43d   :  { %5517 = vmatprep.mubr.msk.bf16.mxu1 %vm2428_vm6, %v6570_v52  ;;  %5644 = vmatprep.mubr.msk.bf16.mxu0 %vm2428_vm6, %v6573_v32 }
 0x43f   :  { %2570 = vmatpush1.bf16.msra.mxu1 %v7922_v3  ;;  %3575 = vmatpush1.bf16.msra.mxu0 %v7922_v3 }
 0x440   :  { %2571 = vmatprep.subr.bf16.mxu1 %v6852_v0  ;;  %3576 = vmatprep.subr.bf16.mxu0 %v6852_v0 }
 0x442   :  { %2490 = vmatmul.mubr.bf16.gmra.mrb[104].mxu1 %v6572_v44  ;;  %3358 = vmatmul.mubr.bf16.gmra.mrb[56].mxu0 %v6575_v47  ;;  %v6635_v47 = vld [vmem:[%s8900_s5 + $0x34] sm:$0xff]  }
 0x443   :  { %2572 = vmatpush1.bf16.msra.mxu1 %v7930_v36  ;;  %3577 = vmatpush1.bf16.msra.mxu0 %v7930_v36 }
 0x444   :  { %2573 = vmatprep.subr.bf16.mxu1 %v6852_v0  ;;  %3578 = vmatprep.subr.bf16.mxu0 %v6852_v0 }
 0x445   :  { %5518 = vmatprep.mubr.msk.bf16.mxu1 %vm2428_vm6, %v6576_v24  ;;  %5645 = vmatprep.mubr.msk.bf16.mxu0 %vm2428_vm6, %v6579_v34 }
 0x447   :  { %2574 = vmatpush1.bf16.msra.mxu1 %v7938_v26  ;;  %3579 = vmatpush1.bf16.msra.mxu0 %v7938_v26 }
 0x448   :  { %2575 = vmatprep.subr.bf16.mxu1 %v6852_v0  ;;  %3580 = vmatprep.subr.bf16.mxu0 %v6852_v0 }
 0x44a   :  { %2498 = vmatmul.mubr.bf16.gmra.mrb[108].mxu1 %v6578_v5  ;;  %3366 = vmatmul.mubr.bf16.gmra.mrb[60].mxu0 %v6581_v49  ;;  %v6636_v5 = vld [vmem:[%s8900_s5 + $0x3c] sm:$0xff]  }
 0x44b   :  { %2576 = vmatpush1.bf16.msra.mxu1 %v7946_v37  ;;  %3581 = vmatpush1.bf16.msra.mxu0 %v7946_v37 }
 0x44c   :  { %2577 = vmatprep.subr.bf16.mxu1 %v6852_v0  ;;  %3582 = vmatprep.subr.bf16.mxu0 %v6852_v0 }
 0x44d   :  { %5535 = vmatprep.mubr.msk.bf16.mxu1 %vm2428_vm6, %v6584_v59  ;;  %5680 = vmatprep.mubr.msk.bf16.mxu0 %vm2428_vm6, %v6587_v31  ;;  %v6637_v31 = vld [vmem:[%s8900_s5 + $0x44] ss:$0 sps:$4 sm:$0xff]  }
 0x44f   :  { %2578 = vmatpush1.bf16.msra.mxu1 %v7954_v38  ;;  %3583 = vmatpush1.bf16.msra.mxu0 %v7954_v38 }
 0x450   :  { %2579 = vmatprep.subr.bf16.mxu1 %v6852_v0  ;;  %3584 = vmatprep.subr.bf16.mxu0 %v6852_v0 }
 0x453   :  { %2580 = vmatpush1.bf16.msra.mxu1 %v7962_v22  ;;  %3585 = vmatpush1.bf16.msra.mxu0 %v7962_v22 }
 0x454   :  { %2581 = vmatprep.subr.bf16.mxu1 %v6852_v0  ;;  %3586 = vmatprep.subr.bf16.mxu0 %v6852_v0 }
 0x457   :  { %2582 = vmatpush1.bf16.msra.mxu1 %v7970_v30  ;;  %3587 = vmatpush1.bf16.msra.mxu0 %v7970_v30 }
 0x458   :  { %2583 = vmatprep.subr.bf16.mxu1 %v6852_v0  ;;  %3588 = vmatprep.subr.bf16.mxu0 %v6852_v0 }
 0x45b   :  { %2584 = vmatpush1.bf16.msra.mxu1 %v7978_v42  ;;  %3589 = vmatpush1.bf16.msra.mxu0 %v7978_v42 }
 0x45c   :  { %2585 = vmatprep.subr.bf16.mxu1 %v6852_v0  ;;  %3590 = vmatprep.subr.bf16.mxu0 %v6852_v0 }
 0x45f   :  { %2586 = vmatpush1.bf16.msra.mxu1 %v7986_v56  ;;  %3591 = vmatpush1.bf16.msra.mxu0 %v7986_v56 }
 0x460   :  { %2706 = vmatprep.subr.bf16.mxu1 %v6852_v0  ;;  %3949 = vmatprep.subr.bf16.mxu0 %v6852_v0 }
 0x462   :  { %2596 = vmatmul.mubr.bf16.vlgmr.msra.gmra.mrb[112].mxu1 %v6582_v43  ;;  %3601 = vmatmul.mubr.bf16.vlgmr.msra.gmra.mrb[64].mxu0 %v6585_v60 }
 0x463   :  { %2707 = vmatpush1.bf16.msra.mxu1 %v7898_v21  ;;  %3950 = vmatpush1.bf16.msra.mxu0 %v7898_v21 }
 0x464   :  { %2708 = vmatprep.subr.bf16.mxu1 %v6852_v0  ;;  %3951 = vmatprep.subr.bf16.mxu0 %v6852_v0 }
 0x465   :  { %5536 = vmatprep.mubr.msk.bf16.mxu1 %vm2428_vm6, %v6588_v23  ;;  %5681 = vmatprep.mubr.msk.bf16.mxu0 %vm2428_vm6, %v6597_v55  ;;  %v2956_v23 = vsel %vm1417_vm4, %v6637_v31, 0  ;;  %v8321_v55 = vld [vmem:[%s8900_s5] sm:$0xff]  }
 0x467   :  { %2709 = vmatpush1.bf16.msra.mxu1 %v7906_v8  ;;  %3952 = vmatpush1.bf16.msra.mxu0 %v7906_v8 }
 0x468   :  { %2710 = vmatprep.subr.bf16.mxu1 %v6852_v0  ;;  %3953 = vmatprep.subr.bf16.mxu0 %v6852_v0 }
 0x46a   :  { %2604 = vmatmul.mubr.bf16.gmra.mrb[116].mxu1 %v6590_v50  ;;  %3609 = vmatmul.mubr.bf16.gmra.mrb[68].mxu0 %v6599_v58 }
 0x46b   :  { %2711 = vmatpush1.bf16.msra.mxu1 %v7914_v45  ;;  %3954 = vmatpush1.bf16.msra.mxu0 %v7914_v45 }
 0x46c   :  { %2712 = vmatprep.subr.bf16.mxu1 %v6852_v0  ;;  %3955 = vmatprep.subr.bf16.mxu0 %v6852_v0 }
 0x46d   :  { %5537 = vmatprep.mubr.msk.bf16.mxu1 %vm2428_vm6, %v6591_v16  ;;  %5682 = vmatprep.mubr.msk.bf16.mxu0 %vm2428_vm6, %v6600_v1 }
 0x46f   :  { %2713 = vmatpush1.bf16.msra.mxu1 %v7922_v3  ;;  %3956 = vmatpush1.bf16.msra.mxu0 %v7922_v3 }
 0x470   :  { %2714 = vmatprep.subr.bf16.mxu1 %v6852_v0  ;;  %3957 = vmatprep.subr.bf16.mxu0 %v6852_v0 }
 0x472   :  { %2612 = vmatmul.mubr.bf16.gmra.mrb[120].mxu1 %v6593_v41  ;;  %3617 = vmatmul.mubr.bf16.gmra.mrb[72].mxu0 %v6602_v57 }
 0x473   :  { %2715 = vmatpush1.bf16.msra.mxu1 %v7930_v36  ;;  %3958 = vmatpush1.bf16.msra.mxu0 %v7930_v36 }
 0x474   :  { %2716 = vmatprep.subr.bf16.mxu1 %v6852_v0  ;;  %3959 = vmatprep.subr.bf16.mxu0 %v6852_v0 }
 0x475   :  { %5538 = vmatprep.mubr.msk.bf16.mxu1 %vm2428_vm6, %v6594_v15  ;;  %5683 = vmatprep.mubr.msk.bf16.mxu0 %vm2428_vm6, %v6603_v25 }
 0x477   :  { %2717 = vmatpush1.bf16.msra.mxu1 %v7938_v26  ;;  %3960 = vmatpush1.bf16.msra.mxu0 %v7938_v26 }
 0x478   :  { %2718 = vmatprep.subr.bf16.mxu1 %v6852_v0  ;;  %3961 = vmatprep.subr.bf16.mxu0 %v6852_v0 }
 0x47a   :  { %2620 = vmatmul.mubr.bf16.gmra.mrb[124].mxu1 %v6596_v6  ;;  %3625 = vmatmul.mubr.bf16.gmra.mrb[76].mxu0 %v6605_v20 }
 0x47b   :  { %2719 = vmatpush1.bf16.msra.mxu1 %v7946_v37  ;;  %3962 = vmatpush1.bf16.msra.mxu0 %v7946_v37 }
 0x47c   :  { %2720 = vmatprep.subr.bf16.mxu1 %v6852_v0  ;;  %3963 = vmatprep.subr.bf16.mxu0 %v6852_v0 }
 0x47d   :  { %5555 = vmatprep.mubr.msk.bf16.mxu1 %vm2428_vm6, %v6608_v46  ;;  %5738 = vmatprep.mubr.msk.bf16.mxu0 %vm2428_vm6, %v6611_v62 }
 0x47f   :  { %2721 = vmatpush1.bf16.msra.mxu1 %v7954_v38  ;;  %3964 = vmatpush1.bf16.msra.mxu0 %v7954_v38 }
 0x480   :  { %2722 = vmatprep.subr.bf16.mxu1 %v6852_v0  ;;  %3965 = vmatprep.subr.bf16.mxu0 %v6852_v0 }
 0x483   :  { %2723 = vmatpush1.bf16.msra.mxu1 %v7962_v22  ;;  %3966 = vmatpush1.bf16.msra.mxu0 %v7962_v22 }
 0x484   :  { %2724 = vmatprep.subr.bf16.mxu1 %v6852_v0  ;;  %3967 = vmatprep.subr.bf16.mxu0 %v6852_v0 }
 0x487   :  { %2725 = vmatpush1.bf16.msra.mxu1 %v7970_v30  ;;  %3968 = vmatpush1.bf16.msra.mxu0 %v7970_v30 }
 0x488   :  { %2726 = vmatprep.subr.bf16.mxu1 %v6852_v0  ;;  %3969 = vmatprep.subr.bf16.mxu0 %v6852_v0 }
 0x48b   :  { %2727 = vmatpush1.bf16.msra.mxu1 %v7978_v42  ;;  %3970 = vmatpush1.bf16.msra.mxu0 %v7978_v42 }
 0x48c   :  { %2728 = vmatprep.subr.bf16.mxu1 %v6852_v0  ;;  %3971 = vmatprep.subr.bf16.mxu0 %v6852_v0 }
 0x48f   :  { %2729 = vmatpush1.bf16.msra.mxu1 %v7986_v56  ;;  %3972 = vmatpush1.bf16.msra.mxu0 %v7986_v56 }
 0x490   :  { %2828 = vmatprep.subr.bf16.mxu1 %v6852_v0  ;;  %4071 = vmatprep.subr.bf16.mxu0 %v6852_v0 }
 0x492   :  { %2739 = vmatmul.mubr.bf16.vlgmr.msra.gmra.mrb[128].mxu1 %v6606_v17  ;;  %3982 = vmatmul.mubr.bf16.vlgmr.msra.gmra.mrb[80].mxu0 %v6609_v2 }
 0x493   :  { %2829 = vmatpush1.bf16.msra.mxu1 %v7898_v21  ;;  %4072 = vmatpush1.bf16.msra.mxu0 %v7898_v21 }
 0x494   :  { %2830 = vmatprep.subr.bf16.mxu1 %v6852_v0  ;;  %4073 = vmatprep.subr.bf16.mxu0 %v6852_v0 }
 0x495   :  { %5556 = vmatprep.mubr.msk.bf16.mxu1 %vm2428_vm6, %v6612_v11 }
 0x497   :  { %2831 = vmatpush1.bf16.msra.mxu1 %v7906_v8  ;;  %4074 = vmatpush1.bf16.msra.mxu0 %v7906_v8 }
 0x498   :  { %2832 = vmatprep.subr.bf16.mxu1 %v6852_v0  ;;  %4075 = vmatprep.subr.bf16.mxu0 %v6852_v0 }
 0x49a   :  { %2747 = vmatmul.mubr.bf16.gmra.mrb[132].mxu1 %v6614_v14 }
 0x49b   :  { %2833 = vmatpush1.bf16.msra.mxu1 %v7914_v45  ;;  %4076 = vmatpush1.bf16.msra.mxu0 %v7914_v45 }
 0x49c   :  { %2834 = vmatprep.subr.bf16.mxu1 %v6852_v0  ;;  %4077 = vmatprep.subr.bf16.mxu0 %v6852_v0 }
 0x49d   :  { %5557 = vmatprep.mubr.msk.bf16.mxu1 %vm2428_vm6, %v6615_v48 }
 0x49f   :  { %2835 = vmatpush1.bf16.msra.mxu1 %v7922_v3  ;;  %4078 = vmatpush1.bf16.msra.mxu0 %v7922_v3 }
 0x4a0   :  { %2836 = vmatprep.subr.bf16.mxu1 %v6852_v0  ;;  %4079 = vmatprep.subr.bf16.mxu0 %v6852_v0 }
 0x4a2   :  { %2755 = vmatmul.mubr.bf16.gmra.mrb[136].mxu1 %v6617_v18 }
 0x4a3   :  { %2837 = vmatpush1.bf16.msra.mxu1 %v7930_v36  ;;  %4080 = vmatpush1.bf16.msra.mxu0 %v7930_v36 }
 0x4a4   :  { %2838 = vmatprep.subr.bf16.mxu1 %v6852_v0  ;;  %4081 = vmatprep.subr.bf16.mxu0 %v6852_v0 }
 0x4a5   :  { %5558 = vmatprep.mubr.msk.bf16.mxu1 %vm2428_vm6, %v6618_v9 }
 0x4a7   :  { %2839 = vmatpush1.bf16.msra.mxu1 %v7938_v26  ;;  %4082 = vmatpush1.bf16.msra.mxu0 %v7938_v26 }
 0x4a8   :  { %2840 = vmatprep.subr.bf16.mxu1 %v6852_v0  ;;  %4083 = vmatprep.subr.bf16.mxu0 %v6852_v0 }
 0x4aa   :  { %2763 = vmatmul.mubr.bf16.gmra.mrb[140].mxu1 %v6620_v7 }
 0x4ab   :  { %2841 = vmatpush1.bf16.msra.mxu1 %v7946_v37  ;;  %4084 = vmatpush1.bf16.msra.mxu0 %v7946_v37 }
 0x4ac   :  { %2842 = vmatprep.subr.bf16.mxu1 %v6852_v0  ;;  %4085 = vmatprep.subr.bf16.mxu0 %v6852_v0 }
 0x4ad   :  { %5575 = vmatprep.mubr.msk.bf16.mxu1 %vm2428_vm6, %v6623_v13 }
 0x4af   :  { %2843 = vmatpush1.bf16.msra.mxu1 %v7954_v38  ;;  %4086 = vmatpush1.bf16.msra.mxu0 %v7954_v38 }
 0x4b0   :  { %2844 = vmatprep.subr.bf16.mxu1 %v6852_v0  ;;  %4087 = vmatprep.subr.bf16.mxu0 %v6852_v0 }
 0x4b3   :  { %2845 = vmatpush1.bf16.msra.mxu1 %v7962_v22  ;;  %4088 = vmatpush1.bf16.msra.mxu0 %v7962_v22 }
 0x4b4   :  { %2846 = vmatprep.subr.bf16.mxu1 %v6852_v0  ;;  %4089 = vmatprep.subr.bf16.mxu0 %v6852_v0 }
 0x4b7   :  { %2847 = vmatpush1.bf16.msra.mxu1 %v7970_v30  ;;  %4090 = vmatpush1.bf16.msra.mxu0 %v7970_v30 }
 0x4b8   :  { %2848 = vmatprep.subr.bf16.mxu1 %v6852_v0  ;;  %4091 = vmatprep.subr.bf16.mxu0 %v6852_v0 }
 0x4bb   :  { %2849 = vmatpush1.bf16.msra.mxu1 %v7978_v42  ;;  %4092 = vmatpush1.bf16.msra.mxu0 %v7978_v42 }
 0x4bc   :  { %2850 = vmatprep.subr.bf16.mxu1 %v6852_v0  ;;  %4093 = vmatprep.subr.bf16.mxu0 %v6852_v0 }
 0x4bf   :  { %2851 = vmatpush1.bf16.msra.mxu1 %v7986_v56  ;;  %4094 = vmatpush1.bf16.msra.mxu0 %v7986_v56 }
 0x4c0   :  { %6003 = vmatprep.subr.bf16.mxu1 %v6633_v61 }
 0x4c2   :  { %2861 = vmatmul.mubr.bf16.vlgmr.msra.gmra.mrb[144].mxu1 %v6621_v28 }
 0x4c3   :  { %5576 = vmatprep.mubr.msk.bf16.mxu1 %vm2428_vm6, %v6624_v35  ;;  %6004 = vmatpush3.bf16.msra.mxu1 %v6633_v61 }
 0x4c4   :  { %6005 = vmatprep.subr.bf16.mxu1 %v6634_v51 }
 0x4c7   :  { %6006 = vmatpush3.bf16.msra.mxu1 %v6634_v51 }
 0x4c8   :  { %6007 = vmatprep.subr.bf16.mxu1 %v6635_v47 }
 0x4ca   :  { %2869 = vmatmul.mubr.bf16.gmra.mrb[148].mxu1 %v6626_v40 }
 0x4cb   :  { %5577 = vmatprep.mubr.msk.bf16.mxu1 %vm2428_vm6, %v6627_v29  ;;  %6008 = vmatpush3.bf16.msra.mxu1 %v6635_v47 }
 0x4cc   :  { %6009 = vmatprep.subr.bf16.mxu1 %v6636_v5 }
 0x4cf   :  { %6010 = vmatpush3.bf16.msra.mxu1 %v6636_v5 }
 0x4d0   :  { %6497 = vmatprep.subr.msk.bf16.mxu1 %vm1417_vm4, %v6637_v31 }
 0x4d2   :  { %2877 = vmatmul.mubr.bf16.gmra.mrb[152].mxu1 %v6629_v10 }
 0x4d3   :  { %5578 = vmatprep.mubr.msk.bf16.mxu1 %vm2428_vm6, %v6630_v4  ;;  %6012 = vmatpush3.bf16.msra.mxu1 %v2956_v23 }
 0x4d4   :  { %6021 = vmatprep.subr.bf16.mxu1 %v8321_v55 }
 0x4da   :  { %2885 = vmatmul.mubr.bf16.gmra.mrb[156].mxu1 %v6632_v53 }
 0x505   :  { %v2475_v39 = vpop.f32.mrb[96].mxu1 }
 0x506   :  { %v2477_v12 = vpop.f32.mrb[97].mxu1 }
 0x507   :  { %v2478_v19 = vpop.f32.mrb[98].mxu1 }
 0x508   :  { %v2480_v54 = vpop.f32.mrb[99].mxu1 }
 0x50d   :  { %v2483_v63 = vpop.f32.mrb[100].mxu1 }
 0x50e   :  { %v2485_v33 = vpop.f32.mrb[101].mxu1 }
 0x50f   :  { %v2486_v27 = vpop.f32.mrb[102].mxu1 }
 0x510   :  { %v2488_v52 = vpop.f32.mrb[103].mxu1 }
 0x515   :  { %v2491_v32 = vpop.f32.mrb[104].mxu1 }
 0x516   :  { %v2493_v44 = vpop.f32.mrb[105].mxu1 }
 0x517   :  { %v2494_v24 = vpop.f32.mrb[106].mxu1 }
 0x518   :  { %v2496_v34 = vpop.f32.mrb[107].mxu1 }
 0x51d   :  { %v2499_v49 = vpop.f32.mrb[108].mxu1 }
 0x51e   :  { %v2501_v59 = vpop.f32.mrb[109].mxu1 }
 0x51f   :  { %v2502_v43 = vpop.f32.mrb[110].mxu1 }
 0x520   :  { %v2504_v60 = vpop.f32.mrb[111].mxu1 }
 0x535   :  { %v2597_v50 = vpop.f32.mrb[112].mxu1 }
 0x536   :  { %v2628_v58 = vmax.f32 %v2475_v39, %v2597_v50  ;;  %v2599_v16 = vpop.f32.mrb[113].mxu1 }
 0x537   :  { %v2600_v1 = vpop.f32.mrb[114].mxu1 }
 0x538   :  { %v2629_v41 = vmax.f32 %v2478_v19, %v2600_v1  ;;  %v2602_v57 = vpop.f32.mrb[115].mxu1 }
 0x53a   :  { %v8324_v15 = vpack.c.bf16 %v2629_v41, %v2628_v58 }
 0x53d   :  { %v2605_v25 = vpop.f32.mrb[116].mxu1 }
 0x53e   :  { %v2630_v6 = vmax.f32 %v2483_v63, %v2605_v25  ;;  %v2607_v20 = vpop.f32.mrb[117].mxu1 }
 0x53f   :  { %v2608_v46 = vpop.f32.mrb[118].mxu1  ;;  %v6639_v20 = vld [vmem:[%s8900_s5 + $0x8] sm:$0xff]  }
 0x540   :  { %v2631_v62 = vmax.f32 %v2486_v27, %v2608_v46  ;;  %v2610_v17 = vpop.f32.mrb[119].mxu1 }
 0x542   :  { %v8326_v2 = vpack.c.bf16 %v2631_v62, %v2630_v6 }
 0x545   :  { %v2613_v11 = vpop.f32.mrb[120].mxu1 }
 0x546   :  { %v2632_v14 = vmax.f32 %v2491_v32, %v2613_v11  ;;  %v2615_v48 = vpop.f32.mrb[121].mxu1  ;;  %v6640_v11 = vld [vmem:[%s8900_s5 + $0x10] sm:$0xff]  }
 0x547   :  { %v2616_v18 = vpop.f32.mrb[122].mxu1 }
 0x548   :  { %v2633_v9 = vmax.f32 %v2494_v24, %v2616_v18  ;;  %v2618_v7 = vpop.f32.mrb[123].mxu1 }
 0x549   :  { %v6641_v7 = vld [vmem:[%s8900_s5 + $0x18] sm:$0xff]  }
 0x54a   :  { %v8328_v13 = vpack.c.bf16 %v2633_v9, %v2632_v14 }
 0x54d   :  { %v2621_v28 = vpop.f32.mrb[124].mxu1 }
 0x54e   :  { %v2634_v35 = vmax.f32 %v2499_v49, %v2621_v28  ;;  %v2623_v40 = vpop.f32.mrb[125].mxu1 }
 0x54f   :  { %v2624_v29 = vpop.f32.mrb[126].mxu1  ;;  %v6642_v40 = vld [vmem:[%s8900_s5 + $0x20] ss:$0 sps:$4 sm:$0xff]  }
 0x550   :  { %v2635_v10 = vmax.f32 %v2502_v43, %v2624_v29  ;;  %v2626_v4 = vpop.f32.mrb[127].mxu1 }
 0x552   :  { %v8330_v53 = vpack.c.bf16 %v2635_v10, %v2634_v35 }
 0x565   :  { %v2740_v61 = vpop.f32.mrb[128].mxu1 }
 0x566   :  { %v2742_v51 = vpop.f32.mrb[129].mxu1 }
 0x567   :  { %v2743_v39 = vpop.f32.mrb[130].mxu1  ;;  %v3063_v51 = vsel %vm1417_vm4, %v6642_v40, 0 }
 0x568   :  { %v2745_v12 = vpop.f32.mrb[131].mxu1 }
 0x569   :  { %v6657_v12 = vld [vmem:[%s8900_s5 + $0x58] sm:$0xff]  }
 0x56d   :  { %v2748_v19 = vpop.f32.mrb[132].mxu1 }
 0x56e   :  { %v2750_v54 = vpop.f32.mrb[133].mxu1 }
 0x56f   :  { %v2751_v63 = vpop.f32.mrb[134].mxu1  ;;  %v6649_v54 = vld [vmem:[%s8899_s4 + $0x124] ss:$8 sps:$4 sm:$0xff]  }
 0x570   :  { %v2753_v33 = vpop.f32.mrb[135].mxu1 }
 0x571   :  { %v6652_v33 = vld [vmem:[%s8899_s4 + $0x134] ss:$8 sps:$4 sm:$0xff]  }
 0x575   :  { %v2756_v27 = vpop.f32.mrb[136].mxu1 }
 0x576   :  { %v2758_v52 = vpop.f32.mrb[137].mxu1 }
 0x577   :  { %v2759_v32 = vpop.f32.mrb[138].mxu1  ;;  %v8420_v52 = vpop.f32.mrb[48].mxu0 }
 0x578   :  { %v2761_v44 = vpop.f32.mrb[139].mxu1 }
 0x57d   :  { %v2764_v47 = vpop.f32.mrb[140].mxu1 }
 0x57e   :  { %v2766_v24 = vpop.f32.mrb[141].mxu1 }
 0x57f   :  { %v2767_v34 = vpop.f32.mrb[142].mxu1  ;;  %v6659_v24 = vld [vmem:[%s8899_s4 + $0x214] ss:$8 sps:$4 sm:$0xff]  }
 0x580   :  { %v2769_v5 = vpop.f32.mrb[143].mxu1  ;;  %5739 = vmatprep.mubr.msk.bf16.mxu0 %vm2428_vm6, %v6659_v24 }
 0x581   :  { %v6658_v5 = vld [vmem:[%s8900_s5 + $0x60] sm:$0xff]  }
 0x595   :  { %v2862_v49 = vpop.f32.mrb[144].mxu1 }
 0x596   :  { %v2893_v59 = vmax.f32 %v2740_v61, %v2862_v49  ;;  %v2864_v31 = vpop.f32.mrb[145].mxu1 }
 0x597   :  { %v2865_v43 = vpop.f32.mrb[146].mxu1 }
 0x598   :  { %v2894_v60 = vmax.f32 %v2743_v39, %v2865_v43  ;;  %v2867_v23 = vpop.f32.mrb[147].mxu1  ;;  %v6645_v39 = vld [vmem:[%s8899_s4 + $0x104] ss:$8 sps:$4 sm:$0xff]   ;;  %v6662_v43 = vld [vmem:[%s8900_s5 + $0x68] ss:$0 sps:$4 sm:$0xff]  }
 0x599   :  { %v3436_v23 = vsel %vm1417_vm4, %v6662_v43, 0 }
 0x59a   :  { %v2901_v50 = vpack.c.bf16 %v2894_v60, %v2893_v59 }
 0x59c   :  { %6013 = vmatprep.mubr.msk.bf16.mxu1 %vm2942_vm7, %v2901_v50  ;;  %v6663_v50 = vld [vmem:[%s8899_s4 + $0x224] ss:$8 sps:$4 sm:$0xff]  }
 0x59d   :  { %v2870_v58 = vpop.f32.mrb[148].mxu1 }
 0x59e   :  { %v2895_v16 = vmax.f32 %v2748_v19, %v2870_v58  ;;  %v2872_v1 = vpop.f32.mrb[149].mxu1  ;;  %v6648_v19 = vld [vmem:[%s8899_s4 + $0x110] ss:$8 sps:$4 sm:$0xff]   ;;  %v6665_v58 = vld [vmem:[%s8899_s4 + $0x220] ss:$8 sps:$4 sm:$0xff]  }
 0x59f   :  { %v2873_v41 = vpop.f32.mrb[150].mxu1  ;;  %v6668_v1 = vld [vmem:[%s8899_s4 + $0x230] ss:$8 sps:$4 sm:$0xff]  }
 0x5a0   :  { %v2896_v57 = vmax.f32 %v2751_v63, %v2873_v41  ;;  %v2875_v25 = vpop.f32.mrb[151].mxu1  ;;  %v6651_v63 = vld [vmem:[%s8899_s4 + $0x120] ss:$8 sps:$4 sm:$0xff]   ;;  %v6671_v41 = vld [vmem:[%s8899_s4 + $0x244] ss:$8 sps:$4 sm:$0xff]  }
 0x5a2   :  { %v2902_v6 = vpack.c.bf16 %v2896_v57, %v2895_v16  ;;  %v6666_v16 = vld [vmem:[%s8899_s4 + $0x234] ss:$8 sps:$4 sm:$0xff]   ;;  %v6669_v57 = vld [vmem:[%s8899_s4 + $0x240] ss:$8 sps:$4 sm:$0xff]  }
 0x5a4   :  { %6014 = vmatmul.mubr.msk.bf16.vlgmr.msra.gmra.mrb[160].mxu1 %vm2942_vm7, %v2902_v6 }
 0x5a5   :  { %v2878_v46 = vpop.f32.mrb[152].mxu1  ;;  %6022 = vmatpush3.bf16.msra.mxu1 %v8321_v55 }
 0x5a6   :  { %v2897_v62 = vmax.f32 %v2756_v27, %v2878_v46  ;;  %v2880_v17 = vpop.f32.mrb[153].mxu1  ;;  %6023 = vmatprep.subr.bf16.mxu1 %v6639_v20  ;;  %v6654_v27 = vld [vmem:[%s8899_s4 + $0x130] ss:$8 sps:$4 sm:$0xff]  }
 0x5a7   :  { %v2881_v14 = vpop.f32.mrb[154].mxu1 }
 0x5a8   :  { %v2898_v48 = vmax.f32 %v2759_v32, %v2881_v14  ;;  %v2883_v18 = vpop.f32.mrb[155].mxu1  ;;  %v3345_v32 = vpop.f32.mrb[49].mxu0 }
 0x5a9   :  { %6024 = vmatpush3.bf16.msra.mxu1 %v6639_v20  ;;  %v8422_v44 = vpop.f32.mrb[50].mxu0  ;;  %v6674_v18 = vld [vmem:[%s8899_s4 + $0x250] ss:$8 sps:$4 sm:$0xff]  }
 0x5aa   :  { %v2903_v9 = vpack.c.bf16 %v2898_v48, %v2897_v62  ;;  %6025 = vmatprep.subr.bf16.mxu1 %v6640_v11  ;;  %v6672_v48 = vld [vmem:[%s8899_s4 + $0x254] ss:$8 sps:$4 sm:$0xff]  }
 0x5ac   :  { %6017 = vmatprep.mubr.msk.bf16.mxu1 %vm2942_vm7, %v2903_v9  ;;  %v6678_v9 = vld [vmem:[%s8899_s4 + $0x264] ss:$8 sps:$4 sm:$0xff]  }
 0x5ad   :  { %v2886_v55 = vpop.f32.mrb[156].mxu1  ;;  %6026 = vmatpush3.bf16.msra.mxu1 %v6640_v11 }
 0x5ae   :  { %v2899_v28 = vmax.f32 %v2764_v47, %v2886_v55  ;;  %v2888_v35 = vpop.f32.mrb[157].mxu1  ;;  %6027 = vmatprep.subr.bf16.mxu1 %v6641_v7  ;;  %v3348_v47 = vpop.f32.mrb[51].mxu0  ;;  %v6684_v55 = vld [vmem:[%s8899_s4 + $0x274] ss:$8 sps:$4 sm:$0xff]  }
 0x5af   :  { %v2889_v29 = vpop.f32.mrb[158].mxu1  ;;  %v8434_v49 = vpop.f32.mrb[52].mxu0 }
 0x5b0   :  { %v2900_v10 = vmax.f32 %v2767_v34, %v2889_v29  ;;  %v2891_v4 = vpop.f32.mrb[159].mxu1  ;;  %v6661_v34 = vld [vmem:[%s8899_s4 + $0x210] ss:$8 sps:$4 sm:$0xff]   ;;  %v3353_v59 = vpop.f32.mrb[53].mxu0 }
 0x5b1   :  { %6028 = vmatpush3.bf16.msra.mxu1 %v6641_v7  ;;  %3990 = vmatmul.mubr.bf16.gmra.mrb[84].mxu0 %v6661_v34  ;;  %v8436_v31 = vpop.f32.mrb[54].mxu0  ;;  %v6680_v7 = vld [vmem:[%s8899_s4 + $0x260] ss:$8 sps:$4 sm:$0xff]  }
 0x5b2   :  { %v2904_v61 = vpack.c.bf16 %v2900_v10, %v2899_v28  ;;  %6498 = vmatprep.subr.msk.bf16.mxu1 %vm1417_vm4, %v6642_v40  ;;  %v3356_v60 = vpop.f32.mrb[55].mxu0  ;;  %5740 = vmatprep.mubr.msk.bf16.mxu0 %vm2428_vm6, %v6663_v50  ;;  %v6686_v28 = vld [vmem:[%s8899_s4 + $0x270] ss:$8 sps:$4 sm:$0xff]  }
 0x5b3   :  { %v8465_v25 = vpop.f32.mrb[56].mxu0 }
 0x5b4   :  { %6018 = vmatmul.mubr.msk.bf16.gmra.mrb[164].mxu1 %vm2942_vm7, %v2904_v61  ;;  %v3361_v6 = vpop.f32.mrb[57].mxu0 }
 0x5b5   :  { %6031 = vmatprep.mubr.msk.bf16.mxu1 %vm2942_vm7, %v8324_v15  ;;  %6030 = vmatpush3.bf16.msra.mxu1 %v3063_v51  ;;  %v6655_v15 = vld [vmem:[%s8900_s5 + $0x48] sm:$0xff]   ;;  %v8467_v20 = vpop.f32.mrb[58].mxu0 }
 0x5b6   :  { %3187 = vmatprep.subr.bf16.mxu1 %v6852_v0  ;;  %v3364_v46 = vpop.f32.mrb[59].mxu0 }
 0x5b7   :  { %v8469_v62 = vpop.f32.mrb[60].mxu0 }
 0x5b8   :  { %v3369_v17 = vpop.f32.mrb[61].mxu0 }
 0x5b9   :  { %3998 = vmatmul.mubr.bf16.gmra.mrb[88].mxu0 %v6665_v58  ;;  %v8471_v11 = vpop.f32.mrb[62].mxu0 }
 0x5ba   :  { %5741 = vmatprep.mubr.msk.bf16.mxu0 %vm2428_vm6, %v6666_v16  ;;  %v3372_v14 = vpop.f32.mrb[63].mxu0 }
 0x5bb   :  { %v8494_v35 = vpop.f32.mrb[64].mxu0 }
 0x5bc   :  { %6032 = vmatmul.mubr.msk.bf16.vlgmr.msra.gmra.mrb[160].mxu1 %vm2942_vm7, %v8326_v2  ;;  %v6643_v2 = vld [vmem:[%s8899_s4 + $0x100] ss:$8 sps:$4 sm:$0xff]   ;;  %v3604_v40 = vpop.f32.mrb[65].mxu0 }
 0x5bd   :  { %3188 = vmatpush1.bf16.msra.mxu1 %v7898_v21  ;;  %6035 = vmatprep.mubr.msk.bf16.mxu1 %vm2942_vm7, %v8328_v13  ;;  %v6646_v13 = vld [vmem:[%s8899_s4 + $0x114] ss:$8 sps:$4 sm:$0xff]   ;;  %v8496_v29 = vpop.f32.mrb[66].mxu0 }
 0x5be   :  { %3189 = vmatprep.subr.bf16.mxu1 %v6852_v0  ;;  %v3607_v10 = vpop.f32.mrb[67].mxu0 }
 0x5bf   :  { %v8498_v4 = vpop.f32.mrb[68].mxu0 }
 0x5c0   :  { %v3612_v61 = vpop.f32.mrb[69].mxu0 }
 0x5c1   :  { %3190 = vmatpush1.bf16.msra.mxu1 %v7906_v8  ;;  %4006 = vmatmul.mubr.bf16.gmra.mrb[92].mxu0 %v6668_v1  ;;  %v8500_v51 = vpop.f32.mrb[70].mxu0 }
 0x5c2   :  { %3191 = vmatprep.subr.bf16.mxu1 %v6852_v0  ;;  %5758 = vmatprep.mubr.msk.bf16.mxu0 %vm2428_vm6, %v6671_v41 }
 0x5c4   :  { %6036 = vmatmul.mubr.msk.bf16.gmra.mrb[164].mxu1 %vm2942_vm7, %v8330_v53  ;;  %v6656_v53 = vld [vmem:[%s8900_s5 + $0x50] sm:$0xff]  }
 0x5c5   :  { %3192 = vmatpush1.bf16.msra.mxu1 %v7914_v45  ;;  %5622 = vmatprep.mubr.msk.bf16.mxu1 %vm2428_vm6, %v6645_v39  ;;  %v3615_v39 = vpop.f32.mrb[71].mxu0 }
 0x5c6   :  { %3193 = vmatprep.subr.bf16.mxu1 %v6852_v0 }
 0x5c9   :  { %3194 = vmatpush1.bf16.msra.mxu1 %v7922_v3  ;;  %4104 = vmatmul.mubr.bf16.vlgmr.msra.gmra.mrb[96].mxu0 %v6669_v57 }
 0x5ca   :  { %3195 = vmatprep.subr.bf16.mxu1 %v6852_v0  ;;  %5759 = vmatprep.mubr.msk.bf16.mxu0 %vm2428_vm6, %v6672_v48 }
 0x5cd   :  { %3196 = vmatpush1.bf16.msra.mxu1 %v7930_v36 }
 0x5ce   :  { %3197 = vmatprep.subr.bf16.mxu1 %v6852_v0 }
 0x5d1   :  { %3198 = vmatpush1.bf16.msra.mxu1 %v7938_v26  ;;  %4112 = vmatmul.mubr.bf16.gmra.mrb[100].mxu0 %v6674_v18 }
 0x5d2   :  { %3199 = vmatprep.subr.bf16.mxu1 %v6852_v0  ;;  %5760 = vmatprep.mubr.msk.bf16.mxu0 %vm2428_vm6, %v6678_v9 }
 0x5d5   :  { %3200 = vmatpush1.bf16.msra.mxu1 %v7946_v37 }
 0x5d6   :  { %3201 = vmatprep.subr.bf16.mxu1 %v6852_v0 }
 0x5d9   :  { %3202 = vmatpush1.bf16.msra.mxu1 %v7954_v38  ;;  %4120 = vmatmul.mubr.bf16.gmra.mrb[104].mxu0 %v6680_v7 }
 0x5da   :  { %3203 = vmatprep.subr.bf16.mxu1 %v6852_v0  ;;  %5761 = vmatprep.mubr.msk.bf16.mxu0 %vm2428_vm6, %v6684_v55 }
 0x5dd   :  { %3204 = vmatpush1.bf16.msra.mxu1 %v7962_v22 }
 0x5de   :  { %3205 = vmatprep.subr.bf16.mxu1 %v6852_v0 }
 0x5e1   :  { %3206 = vmatpush1.bf16.msra.mxu1 %v7970_v30  ;;  %4128 = vmatmul.mubr.bf16.gmra.mrb[108].mxu0 %v6686_v28 }
 0x5e2   :  { %3207 = vmatprep.subr.bf16.mxu1 %v6852_v0 }
 0x5e5   :  { %3208 = vmatpush1.bf16.msra.mxu1 %v7978_v42 }
 0x5e6   :  { %3209 = vmatprep.subr.bf16.mxu1 %v6852_v0 }
 0x5e9   :  { %3210 = vmatpush1.bf16.msra.mxu1 %v7986_v56 }
 0x5ea   :  { %6039 = vmatprep.subr.bf16.mxu1 %v6655_v15 }
 0x5ec   :  { %3220 = vmatmul.mubr.bf16.vlgmr.msra.gmra.mrb[168].mxu1 %v6643_v2 }
 0x5ed   :  { %5623 = vmatprep.mubr.msk.bf16.mxu1 %vm2428_vm6, %v6646_v13  ;;  %6040 = vmatpush3.bf16.msra.mxu1 %v6655_v15  ;;  %v8502_v15 = vpop.f32.mrb[72].mxu0 }
 0x5ee   :  { %6041 = vmatprep.subr.bf16.mxu1 %v6656_v53  ;;  %v3620_v2 = vpop.f32.mrb[73].mxu0 }
 0x5ef   :  { %v8504_v13 = vpop.f32.mrb[74].mxu0 }
 0x5f1   :  { %6042 = vmatpush3.bf16.msra.mxu1 %v6656_v53  ;;  %v3623_v53 = vpop.f32.mrb[75].mxu0 }
 0x5f2   :  { %6043 = vmatprep.subr.bf16.mxu1 %v6657_v12 }
 0x5f4   :  { %3228 = vmatmul.mubr.bf16.gmra.mrb[172].mxu1 %v6648_v19 }
 0x5f5   :  { %5624 = vmatprep.mubr.msk.bf16.mxu1 %vm2428_vm6, %v6649_v54  ;;  %6044 = vmatpush3.bf16.msra.mxu1 %v6657_v12  ;;  %v8506_v12 = vpop.f32.mrb[76].mxu0 }
 0x5f6   :  { %6045 = vmatprep.subr.bf16.mxu1 %v6658_v5  ;;  %v3628_v19 = vpop.f32.mrb[77].mxu0 }
 0x5f7   :  { %v8508_v54 = vpop.f32.mrb[78].mxu0 }
 0x5f9   :  { %6046 = vmatpush3.bf16.msra.mxu1 %v6658_v5 }
 0x5fa   :  { %6499 = vmatprep.subr.msk.bf16.mxu1 %vm1417_vm4, %v6662_v43 }
 0x5fc   :  { %3236 = vmatmul.mubr.bf16.gmra.mrb[176].mxu1 %v6651_v63  ;;  %v3631_v63 = vpop.f32.mrb[79].mxu0 }
 0x5fd   :  { %5625 = vmatprep.mubr.msk.bf16.mxu1 %vm2428_vm6, %v6652_v33  ;;  %6048 = vmatpush3.bf16.msra.mxu1 %v3436_v23  ;;  %v8510_v33 = vpop.f32.mrb[80].mxu0 }
 0x5fe   :  { %3690 = vmatprep.subr.bf16.mxu1 %v6852_v0 }
 0x604   :  { %3244 = vmatmul.mubr.bf16.gmra.mrb[180].mxu1 %v6654_v27  ;;  %v3985_v27 = vpop.f32.mrb[81].mxu0 }
 0x605   :  { %v8512_v32 = vpop.f32.mrb[82].mxu0 }
 0x606   :  { %v3988_v47 = vpop.f32.mrb[83].mxu0 }
 0x6bf   :  { %v3221_v24 = vpop.f32.mrb[168].mxu1 }
 0x6c0   :  { %v3374_v34 = vmax.f32 %v3221_v24, %v8420_v52  ;;  %v3223_v5 = vpop.f32.mrb[169].mxu1 }
 0x6c1   :  { %v3224_v59 = vpop.f32.mrb[170].mxu1 }
 0x6c2   :  { %v3375_v43 = vmax.f32 %v3224_v59, %v8422_v44  ;;  %v3226_v60 = vpop.f32.mrb[171].mxu1 }
 0x6c4   :  { %v3382_v23 = vpack.c.bf16 %v3375_v43, %v3374_v34 }
 0x6c6   :  { %6049 = vmatprep.mubr.msk.bf16.mxu1 %vm2942_vm7, %v3382_v23 }
 0x6c7   :  { %v3229_v50 = vpop.f32.mrb[172].mxu1 }
 0x6c8   :  { %v3376_v58 = vmax.f32 %v3229_v50, %v8434_v49  ;;  %v3231_v16 = vpop.f32.mrb[173].mxu1 }
 0x6c9   :  { %v3232_v1 = vpop.f32.mrb[174].mxu1 }
 0x6ca   :  { %v3377_v41 = vmax.f32 %v3232_v1, %v8436_v31  ;;  %v3234_v57 = vpop.f32.mrb[175].mxu1 }
 0x6cc   :  { %v3383_v6 = vpack.c.bf16 %v3377_v41, %v3376_v58 }
 0x6ce   :  { %6050 = vmatmul.mubr.msk.bf16.vlgmr.msra.gmra.mrb[160].mxu1 %vm2942_vm7, %v3383_v6 }
 0x6cf   :  { %3691 = vmatpush1.bf16.msra.mxu1 %v7898_v21  ;;  %v3237_v52 = vpop.f32.mrb[176].mxu1 }
 0x6d0   :  { %3692 = vmatprep.subr.bf16.mxu1 %v6852_v0  ;;  %v3378_v44 = vmax.f32 %v3237_v52, %v8465_v25  ;;  %v3239_v46 = vpop.f32.mrb[177].mxu1 }
 0x6d1   :  { %v3240_v17 = vpop.f32.mrb[178].mxu1  ;;  %v6696_v46 = vld [vmem:[%s8900_s5 + $0x84] sm:$0xff]  }
 0x6d2   :  { %v3379_v14 = vmax.f32 %v3240_v17, %v8467_v20  ;;  %v3242_v49 = vpop.f32.mrb[179].mxu1 }
 0x6d3   :  { %3693 = vmatpush1.bf16.msra.mxu1 %v7906_v8  ;;  %v6677_v8 = vld [vmem:[%s8899_s4 + $0x1c4] ss:$8 sps:$4 sm:$0xff]  }
 0x6d4   :  { %3694 = vmatprep.subr.bf16.mxu1 %v6852_v0  ;;  %v3384_v31 = vpack.c.bf16 %v3379_v14, %v3378_v44 }
 0x6d6   :  { %6053 = vmatprep.mubr.msk.bf16.mxu1 %vm2942_vm7, %v3384_v31 }
 0x6d7   :  { %3695 = vmatpush1.bf16.msra.mxu1 %v7914_v45  ;;  %v3245_v21 = vpop.f32.mrb[180].mxu1  ;;  %v6693_v45 = vld [vmem:[%s8900_s5 + $0x6c] sm:$0xff]  }
 0x6d8   :  { %3696 = vmatprep.subr.bf16.mxu1 %v6852_v0  ;;  %v3380_v48 = vmax.f32 %v3245_v21, %v8469_v62  ;;  %v3247_v25 = vpop.f32.mrb[181].mxu1  ;;  %v6697_v21 = vld [vmem:[%s8900_s5 + $0x8c] ss:$0 sps:$4 sm:$0xff]  }
 0x6d9   :  { %v3248_v18 = vpop.f32.mrb[182].mxu1 }
 0x6da   :  { %v3381_v9 = vmax.f32 %v3248_v18, %v8471_v11  ;;  %v3250_v20 = vpop.f32.mrb[183].mxu1  ;;  %v3817_v18 = vsel %vm1417_vm4, %v6697_v21, 0 }
 0x6db   :  { %3697 = vmatpush1.bf16.msra.mxu1 %v7922_v3  ;;  %v6675_v3 = vld [vmem:[%s8899_s4 + $0x1c0] ss:$8 sps:$4 sm:$0xff]   ;;  %v6698_v20 = vld [vmem:[%s8900_s5 + $0x90] sm:$0xff]  }
 0x6dc   :  { %3698 = vmatprep.subr.bf16.mxu1 %v6852_v0  ;;  %v3385_v7 = vpack.c.bf16 %v3381_v9, %v3380_v48 }
 0x6de   :  { %6054 = vmatmul.mubr.msk.bf16.gmra.mrb[164].mxu1 %vm2942_vm7, %v3385_v7  ;;  %v6706_v7 = vld [vmem:[%s8902_s7 + $0x48] sm:$0xff]  }
 0x6df   :  { %3699 = vmatpush1.bf16.msra.mxu1 %v7930_v36  ;;  %5700 = vmatprep.mubr.msk.bf16.mxu1 %vm2428_vm6, %v6677_v8  ;;  %v6681_v36 = vld [vmem:[%s8899_s4 + $0x1d4] ss:$8 sps:$4 sm:$0xff]   ;;  %v6704_v8 = vld [vmem:[%s8902_s7 + $0x40] sm:$0xff]  }
 0x6e0   :  { %3700 = vmatprep.subr.bf16.mxu1 %v6852_v0  ;;  %6117 = vmatprep.subr.bf16.mxu0 %v6704_v8 }
 0x6e1   :  { %6118 = vmatpush3.bf16.msra.mxu0 %v6704_v8 }
 0x6e2   :  { %6119 = vmatprep.subr.bf16.mxu0 %v6706_v7 }
 0x6e3   :  { %3701 = vmatpush1.bf16.msra.mxu1 %v7938_v26  ;;  %v6694_v26 = vld [vmem:[%s8900_s5 + $0x74] sm:$0xff]  }
 0x6e4   :  { %3702 = vmatprep.subr.bf16.mxu1 %v6852_v0 }
 0x6e5   :  { %6120 = vmatpush3.bf16.msra.mxu0 %v6706_v7 }
 0x6e7   :  { %3703 = vmatpush1.bf16.msra.mxu1 %v7946_v37  ;;  %v6687_v37 = vld [vmem:[%s8899_s4 + $0x1e4] ss:$8 sps:$4 sm:$0xff]  }
 0x6e8   :  { %3704 = vmatprep.subr.bf16.mxu1 %v6852_v0 }
 0x6eb   :  { %3705 = vmatpush1.bf16.msra.mxu1 %v7954_v38  ;;  %v6689_v38 = vld [vmem:[%s8899_s4 + $0x1e0] ss:$8 sps:$4 sm:$0xff]  }
 0x6ec   :  { %3706 = vmatprep.subr.bf16.mxu1 %v6852_v0 }
 0x6ef   :  { %3707 = vmatpush1.bf16.msra.mxu1 %v7962_v22  ;;  %v6690_v22 = vld [vmem:[%s8899_s4 + $0x1f4] ss:$8 sps:$4 sm:$0xff]  }
 0x6f0   :  { %3708 = vmatprep.subr.bf16.mxu1 %v6852_v0 }
 0x6f3   :  { %3709 = vmatpush1.bf16.msra.mxu1 %v7970_v30  ;;  %v6692_v30 = vld [vmem:[%s8899_s4 + $0x1f0] ss:$8 sps:$4 sm:$0xff]  }
 0x6f4   :  { %3710 = vmatprep.subr.bf16.mxu1 %v6852_v0 }
 0x6f7   :  { %3711 = vmatpush1.bf16.msra.mxu1 %v7978_v42  ;;  %v3991_v42 = vpop.f32.mrb[84].mxu0 }
 0x6f8   :  { %3712 = vmatprep.subr.bf16.mxu1 %v6852_v0  ;;  %v6683_v0 = vld [vmem:[%s8899_s4 + $0x1d0] ss:$8 sps:$4 sm:$0xff]  }
 0x6fb   :  { %3713 = vmatpush1.bf16.msra.mxu1 %v7986_v56  ;;  %v3993_v56 = vpop.f32.mrb[85].mxu0 }
 0x6fc   :  { %6057 = vmatprep.subr.bf16.mxu1 %v6693_v45  ;;  %v3994_v62 = vpop.f32.mrb[86].mxu0 }
 0x6fd   :  { %v3996_v11 = vpop.f32.mrb[87].mxu0 }
 0x6fe   :  { %3723 = vmatmul.mubr.bf16.vlgmr.msra.gmra.mrb[184].mxu1 %v6675_v3  ;;  %v3999_v55 = vpop.f32.mrb[88].mxu0  ;;  %v6710_v3 = vld [vmem:[%s8902_s7 + $0x58] sm:$0xff]  }
 0x6ff   :  { %5701 = vmatprep.mubr.msk.bf16.mxu1 %vm2428_vm6, %v6681_v36  ;;  %6058 = vmatpush3.bf16.msra.mxu1 %v6693_v45  ;;  %v4001_v28 = vpop.f32.mrb[89].mxu0  ;;  %v6708_v45 = vld [vmem:[%s8902_s7 + $0x50] sm:$0xff]   ;;  %v6712_v36 = vld [vmem:[%s8902_s7 + $0x60] sm:$0xff]  }
 0x700   :  { %6059 = vmatprep.subr.bf16.mxu1 %v6694_v26  ;;  %v4002_v40 = vpop.f32.mrb[90].mxu0  ;;  %6121 = vmatprep.subr.bf16.mxu0 %v6708_v45 }
 0x701   :  { %v4004_v10 = vpop.f32.mrb[91].mxu0  ;;  %6122 = vmatpush3.bf16.msra.mxu0 %v6708_v45 }
 0x702   :  { %v4007_v61 = vpop.f32.mrb[92].mxu0  ;;  %6123 = vmatprep.subr.bf16.mxu0 %v6710_v3 }
 0x703   :  { %6060 = vmatpush3.bf16.msra.mxu1 %v6694_v26  ;;  %v4009_v39 = vpop.f32.mrb[93].mxu0  ;;  %v6714_v26 = vld [vmem:[%s8902_s7 + $0x68] sm:$0xff]  }
 0x704   :  { %v4010_v2 = vpop.f32.mrb[94].mxu0 }
 0x705   :  { %v4012_v53 = vpop.f32.mrb[95].mxu0  ;;  %6124 = vmatpush3.bf16.msra.mxu0 %v6710_v3 }
 0x706   :  { %3731 = vmatmul.mubr.bf16.gmra.mrb[188].mxu1 %v6683_v0  ;;  %v4105_v19 = vpop.f32.mrb[96].mxu0  ;;  %6125 = vmatprep.subr.bf16.mxu0 %v6712_v36 }
 0x707   :  { %5702 = vmatprep.mubr.msk.bf16.mxu1 %vm2428_vm6, %v6687_v37  ;;  %v4136_v63 = vmax.f32 %v8510_v33, %v4105_v19  ;;  %v4107_v27 = vpop.f32.mrb[97].mxu0  ;;  %v6695_v33 = vld [vmem:[%s8900_s5 + $0x7c] sm:$0xff]  }
 0x708   :  { %v4108_v47 = vpop.f32.mrb[98].mxu0  ;;  %6061 = vmatprep.subr.bf16.mxu1 %v6695_v33  ;;  %v6701_v27 = vld [vmem:[%s8900_s5 + $0xa8] sm:$0xff]  }
 0x709   :  { %v4137_v24 = vmax.f32 %v8512_v32, %v4108_v47  ;;  %v4110_v34 = vpop.f32.mrb[99].mxu0  ;;  %6062 = vmatpush3.bf16.msra.mxu1 %v6695_v33  ;;  %6126 = vmatpush3.bf16.msra.mxu0 %v6712_v36  ;;  %v5780_v33 = vld [vmem:[%s8901_s6] ss:$0 sm:$0xff] }
 0x70a   :  { %v4113_v59 = vpop.f32.mrb[100].mxu0  ;;  %6063 = vmatprep.subr.bf16.mxu1 %v6696_v46  ;;  %6127 = vmatprep.subr.bf16.mxu0 %v6714_v26 }
 0x70b   :  { %v8585_v5 = vpack.c.bf16 %v4137_v24, %v4136_v63  ;;  %v4138_v43 = vmax.f32 %v3991_v42, %v4113_v59  ;;  %v4115_v60 = vpop.f32.mrb[101].mxu0 }
 0x70c   :  { %v4116_v23 = vpop.f32.mrb[102].mxu0 }
 0x70d   :  { %v4139_v50 = vmax.f32 %v3994_v62, %v4116_v23  ;;  %v4118_v58 = vpop.f32.mrb[103].mxu0  ;;  %6064 = vmatpush3.bf16.msra.mxu1 %v6696_v46  ;;  %6128 = vmatpush3.bf16.msra.mxu0 %v6714_v26 }
 0x70e   :  { %3739 = vmatmul.mubr.bf16.gmra.mrb[192].mxu1 %v6689_v38  ;;  %v4121_v1 = vpop.f32.mrb[104].mxu0  ;;  %6500 = vmatprep.subr.msk.bf16.mxu1 %vm1417_vm4, %v6697_v21  ;;  %v6711_v58 = vld [vmem:[%s8902_s7 + $0x20] sm:$0xff]  }
 0x70f   :  { %5703 = vmatprep.mubr.msk.bf16.mxu1 %vm2428_vm6, %v6690_v22  ;;  %v8587_v16 = vpack.c.bf16 %v4139_v50, %v4138_v43  ;;  %v4123_v41 = vpop.f32.mrb[105].mxu0  ;;  %v4140_v6 = vmax.f32 %v3999_v55, %v4121_v1  ;;  %v6707_v50 = vld [vmem:[%s8902_s7 + $0x10] sm:$0xff]  }
 0x710   :  { %v4124_v57 = vpop.f32.mrb[106].mxu0  ;;  %v6715_v1 = vld [vmem:[%s8902_s7 + $0x30] sm:$0xff]  }
 0x711   :  { %v4141_v32 = vmax.f32 %v4002_v40, %v4124_v57  ;;  %v4126_v52 = vpop.f32.mrb[107].mxu0  ;;  %6066 = vmatpush3.bf16.msra.mxu1 %v3817_v18  ;;  %v6716_v41 = vld [vmem:[%s8902_s7 + $0x70] sm:$0xff]   ;;  %v6717_v57 = vld [vmem:[%s8902_s7 + $0x38] sm:$0xff]  }
 0x712   :  { %v4129_v17 = vpop.f32.mrb[108].mxu0  ;;  %6075 = vmatprep.subr.bf16.mxu1 %v6698_v20  ;;  %6129 = vmatprep.subr.bf16.mxu0 %v6716_v41 }
 0x713   :  { %v8592_v44 = vpack.c.bf16 %v4141_v32, %v4140_v6  ;;  %v4131_v14 = vpop.f32.mrb[109].mxu0  ;;  %v4142_v31 = vmax.f32 %v4007_v61, %v4129_v17  ;;  %6130 = vmatpush3.bf16.msra.mxu0 %v6716_v41  ;;  %v6718_v6 = vld [vmem:[%s8902_s7 + $0x78] sm:$0xff]  }
 0x714   :  { %v4132_v49 = vpop.f32.mrb[110].mxu0  ;;  %6131 = vmatprep.subr.bf16.mxu0 %v6718_v6  ;;  %v4855_v41 = vld [vmem:[#allocation5 + $0x18] sm:$0xf] }
 0x715   :  { %v4143_v48 = vmax.f32 %v4010_v2, %v4132_v49  ;;  %v4134_v25 = vpop.f32.mrb[111].mxu0 }
 0x716   :  { %3747 = vmatmul.mubr.bf16.gmra.mrb[196].mxu1 %v6692_v30 }
 0x717   :  { %v8602_v9 = vpack.c.bf16 %v4143_v48, %v4142_v31  ;;  %6132 = vmatpush3.bf16.msra.mxu0 %v6718_v6  ;;  %v4711_v6 = vld [vmem:[#allocation5 + $0xc] sm:$0xf] }
 0x7d1   :  { %v3724_v0 = vpop.f32.mrb[184].mxu1 }
 0x7d2   :  { %v3755_v37 = vmax.f32 %v8494_v35, %v3724_v0  ;;  %v3726_v38 = vpop.f32.mrb[185].mxu1  ;;  %v6699_v35 = vld [vmem:[%s8900_s5 + $0x98] sm:$0xff]  }
 0x7d3   :  { %v3727_v22 = vpop.f32.mrb[186].mxu1 }
 0x7d4   :  { %v3756_v30 = vmax.f32 %v8496_v29, %v3727_v22  ;;  %v3729_v42 = vpop.f32.mrb[187].mxu1 }
 0x7d6   :  { %v3763_v56 = vpack.c.bf16 %v3756_v30, %v3755_v37 }
 0x7d8   :  { %6067 = vmatprep.mubr.msk.bf16.mxu1 %vm2942_vm7, %v3763_v56 }
 0x7d9   :  { %v3732_v62 = vpop.f32.mrb[188].mxu1 }
 0x7da   :  { %v3757_v11 = vmax.f32 %v8498_v4, %v3732_v62  ;;  %v3734_v55 = vpop.f32.mrb[189].mxu1  ;;  %v6700_v4 = vld [vmem:[%s8900_s5 + $0xa0] sm:$0xff]  }
 0x7db   :  { %v3735_v28 = vpop.f32.mrb[190].mxu1 }
 0x7dc   :  { %v3758_v40 = vmax.f32 %v8500_v51, %v3735_v28  ;;  %v3737_v10 = vpop.f32.mrb[191].mxu1 }
 0x7de   :  { %v3764_v61 = vpack.c.bf16 %v3758_v40, %v3757_v11  ;;  %v6853_v11 = vmov 0.0  }
 0x7df   :  { %6189 = vmatprep.subr.bf16.mxu0 %v6853_v11 }
 0x7e0   :  { %6068 = vmatmul.mubr.msk.bf16.vlgmr.msra.gmra.mrb[160].mxu1 %vm2942_vm7, %v3764_v61 }
 0x7e1   :  { %v3740_v29 = vpop.f32.mrb[192].mxu1  ;;  %6076 = vmatpush3.bf16.msra.mxu1 %v6698_v20 }
 0x7e2   :  { %v3759_v39 = vmax.f32 %v8502_v15, %v3740_v29  ;;  %v3742_v2 = vpop.f32.mrb[193].mxu1  ;;  %6077 = vmatprep.subr.bf16.mxu1 %v6699_v35 }
 0x7e3   :  { %v3743_v53 = vpop.f32.mrb[194].mxu1 }
 0x7e4   :  { %v3760_v51 = vmax.f32 %v8504_v13, %v3743_v53  ;;  %v3745_v19 = vpop.f32.mrb[195].mxu1  ;;  %v6702_v13 = vld [vmem:[%s8900_s5 + $0xb0] ss:$0 sps:$4 sm:$0xff]  }
 0x7e5   :  { %6078 = vmatpush3.bf16.msra.mxu1 %v6699_v35  ;;  %v4198_v23 = vsel %vm1417_vm4, %v6702_v13, 0 }
 0x7e6   :  { %v3765_v63 = vpack.c.bf16 %v3760_v51, %v3759_v39  ;;  %6079 = vmatprep.subr.bf16.mxu1 %v6700_v4 }
 0x7e8   :  { %6071 = vmatprep.mubr.msk.bf16.mxu1 %vm2942_vm7, %v3765_v63 }
 0x7e9   :  { %v3748_v15 = vpop.f32.mrb[196].mxu1  ;;  %6080 = vmatpush3.bf16.msra.mxu1 %v6700_v4 }
 0x7ea   :  { %v3761_v47 = vmax.f32 %v8506_v12, %v3748_v15  ;;  %v3750_v24 = vpop.f32.mrb[197].mxu1  ;;  %6081 = vmatprep.subr.bf16.mxu1 %v6701_v27  ;;  %v6703_v12 = vld [vmem:[%s8902_s7] sm:$0xff]  }
 0x7eb   :  { %v3751_v34 = vpop.f32.mrb[198].mxu1 }
 0x7ec   :  { %v3762_v59 = vmax.f32 %v8508_v54, %v3751_v34  ;;  %v3753_v43 = vpop.f32.mrb[199].mxu1  ;;  %v6705_v54 = vld [vmem:[%s8902_s7 + $0x8] sm:$0xff]  }
 0x7ed   :  { %6082 = vmatpush3.bf16.msra.mxu1 %v6701_v27 }
 0x7ee   :  { %v3766_v60 = vpack.c.bf16 %v3762_v59, %v3761_v47  ;;  %6501 = vmatprep.subr.msk.bf16.mxu1 %vm1417_vm4, %v6702_v13 }
 0x7f0   :  { %6072 = vmatmul.mubr.msk.bf16.gmra.mrb[164].mxu1 %vm2942_vm7, %v3766_v60 }
 0x7f1   :  { %6085 = vmatprep.mubr.msk.bf16.mxu1 %vm2942_vm7, %v8585_v5  ;;  %6084 = vmatpush3.bf16.msra.mxu1 %v4198_v23  ;;  %v6709_v5 = vld [vmem:[%s8902_s7 + $0x18] sm:$0xff]  }
 0x7f2   :  { %6093 = vmatprep.subr.bf16.mxu1 %v6703_v12 }
 0x7f8   :  { %6086 = vmatmul.mubr.msk.bf16.vlgmr.msra.gmra.mrb[160].mxu1 %vm2942_vm7, %v8587_v16  ;;  %v6713_v16 = vld [vmem:[%s8902_s7 + $0x28] sm:$0xff]  }
 0x7f9   :  { %6089 = vmatprep.mubr.msk.bf16.mxu1 %vm2942_vm7, %v8592_v44  ;;  %6094 = vmatpush3.bf16.msra.mxu1 %v6703_v12 }
 0x7fa   :  { %6095 = vmatprep.subr.bf16.mxu1 %v6705_v54 }
 0x7fd   :  { %6096 = vmatpush3.bf16.msra.mxu1 %v6705_v54 }
 0x7fe   :  { %6097 = vmatprep.subr.bf16.mxu1 %v6707_v50 }
 0x800   :  { %6090 = vmatmul.mubr.msk.bf16.gmra.mrb[164].mxu1 %vm2942_vm7, %v8602_v9 }
 0x801   :  { %6098 = vmatpush3.bf16.msra.mxu1 %v6707_v50 }
 0x802   :  { %6099 = vmatprep.subr.bf16.mxu1 %v6709_v5 }
 0x805   :  { %6100 = vmatpush3.bf16.msra.mxu1 %v6709_v5 }
 0x806   :  { %6101 = vmatprep.subr.bf16.mxu1 %v6711_v58 }
 0x809   :  { %6102 = vmatpush3.bf16.msra.mxu1 %v6711_v58  ;;  %v4571_v58 = vld [vmem:[#allocation5] sm:$0xf] }
 0x80a   :  { %6103 = vmatprep.subr.bf16.mxu1 %v6713_v16 }
 0x80d   :  { %6104 = vmatpush3.bf16.msra.mxu1 %v6713_v16  ;;  %v4763_v16 = vld [vmem:[#allocation5 + $0x10] sm:$0xf] }
 0x80e   :  { %6105 = vmatprep.subr.bf16.mxu1 %v6715_v1 }
 0x811   :  { %6106 = vmatpush3.bf16.msra.mxu1 %v6715_v1  ;;  %v4616_v1 = vld [vmem:[#allocation5 + $0x4] sm:$0xf] }
 0x812   :  { %6107 = vmatprep.subr.bf16.mxu1 %v6717_v57 }
 0x815   :  { %6108 = vmatpush3.bf16.msra.mxu1 %v6717_v57  ;;  %v4666_v57 = vld [vmem:[#allocation5 + $0x8] sm:$0xf] }
 0x816   :  { %6141 = vmatprep.subr.bf16.mxu1 %v6853_v11 }
 0x8cb   :  { %v6087_v32 = vpop.f32.mrb[160].mxu1 }
 0x8cc   :  { %v4282_v52 = vadd.f32 %v6087_v32, %v5780_v33  ;;  %v4234_v44 = vpop.f32.mrb[161].mxu1  ;;  %v4900_v32 = vld [vmem:[#allocation5 + $0x1c] sm:$0xf] }
 0x8cd   :  { %v4280_v46 = vadd.f32 %v5780_v33, %v4234_v44  ;;  %v6088_v17 = vpop.f32.mrb[162].mxu1  ;;  %v6720_v44 = vld [vmem:[%s8904_s9] sm:$0xff]  }
 0x8ce   :  { %v4283_v14 = vadd.f32 %v6088_v17, %v5780_v33  ;;  %v4237_v49 = vpop.f32.mrb[163].mxu1  ;;  %v4290_v21 = vmax.f32 %v4282_v52, 0.0  ;;  %v6719_v52 = vld [vmem:[%s8904_s9 + $0x40] sm:$0xff]   ;;  %v6722_v17 = vld [vmem:[%s8904_s9 + $0x8] sm:$0xff]  }
 0x8cf   :  { %v4281_v31 = vadd.f32 %v5780_v33, %v4237_v49  ;;  %v4288_v25 = vmax.f32 %v4280_v46, 0.0  ;;  %v6721_v46 = vld [vmem:[%s8904_s9 + $0x48] sm:$0xff]   ;;  %v6724_v49 = vld [vmem:[%s8904_s9 + $0x10] sm:$0xff]  }
 0x8d0   :  { %v4291_v48 = vmax.f32 %v4283_v14, 0.0  ;;  %v6723_v14 = vld [vmem:[%s8904_s9 + $0x50] sm:$0xff]  }
 0x8d1   :  { %v4289_v18 = vmax.f32 %v4281_v31, 0.0  ;;  %v6725_v31 = vld [vmem:[%s8904_s9 + $0x58] sm:$0xff]  }
 0x8d2   :  { %v4297_v9 = vpack.c.bf16 %v4291_v48, %v4290_v21  ;;  %v6726_v21 = vld [vmem:[%s8904_s9 + $0x18] sm:$0xff]   ;;  %v6727_v48 = vld [vmem:[%s8904_s9 + $0x60] sm:$0xff]  }
 0x8d3   :  { %v4296_v20 = vpack.c.bf16 %v4289_v18, %v4288_v25  ;;  %v6091_v8 = vpop.f32.mrb[164].mxu1  ;;  %v6728_v25 = vld [vmem:[%s8904_s9 + $0x20] sm:$0xff]  }
 0x8d4   :  { %v4286_v7 = vadd.f32 %v6091_v8, %v5780_v33  ;;  %v4250_v45 = vpop.f32.mrb[165].mxu1 }
 0x8d5   :  { %v4284_v3 = vadd.f32 %v5780_v33, %v4250_v45  ;;  %v6092_v36 = vpop.f32.mrb[166].mxu1  ;;  %6109 = vmatprep.mubr.bf16.mxu1 %v4296_v20  ;;  %6133 = vmatprep.mubr.bf16.mxu0 %v4296_v20 }
 0x8d6   :  { %v4287_v26 = vadd.f32 %v6092_v36, %v5780_v33  ;;  %v4253_v0 = vpop.f32.mrb[167].mxu1  ;;  %6110 = vmatmul.mubr.bf16.vlgmr.msra.gmra.mrb[200].mxu1 %v4297_v9  ;;  %6134 = vmatmul.mubr.bf16.vlgmr.msra.gmra.mrb[112].mxu0 %v4297_v9  ;;  %v4294_v38 = vmax.f32 %v4286_v7, 0.0 }
 0x8d7   :  { %v4285_v37 = vadd.f32 %v5780_v33, %v4253_v0  ;;  %v4292_v30 = vmax.f32 %v4284_v3, 0.0  ;;  %v4808_v33 = vld [vmem:[#allocation5 + $0x14] sm:$0xf] }
 0x8d8   :  { %v4295_v22 = vmax.f32 %v4287_v26, 0.0 }
 0x8d9   :  { %v4293_v42 = vmax.f32 %v4285_v37, 0.0 }
 0x8da   :  { %v4299_v56 = vpack.c.bf16 %v4295_v22, %v4294_v38 }
 0x8db   :  { %v4298_v62 = vpack.c.bf16 %v4293_v42, %v4292_v30 }
 0x8dd   :  { %6113 = vmatprep.mubr.bf16.mxu1 %v4298_v62  ;;  %6137 = vmatprep.mubr.bf16.mxu0 %v4298_v62 }
 0x8de   :  { %6114 = vmatmul.mubr.bf16.gmra.mrb[204].mxu1 %v4299_v56  ;;  %6138 = vmatmul.mubr.bf16.gmra.mrb[116].mxu0 %v4299_v56 }
 0x8df   :  { %6149 = vmatprep.mubr.msk.bf16.mxu1 %vm6854_vm8, %v6853_v11  ;;  %6197 = vmatprep.mubr.msk.bf16.mxu0 %vm6854_vm8, %v6853_v11 }
 0x9a9   :  { %v6111_v55 = vpop.f32.mrb[200].mxu1  ;;  %v6135_v28 = vpop.f32.mrb[112].mxu0 }
 0x9aa   :  { %v4561_v40 = vmax.f32 %v6111_v55, %v6135_v28  ;;  %v4398_v10 = vpop.f32.mrb[201].mxu1  ;;  %v4528_v61 = vpop.f32.mrb[113].mxu0 }
 0x9ab   :  { %v4559_v35 = vmax.f32 %v4398_v10, %v4528_v61  ;;  %v6112_v29 = vpop.f32.mrb[202].mxu1  ;;  %v6136_v39 = vpop.f32.mrb[114].mxu0 }
 0x9ac   :  { %v4562_v2 = vmax.f32 %v6112_v29, %v6136_v39  ;;  %v4401_v4 = vpop.f32.mrb[203].mxu1  ;;  %v4531_v53 = vpop.f32.mrb[115].mxu0 }
 0x9ad   :  { %v4560_v51 = vmax.f32 %v4401_v4, %v4531_v53 }
 0x9ae   :  { %v8698_v19 = vpack.c.bf16 %v4562_v2, %v4561_v40 }
 0x9af   :  { %v8700_v63 = vpack.c.bf16 %v4560_v51, %v4559_v35 }
 0x9b1   :  { %v6115_v27 = vpop.f32.mrb[204].mxu1  ;;  %v6139_v15 = vpop.f32.mrb[116].mxu0  ;;  %6142 = vmatpush3.bf16.msra.mxu1 %v8700_v63  ;;  %6190 = vmatpush3.bf16.msra.mxu0 %v8700_v63 }
 0x9b2   :  { %v4565_v47 = vmax.f32 %v6115_v27, %v6139_v15  ;;  %v4414_v24 = vpop.f32.mrb[205].mxu1  ;;  %v4544_v13 = vpop.f32.mrb[117].mxu0  ;;  %6143 = vmatprep.subr.bf16.mxu1 %v6853_v11  ;;  %6191 = vmatprep.subr.bf16.mxu0 %v6853_v11  ;;  %v6729_v27 = vld [vmem:[%s8904_s9 + $0x68] sm:$0xff]  }
 0x9b3   :  { %v4563_v34 = vmax.f32 %v4414_v24, %v4544_v13  ;;  %v6116_v59 = vpop.f32.mrb[206].mxu1  ;;  %v6140_v43 = vpop.f32.mrb[118].mxu0  ;;  %v6730_v15 = vld [vmem:[%s8904_s9 + $0x28] sm:$0xff]   ;;  %v6732_v24 = vld [vmem:[%s8904_s9 + $0x30] sm:$0xff]   ;;  %v6733_v13 = vld [vmem:[%s8904_s9 + $0x78] sm:$0xff]  }
 0x9b4   :  { %v4566_v60 = vmax.f32 %v6116_v59, %v6140_v43  ;;  %v4417_v23 = vpop.f32.mrb[207].mxu1  ;;  %v4547_v12 = vpop.f32.mrb[119].mxu0 }
 0x9b5   :  { %v4564_v54 = vmax.f32 %v4417_v23, %v4547_v12  ;;  %6144 = vmatpush3.bf16.msra.mxu1 %v8698_v19  ;;  %6192 = vmatpush3.bf16.msra.mxu0 %v8698_v19 }
 0x9b6   :  { %v8708_v50 = vpack.c.bf16 %v4566_v60, %v4565_v47  ;;  %6145 = vmatprep.subr.bf16.mxu1 %v6853_v11  ;;  %6193 = vmatprep.subr.bf16.mxu0 %v6853_v11  ;;  %v6731_v47 = vld [vmem:[%s8904_s9 + $0x70] sm:$0xff]  }
 0x9b7   :  { %v8712_v5 = vpack.c.bf16 %v4564_v54, %v4563_v34  ;;  %v6734_v34 = vld [vmem:[%s8904_s9 + $0x38] sm:$0xff]   ;;  %v6735_v54 = vld [vmem:[%s8906_s11] sm:$0xff]  }
 0x9b9   :  { %6146 = vmatpush3.bf16.msra.mxu1 %v8712_v5  ;;  %6194 = vmatpush3.bf16.msra.mxu0 %v8712_v5 }
 0x9ba   :  { %6147 = vmatprep.subr.bf16.mxu1 %v6853_v11  ;;  %6195 = vmatprep.subr.bf16.mxu0 %v6853_v11 }
 0x9bd   :  { %6148 = vmatpush3.bf16.msra.mxu1 %v8708_v50  ;;  %6196 = vmatpush3.bf16.msra.mxu0 %v8708_v50 }
 0x9be   :  { %6153 = vmatprep.subr.bf16.mxu1 %v6853_v11  ;;  %6213 = vmatprep.subr.bf16.mxu0 %v6853_v11 }
 0x9c0   :  { %6150 = vmatmul.mubr.msk.bf16.vlgmr.msra.gmra.mrb[208].mxu1 %vm2428_vm6, %v4571_v58  ;;  %6198 = vmatmul.mubr.msk.bf16.vlgmr.msra.gmra.mrb[120].mxu0 %vm2428_vm6, %v4763_v16  ;;  %v6738_v58 = vld [vmem:[%s8906_s11 + $0x18] sm:$0xff]   ;;  %v6739_v16 = vld [vmem:[%s8906_s11 + $0x20] sm:$0xff]  }
 0x9c1   :  { %6154 = vmatpush3.bf16.msra.mxu1 %v8700_v63  ;;  %6214 = vmatpush3.bf16.msra.mxu0 %v8700_v63 }
 0x9c2   :  { %6155 = vmatprep.subr.bf16.mxu1 %v6853_v11  ;;  %6215 = vmatprep.subr.bf16.mxu0 %v6853_v11 }
 0x9c3   :  { %6161 = vmatprep.mubr.msk.bf16.mxu1 %vm6854_vm8, %v6853_v11  ;;  %6221 = vmatprep.mubr.msk.bf16.mxu0 %vm6854_vm8, %v6853_v11 }
 0x9c5   :  { %6156 = vmatpush3.bf16.msra.mxu1 %v8698_v19  ;;  %6216 = vmatpush3.bf16.msra.mxu0 %v8698_v19 }
 0x9c6   :  { %6157 = vmatprep.subr.bf16.mxu1 %v6853_v11  ;;  %6217 = vmatprep.subr.bf16.mxu0 %v6853_v11 }
 0x9c9   :  { %6158 = vmatpush3.bf16.msra.mxu1 %v8712_v5  ;;  %6218 = vmatpush3.bf16.msra.mxu0 %v8712_v5 }
 0x9ca   :  { %6159 = vmatprep.subr.bf16.mxu1 %v6853_v11  ;;  %6219 = vmatprep.subr.bf16.mxu0 %v6853_v11 }
 0x9cd   :  { %6160 = vmatpush3.bf16.msra.mxu1 %v8708_v50  ;;  %6220 = vmatpush3.bf16.msra.mxu0 %v8708_v50 }
 0x9ce   :  { %6165 = vmatprep.subr.bf16.mxu1 %v6853_v11  ;;  %5965 = vmatprep.subr.bf16.mxu0 %v6719_v52 }
 0x9d0   :  { %6162 = vmatmul.mubr.msk.bf16.vlgmr.msra.gmra.mrb[212].mxu1 %vm2428_vm6, %v4616_v1  ;;  %6222 = vmatmul.mubr.msk.bf16.vlgmr.msra.gmra.mrb[124].mxu0 %vm2428_vm6, %v4855_v41  ;;  %v6740_v1 = vld [vmem:[%s8906_s11 + $0x28] sm:$0xff]  }
 0x9d1   :  { %6166 = vmatpush3.bf16.msra.mxu1 %v8700_v63  ;;  %6173 = vmatprep.mubr.msk.bf16.mxu1 %vm6854_vm8, %v6853_v11 }
 0x9d2   :  { %6167 = vmatprep.subr.bf16.mxu1 %v6853_v11  ;;  %5966 = vmatpush3.bf16.msra.mxu0 %v6720_v44  ;;  %v6741_v44 = vld [vmem:[%s8906_s11 + $0x30] sm:$0xff]  }
 0x9d3   :  { %5967 = vmatprep.subr.bf16.mxu0 %v6721_v46  ;;  %v6742_v46 = vld [vmem:[%s8906_s11 + $0x38] ss:$0 sps:$4 sm:$0xff]  }
 0x9d5   :  { %6168 = vmatpush3.bf16.msra.mxu1 %v8698_v19 }
 0x9d6   :  { %6169 = vmatprep.subr.bf16.mxu1 %v6853_v11  ;;  %5968 = vmatpush3.bf16.msra.mxu0 %v6722_v17  ;;  %v5203_v17 = vsel %vm1417_vm4, %v6742_v46, 0 }
 0x9d7   :  { %5969 = vmatprep.subr.bf16.mxu0 %v6723_v14  ;;  %v6743_v14 = vld [vmem:[#allocation7] sm:$0xff]  }
 0x9d9   :  { %6170 = vmatpush3.bf16.msra.mxu1 %v8712_v5 }
 0x9da   :  { %6171 = vmatprep.subr.bf16.mxu1 %v6853_v11  ;;  %5970 = vmatpush3.bf16.msra.mxu0 %v6724_v49  ;;  %v6744_v49 = vld [vmem:[#allocation7 + $0x8] sm:$0xff]  }
 0x9db   :  { %5971 = vmatprep.subr.bf16.mxu0 %v6725_v31  ;;  %v6745_v31 = vld [vmem:[#allocation7 + $0x10] sm:$0xff]  }
 0x9dd   :  { %6172 = vmatpush3.bf16.msra.mxu1 %v8708_v50 }
 0x9de   :  { %6177 = vmatprep.subr.bf16.mxu1 %v6853_v11  ;;  %5972 = vmatpush3.bf16.msra.mxu0 %v6726_v21  ;;  %v6746_v21 = vld [vmem:[#allocation7 + $0x18] sm:$0xff]  }
 0x9df   :  { %5973 = vmatprep.subr.bf16.mxu0 %v6727_v48 }
 0x9e0   :  { %6174 = vmatmul.mubr.msk.bf16.vlgmr.msra.gmra.mrb[216].mxu1 %vm2428_vm6, %v4666_v57 }
 0x9e1   :  { %6178 = vmatpush3.bf16.msra.mxu1 %v8700_v63  ;;  %6185 = vmatprep.mubr.msk.bf16.mxu1 %vm6854_vm8, %v6853_v11 }
 0x9e2   :  { %6179 = vmatprep.subr.bf16.mxu1 %v6853_v11  ;;  %5974 = vmatpush3.bf16.msra.mxu0 %v6728_v25  ;;  %v5821_v25 = vld [vmem:[%s8905_s10] ss:$0 sm:$0xff] }
 0x9e3   :  { %5975 = vmatprep.subr.bf16.mxu0 %v6729_v27 }
 0x9e5   :  { %6180 = vmatpush3.bf16.msra.mxu1 %v8698_v19 }
 0x9e6   :  { %6181 = vmatprep.subr.bf16.mxu1 %v6853_v11  ;;  %5976 = vmatpush3.bf16.msra.mxu0 %v6730_v15 }
 0x9e7   :  { %5977 = vmatprep.subr.bf16.mxu0 %v6731_v47 }
 0x9e9   :  { %6182 = vmatpush3.bf16.msra.mxu1 %v8712_v5 }
 0x9ea   :  { %6183 = vmatprep.subr.bf16.mxu1 %v6853_v11  ;;  %5978 = vmatpush3.bf16.msra.mxu0 %v6732_v24 }
 0x9eb   :  { %5979 = vmatprep.subr.bf16.mxu0 %v6733_v13 }
 0x9ed   :  { %6184 = vmatpush3.bf16.msra.mxu1 %v8708_v50 }
 0x9ee   :  { %6201 = vmatprep.subr.bf16.mxu1 %v6853_v11  ;;  %5980 = vmatpush3.bf16.msra.mxu0 %v6734_v34 }
 0x9ef   :  { %6257 = vmatprep.subr.bf16.mxu0 %v6853_v11 }
 0x9f0   :  { %6186 = vmatmul.mubr.msk.bf16.vlgmr.msra.gmra.mrb[220].mxu1 %vm2428_vm6, %v4711_v6 }
 0x9f1   :  { %6202 = vmatpush3.bf16.msra.mxu1 %v8700_v63  ;;  %6209 = vmatprep.mubr.msk.bf16.mxu1 %vm6854_vm8, %v6853_v11 }
 0x9f2   :  { %6203 = vmatprep.subr.bf16.mxu1 %v6853_v11 }
 0x9f5   :  { %6204 = vmatpush3.bf16.msra.mxu1 %v8698_v19 }
 0x9f6   :  { %6205 = vmatprep.subr.bf16.mxu1 %v6853_v11 }
 0x9f9   :  { %6206 = vmatpush3.bf16.msra.mxu1 %v8712_v5 }
 0x9fa   :  { %6207 = vmatprep.subr.bf16.mxu1 %v6853_v11 }
 0x9fd   :  { %6208 = vmatpush3.bf16.msra.mxu1 %v8708_v50 }
 0x9fe   :  { %6225 = vmatprep.subr.bf16.mxu1 %v6853_v11 }
 0xa00   :  { %6210 = vmatmul.mubr.msk.bf16.vlgmr.msra.gmra.mrb[224].mxu1 %vm2428_vm6, %v4808_v33 }
 0xa01   :  { %6226 = vmatpush3.bf16.msra.mxu1 %v8700_v63  ;;  %6233 = vmatprep.mubr.msk.bf16.mxu1 %vm6854_vm8, %v6853_v11 }
 0xa02   :  { %6227 = vmatprep.subr.bf16.mxu1 %v6853_v11 }
 0xa05   :  { %6228 = vmatpush3.bf16.msra.mxu1 %v8698_v19 }
 0xa06   :  { %6229 = vmatprep.subr.bf16.mxu1 %v6853_v11 }
 0xa09   :  { %6230 = vmatpush3.bf16.msra.mxu1 %v8712_v5  ;;  %v6737_v5 = vld [vmem:[%s8906_s11 + $0x10] sm:$0xff]  }
 0xa0a   :  { %6231 = vmatprep.subr.bf16.mxu1 %v6853_v11 }
 0xa0d   :  { %6232 = vmatpush3.bf16.msra.mxu1 %v8708_v50  ;;  %v6736_v50 = vld [vmem:[%s8906_s11 + $0x8] sm:$0xff]  }
 0xa0e   :  { %6237 = vmatprep.subr.bf16.mxu1 %v6853_v11 }
 0xa10   :  { %6234 = vmatmul.mubr.msk.bf16.vlgmr.msra.gmra.mrb[228].mxu1 %vm2428_vm6, %v4900_v32 }
 0xa11   :  { %6253 = vmatprep.mubr.msk.bf16.mxu1 %vm6854_vm8, %v6853_v11  ;;  %6238 = vmatpush3.bf16.msra.mxu1 %v6735_v54 }
 0xa12   :  { %6239 = vmatprep.subr.bf16.mxu1 %v6853_v11 }
 0xa15   :  { %6240 = vmatpush3.bf16.msra.mxu1 %v6736_v50 }
 0xa16   :  { %6241 = vmatprep.subr.bf16.mxu1 %v6853_v11 }
 0xa19   :  { %6242 = vmatpush3.bf16.msra.mxu1 %v6737_v5 }
 0xa1a   :  { %6243 = vmatprep.subr.bf16.mxu1 %v6853_v11 }
 0xa1d   :  { %6244 = vmatpush3.bf16.msra.mxu1 %v6738_v58 }
 0xa1e   :  { %6245 = vmatprep.subr.bf16.mxu1 %v6853_v11 }
 0xa21   :  { %6246 = vmatpush3.bf16.msra.mxu1 %v6739_v16 }
 0xa22   :  { %6247 = vmatprep.subr.bf16.mxu1 %v6853_v11 }
 0xa25   :  { %6248 = vmatpush3.bf16.msra.mxu1 %v6740_v1 }
 0xa26   :  { %6249 = vmatprep.subr.bf16.mxu1 %v6853_v11 }
 0xa29   :  { %6250 = vmatpush3.bf16.msra.mxu1 %v6741_v44 }
 0xa2a   :  { %6251 = vmatprep.subr.bf16.mxu1 %v6853_v11 }
 0xa2d   :  { %6252 = vmatpush3.bf16.msra.mxu1 %v5203_v17 }
 0xa93   :  { %v4609_v18 = vpop.f32.mrb[208].mxu1  ;;  %v4801_v9 = vpop.f32.mrb[120].mxu0 }
 0xa94   :  { %v6151_v20 = vpop.f32.mrb[209].mxu1  ;;  %v6199_v8 = vpop.f32.mrb[121].mxu0 }
 0xa95   :  { %v4612_v7 = vpop.f32.mrb[210].mxu1  ;;  %v4804_v45 = vpop.f32.mrb[122].mxu0 }
 0xa96   :  { %v6152_v3 = vpop.f32.mrb[211].mxu1  ;;  %v6200_v36 = vpop.f32.mrb[123].mxu0 }
 0xa97   :  { %v6747_v36 = vld [vmem:[#allocation7 + $0x20] sm:$0xff]  }
 0xaa3   :  { %v4654_v26 = vpop.f32.mrb[212].mxu1  ;;  %v4893_v0 = vpop.f32.mrb[124].mxu0 }
 0xaa4   :  { %v4660_v37 = vmax.f32 %v4609_v18, %v4654_v26  ;;  %v6163_v38 = vpop.f32.mrb[213].mxu1  ;;  %v6223_v22 = vpop.f32.mrb[125].mxu0  ;;  %v6748_v26 = vld [vmem:[#allocation7 + $0x28] ss:$0 sps:$4 sm:$0x33]  }
 0xaa5   :  { %v4657_v30 = vpop.f32.mrb[214].mxu1  ;;  %v4896_v42 = vpop.f32.mrb[126].mxu0 }
 0xaa6   :  { %4664 = vst.msk [vmem:[#allocation2] sm:$0xff] %vm2428_vm6, %v4660_v37  ;;  %v6164_v56 = vpop.f32.mrb[215].mxu1  ;;  %v6224_v62 = vpop.f32.mrb[127].mxu0  ;;  %v5838_v37 = vld [vmem:[%s8907_s12] ss:$0 sm:$0xff] }
 0xab3   :  { %v4704_v55 = vpop.f32.mrb[216].mxu1 }
 0xab4   :  { %v6175_v28 = vpop.f32.mrb[217].mxu1 }
 0xab5   :  { %v4707_v40 = vpop.f32.mrb[218].mxu1 }
 0xab6   :  { %v6176_v10 = vpop.f32.mrb[219].mxu1 }
 0xac3   :  { %v4749_v61 = vpop.f32.mrb[220].mxu1 }
 0xac4   :  { %v4755_v35 = vmax.f32 %v4704_v55, %v4749_v61  ;;  %v6187_v29 = vpop.f32.mrb[221].mxu1 }
 0xac5   :  { %v4752_v39 = vpop.f32.mrb[222].mxu1 }
 0xac6   :  { %v6188_v2 = vpop.f32.mrb[223].mxu1 }
 0xad3   :  { %v4846_v4 = vpop.f32.mrb[224].mxu1 }
 0xad4   :  { %v4852_v53 = vmax.f32 %v4801_v9, %v4846_v4  ;;  %v6211_v51 = vpop.f32.mrb[225].mxu1 }
 0xad5   :  { %v4849_v19 = vpop.f32.mrb[226].mxu1 }
 0xad6   :  { %4853 = vst.msk [vmem:[#allocation2 + $0x8] sm:$0xff] %vm2428_vm6, %v4852_v53  ;;  %v6212_v63 = vpop.f32.mrb[227].mxu1 }
 0xae3   :  { %v4938_v59 = vpop.f32.mrb[228].mxu1 }
 0xae4   :  { %v6235_v43 = vpop.f32.mrb[229].mxu1  ;;  %v4944_v60 = vmax.f32 %v4893_v0, %v4938_v59  ;;  %v5304_v0 = vsel %vm5302_vm11, %v6748_v26, 0 }
 0xae5   :  { %v4941_v23 = vpop.f32.mrb[230].mxu1 }
 0xae6   :  { %4946 = vrot.lane.b32.xlu0 %v4944_v60, %s6849_s30  ;;  %v6236_v12 = vpop.f32.mrb[231].mxu1 }
 0xaea   :  { %4757 = vrot.lane.b32.xlu0 %v4755_v35, %s6849_s30 }
 0xb58   :  { %v4947_v41 = vpop.permute.xlu0 %4946 }
 0xb59   :  { %4949 = vst.msk [vmem:[#allocation2 + $0x8] sm:$0xff] %vm4760_vm9, %v4947_v41 }
 0xb5c   :  { %v4758_v57 = vpop.permute.xlu0 %4757 }
 0xb5d   :  { %4761 = vst.msk [vmem:[#allocation2] sm:$0xff] %vm4760_vm9, %v4758_v57 }
 0xb60   :  { %v4951_v6 = vld [vmem:[#allocation2 + $0x8] sm:$0xff] }
 0xb61   :  { %v4953_v33 = vpack.c.bf16 %v4951_v6, %v4951_v6 }
 0xb63   :  { %5121 = vmatprep.mubr.bf16.mxu0 %v4953_v33 }
 0xb64   :  { %v4950_v32 = vld [vmem:[#allocation2] sm:$0xff] }
 0xb65   :  { %v4952_v52 = vpack.c.bf16 %v4950_v32, %v4950_v32 }
 0xb67   :  { %5122 = vmatmul.mubr.bf16.vlgmr.msra.gmra.mrb[128].mxu0 %v4952_v52 }
 0xb68   :  { %6269 = vmatprep.mubr.msk.bf16.mxu0 %vm6854_vm8, %v6853_v11  ;;  %6258 = vmatpush3.bf16.msra.mxu0 %v6743_v14 }
 0xb69   :  { %6259 = vmatprep.subr.bf16.mxu0 %v6853_v11 }
 0xb6c   :  { %6260 = vmatpush3.bf16.msra.mxu0 %v6744_v49 }
 0xb6d   :  { %6261 = vmatprep.subr.bf16.mxu0 %v6853_v11 }
 0xb70   :  { %6262 = vmatpush3.bf16.msra.mxu0 %v6745_v31 }
 0xb71   :  { %6263 = vmatprep.subr.bf16.mxu0 %v6853_v11 }
 0xb74   :  { %6264 = vmatpush3.bf16.msra.mxu0 %v6746_v21 }
 0xb75   :  { %6265 = vmatprep.subr.bf16.mxu0 %v6853_v11 }
 0xb78   :  { %6266 = vmatpush3.bf16.msra.mxu0 %v6747_v36 }
 0xb79   :  { %6267 = vmatprep.subr.bf16.mxu0 %v6853_v11  ;;  %v5848_v11 = vld [vmem:[%s8909_s14] ss:$0 sm:$0xff] }
 0xb7c   :  { %6268 = vmatpush3.bf16.msra.mxu0 %v5304_v0 }
 0xc3a   :  { %v5981_v48 = vpop.f32.mrb[128].mxu0 }
 0xc3b   :  { %v5982_v18 = vpop.f32.mrb[129].mxu0 }
 0xc3c   :  { %v5983_v9 = vadd.f32 %v5982_v18, %v5981_v48  ;;  %v5984_v20 = vpop.f32.mrb[130].mxu0 }
 0xc3d   :  { %v5985_v8 = vpop.f32.mrb[131].mxu0 }
 0xc3e   :  { %v5124_v7 = vadd.f32 %v5983_v9, %v5821_v25 }
 0xc40   :  { %v5129_v45 = vmax.f32 %v5124_v7, 0.0 }
 0xc42   :  { %v5130_v3 = vpack.c.bf16 %v5129_v45, %v5129_v45 }
 0xc44   :  { %6254 = vmatmul.mubr.msk.bf16.vlgmr.msra.gmra.mrb[232].mxu1 %vm5198_vm10, %v5130_v3 }
 0xd17   :  { %v5239_v38 = vpop.f32.mrb[232].mxu1 }
 0xd18   :  { %v5240_v22 = vadd.f32 %v5838_v37, %v5239_v38  ;;  %v6255_v30 = vpop.f32.mrb[233].mxu1 }
 0xd19   :  { %v5242_v42 = vpop.f32.mrb[234].mxu1 }
 0xd1a   :  { %v5245_v56 = vmax.f32 %v5240_v22, 0.0  ;;  %v6256_v62 = vpop.f32.mrb[235].mxu1 }
 0xd1c   :  { %v5246_v55 = vpack.c.bf16 %v5245_v56, %v5245_v56 }
 0xd1e   :  { %6270 = vmatmul.mubr.msk.bf16.vlgmr.msra.gmra.mrb[132].mxu0 %vm5298_vm12, %v5246_v55 }
 0xdf1   :  { %v5340_v28 = vpop.f32.mrb[132].mxu0 }
 0xdf2   :  { %v5341_v40 = vadd.f32 %v5848_v11, %v5340_v28  ;;  %v6271_v10 = vpop.f32.mrb[133].mxu0 }
 0xdf3   :  { %v5343_v61 = vpop.f32.mrb[134].mxu0 }
 0xdf4   :  { %5346 = vmax.xlane.f32.xlu1 %v5341_v40  ;;  %v6272_v35 = vpop.f32.mrb[135].mxu0 }
 0xe81   :  { %v5347_v29 = vpop.xlane.xlu1 %5346 }
 0xe82   :  { %v5348_v39 = vsub.f32 %v5341_v40, %v5347_v29 }
 0xe84   :  { %v5349_v2 = vmul.f32 1.442695, %v5348_v39 }
 0xe86   :  { %6749 = vpow2.f32 %v5349_v2 }
 0xe90   :  { %v6750_v4 = vpop.eup %6749 }
 0xe91   :  { %5351 = vadd.xlane.f32.xlu1 %v6750_v4 }
 0xf1e   :  { %v5352_v53 = vpop.xlane.xlu1 %5351 }
 0xf1f   :  { %6751 = vlog2.f32 %v5352_v53 }
 0xf29   :  { %v6752_v51 = vpop.eup %6751 }
 0xf2a   :  { %v5354_v19 = vmul.f32 0.6931472, %v6752_v51 }
 0xf2c   :  { %v5355_v63 = vadd.f32 %v5354_v19, %v5347_v29 }
 0xf2e   :  { %v5356_v27 = vsub.f32 %v5341_v40, %v5355_v63 }
 0xf30   :  { %5357 = vst [vmem:[%s8910_s15] sm:$0xff] %v5356_v27 }
 0xf31   :  { %5362 = vsyncpa [#allocation4], 1 }
 0xf32   :  { %5363 = vsyncpa [#allocation6], 1 }

</bundles_post_ra>
